<compile_context>
chip_gen: v7x
topology: tpu7x:2x2x1
jax: 0.10.0
libtpu: 0.0.40
codegen_flags: <defaults>
</compile_context>

<pallas_src>
import functools

import jax
import jax.numpy as jnp
from jax.experimental import pallas as pl
from jax.experimental.pallas import tpu as pltpu

BN_EPS = 1e-5
_LANE = 128


def _round_up(x, m):
    return ((x + m - 1) // m) * m


def _geometry(H, W):
    """Padded-row pixel layout geometry (pixels live on the lane axis)."""
    wrow = W + 8                                  # row stride (covers the pad=4 conv input)
    m1 = _round_up(H * wrow, _LANE)               # lanes of every pad=1 conv output
    m2 = _round_up((H + 6) * wrow, _LANE)         # lanes of the pad=4 conv output
    npad1 = _round_up(m1 + 2 * wrow + 2, _LANE)   # lanes of a pad=1 conv input buffer
    npad2 = _round_up(m2 + 2 * wrow + 2, _LANE)   # lanes of the pad=4 conv input buffer
    return wrow, m1, m2, npad1, npad2


# ----------------------------------------------------------------------------
# Fused Pallas kernel: whole LSTMCell forward in one invocation
# ----------------------------------------------------------------------------
def _fused_lstm_kernel(hole_ref, ma_ref, mb_ref, xbuf_ref, hbuf_ref, pc_ref,
                       we1_ref, we2_ref, wg_ref, wr1_ref, wr2_ref, lw_ref, lb_ref,
                       nc_ref, nh_ref, res_ref,
                       epad_ref, cat_ref, r1pad_ref,
                       *, wrow, hid, n_valid1, n_valid2, n_holes):
    ma = ma_ref[...]                               # (1, m1) valid-pixel mask, pad=1 chain
    mb = mb_ref[...]                               # (1, m2) valid-pixel mask, pad=4 conv
    m1 = ma.shape[1]
    m2 = mb.shape[1]
    off1 = wrow + 1                                # interior offset of pad=1 input buffers
    off4 = 4 * wrow + 4                            # interior offset of the pad=4 input buffer

    def conv(buf_ref, w_ref, m):
        """3x3 conv = ONE MXU matmul: (Cout, 9*Cin) @ (9*Cin, m), bf16 operands, f32 acc.

        Loads the padded buffer once; the 9 taps are lane-shifted slices of that value."""
        bv = buf_ref[...]
        taps = []
        for k in range(9):
            dh, dw = divmod(k, 3)
            off = dh * wrow + dw
            taps.append(bv[:, off:off + m])
        patch = jnp.concatenate(taps, axis=0).astype(jnp.bfloat16)
        return jnp.dot(w_ref[...], patch, preferred_element_type=jnp.float32)

    def bnorm(y, mask, count):
        """BatchNorm2d(affine=False), batch stats (batch=1) over the masked valid pixels;
        two-pass variance (subtract mean, then square) to avoid cancellation."""
        inv = 1.0 / count
        mean = jnp.sum(y * mask, axis=1, keepdims=True) * inv
        cen = (y - mean) * mask
        var = jnp.sum(cen * cen, axis=1, keepdims=True) * inv
        return (y - mean) * jax.lax.rsqrt(var + BN_EPS)

    def store_padded(dst_ref, val, off):
        """Conv-output layout -> next conv's padded input: zero buffer + interior write."""
        dst_ref[...] = jnp.zeros(dst_ref.shape, jnp.float32)
        dst_ref[:, off:off + val.shape[1]] = val

    # ---- embedding: ConvBlock -> ReLU -> ConvBlock ---------------------------
    e1 = jnp.maximum(bnorm(conv(xbuf_ref, we1_ref, m1), ma, n_valid1), 0.0) * ma
    store_padded(epad_ref, e1, off1)
    xe = bnorm(conv(epad_ref, we2_ref, m1), ma, n_valid1) * ma

    # ---- cat([prev_h, x_emb]) along channels, already in padded layout -------
    cat_ref[0:hid, :] = hbuf_ref[...]
    cat_ref[hid:, :] = jnp.zeros((cat_ref.shape[0] - hid, cat_ref.shape[1]), jnp.float32)
    cat_ref[hid:, off1:off1 + m1] = xe

    # ---- 4 gate convs fused into one 64-channel conv (order f|i|o|c) + BN ----
    g = bnorm(conv(cat_ref, wg_ref, m1), ma, n_valid1)
    sig = jax.nn.sigmoid(g[0:3 * hid, :])          # contiguous sublane-aligned slab
    f_g = sig[0:hid, :]
    i_g = sig[hid:2 * hid, :]
    o_g = sig[2 * hid:3 * hid, :]
    c_g = jnp.tanh(g[3 * hid:4 * hid, :])

    # ---- LSTM state update (fused; no HBM round trip) ------------------------
    next_c = pc_ref[...] * f_g + i_g * c_g
    next_h = jnp.tanh(next_c) * o_g
    nc_ref[...] = next_c * ma                      # prev_c layout -> feed back directly
    store_padded(nh_ref, next_h * ma, off1)        # next_h emitted in padded-buffer layout

    # ---- hidden_to_result: ConvBlock -> ReLU -> ConvBlock(padding=4) ---------
    r1 = jnp.maximum(bnorm(conv(nh_ref, wr1_ref, m1), ma, n_valid1), 0.0) * ma
    store_padded(r1pad_ref, r1, off4)
    rm = bnorm(conv(r1pad_ref, wr2_ref, m2), mb, n_valid2)        # (n_out, m2)

    # ---- in-kernel hole readout + MapToAmount (radius 1 => per-channel affine)
    lane_ids = jax.lax.broadcasted_iota(jnp.int32, rm.shape, 1)
    cols = []
    for i in range(n_holes):
        sel = lane_ids == hole_ref[i]
        cols.append(jnp.sum(jnp.where(sel, rm, 0.0), axis=1, keepdims=True))
    vals = jnp.concatenate(cols, axis=1)                           # (n_out, n_holes)
    res_ref[...] = vals * lw_ref[...] + lb_ref[...]


# ----------------------------------------------------------------------------
# Parameters (deterministic, synthetic) + one-time packing
# ----------------------------------------------------------------------------
def init_params(key, n_in, n_out, emb=16, hid=16):
    keys = jax.random.split(key, 10)
    conv = lambda k, ci, co: 0.1 * jax.random.normal(k, (3, 3, ci, co), jnp.float32)
    return {
        "emb1": conv(keys[0], n_in, emb),
        "emb2": conv(keys[1], emb, emb),
        "f": conv(keys[2], hid + emb, hid),
        "i": conv(keys[3], hid + emb, hid),
        "c": conv(keys[4], hid + emb, hid),
        "o": conv(keys[5], hid + emb, hid),
        "h2r1": conv(keys[6], hid, hid),
        "h2r2": conv(keys[7], hid, n_out),
        # MapToAmount(kernel_radius=1) => Linear(1, 1) per output (oil/water/gas)
        "lin_w": 0.1 * jax.random.normal(keys[8], (3,), jnp.float32),
        "lin_b": 0.1 * jax.random.normal(keys[9], (3,), jnp.float32),
    }


def _pack_conv(w):
    """(3,3,Cin,Cout) HWIO -> (Cout, 9*Cin) bf16, tap-major (k = 3*dh + dw)."""
    co = w.shape[3]
    return jnp.transpose(w, (3, 0, 1, 2)).reshape(co, -1).astype(jnp.bfloat16)


def pack_params(params):
    """One-time weight packing into the kernel's MXU layout (hoisted out of the step)."""
    n_in = params["emb1"].shape[2]
    cin_pad = _round_up(max(n_in, 1), 8)
    emb1 = jnp.pad(params["emb1"], ((0, 0), (0, 0), (0, cin_pad - n_in), (0, 0)))
    # gate channel order (f, i, o, c): sigmoid gets one contiguous 3*hid slab, tanh one slab
    w_gates = jnp.concatenate([params["f"], params["i"], params["o"], params["c"]], axis=-1)
    return {
        "we1": _pack_conv(emb1),
        "we2": _pack_conv(params["emb2"]),
        "wg": _pack_conv(w_gates),
        "wr1": _pack_conv(params["h2r1"]),
        "wr2": _pack_conv(params["h2r2"]),
        "lin_w": params["lin_w"].reshape(-1, 1).astype(jnp.float32),
        "lin_b": params["lin_b"].reshape(-1, 1).astype(jnp.float32),
    }


# ----------------------------------------------------------------------------
# Kernel-layout converters (state stays in kernel layout between timesteps)
# ----------------------------------------------------------------------------
def _chw_to_padded(a_chw, wrow, npad, H, W):
    """(C,H,W) -> (C, npad): pixel (h, w) at lane (h+1)*wrow + (w+1), zeros elsewhere."""
    c = a_chw.shape[0]
    p = jnp.pad(a_chw, ((0, 0), (1, 1), (1, wrow - W - 1))).reshape(c, (H + 2) * wrow)
    return jnp.pad(p, ((0, 0), (0, npad - (H + 2) * wrow)))


def _chw_to_out_layout(a_chw, wrow, m, H, W):
    """(C,H,W) -> (C, m): pixel (h, w) at lane h*wrow + w, zeros elsewhere."""
    c = a_chw.shape[0]
    p = jnp.pad(a_chw, ((0, 0), (0, 0), (0, wrow - W))).reshape(c, H * wrow)
    return jnp.pad(p, ((0, 0), (0, m - H * wrow)))


def init_state(hid, H, W):
    """prev_c / prev_h = ones (like the module's init_state), already in kernel layout."""
    wrow, m1, _, npad1, _ = _geometry(H, W)
    ones = jnp.ones((hid, H, W), jnp.float32)
    return (_chw_to_out_layout(ones, wrow, m1, H, W),
            _chw_to_padded(ones, wrow, npad1, H, W))


def state_to_nchw(state, H, W):
    wrow, _, _, _, _ = _geometry(H, W)
    c_kl, h_kl = state
    hid = c_kl.shape[0]
    c = c_kl[:, :H * wrow].reshape(hid, H, wrow)[:, :, :W]
    h = h_kl[:, :(H + 2) * wrow].reshape(hid, H + 2, wrow)[:, 1:H + 1, 1:W + 1]
    return c[None], h[None]


# ----------------------------------------------------------------------------
# Forward (mirrors LSTMCell.forward, batch=1, output_lin_radius=1)
# ----------------------------------------------------------------------------
def lstm_cell_forward(packed, x_nchw, state, holes):
    # TODO(synk): only output_lin_radius=1 (the module default) is implemented; larger
    # radii would need a windowed gather + Linear(n_features, 1) readout.
    prev_c_kl, prev_h_kl = state
    _, n_in, H, W = x_nchw.shape
    wrow, m1, m2, npad1, npad2 = _geometry(H, W)
    hid = prev_c_kl.shape[0]
    emb = packed["we2"].shape[0]
    n_out = packed["wr2"].shape[0]
    n_holes = holes.shape[0]
    cin_pad = _round_up(max(n_in, 1), 8)

    # per-step input packing (the recurrent state is already in kernel layout)
    x_chw = jnp.pad(x_nchw[0].astype(jnp.float32), ((0, cin_pad - n_in), (0, 0), (0, 0)))
    xbuf = _chw_to_padded(x_chw, wrow, npad1, H, W)

    # valid-pixel masks (constants under jit)
    lanes1 = jnp.arange(m1, dtype=jnp.int32)
    mask_a = ((lanes1 < H * wrow) & (lanes1 % wrow < W)).astype(jnp.float32)[None, :]
    lanes2 = jnp.arange(m2, dtype=jnp.int32)
    mask_b = ((lanes2 < (H + 6) * wrow) & (lanes2 % wrow < W + 6)).astype(jnp.float32)[None, :]

    # hole (x, y) -> flat lane of res_map[x+3, y+3] in the pad=4 output layout
    hole_lane = ((holes[:, 0] + 3) * wrow + (holes[:, 1] + 3)).astype(jnp.int32)

    kernel = functools.partial(
        _fused_lstm_kernel, wrow=wrow, hid=hid, n_holes=n_holes,
        n_valid1=float(H * W), n_valid2=float((H + 6) * (W + 6)))

    vmem = pl.BlockSpec(memory_space=pltpu.MemorySpace.VMEM)
    smem = pl.BlockSpec(memory_space=pltpu.MemorySpace.SMEM)

    next_c_kl, next_h_kl, res_t = pl.pallas_call(
        kernel,
        out_shape=(jax.ShapeDtypeStruct((hid, m1), jnp.float32),       # next_c (pc layout)
                   jax.ShapeDtypeStruct((hid, npad1), jnp.float32),    # next_h (padded layout)
                   jax.ShapeDtypeStruct((n_out, n_holes), jnp.float32)),
        in_specs=[smem] + [vmem] * 12,
        out_specs=(vmem, vmem, vmem),
        scratch_shapes=[pltpu.VMEM((emb, npad1), jnp.float32),         # padded emb1 output
                        pltpu.VMEM((hid + emb, npad1), jnp.float32),   # padded cat([h, x_emb])
                        pltpu.VMEM((hid, npad2), jnp.float32)],        # padded r1 (pad=4 input)
    )(hole_lane, mask_a, mask_b, xbuf, prev_h_kl, prev_c_kl,
      packed["we1"], packed["we2"], packed["wg"], packed["wr1"], packed["wr2"],
      packed["lin_w"], packed["lin_b"])

    return (next_c_kl, next_h_kl), res_t.T


# ----------------------------------------------------------------------------
if __name__ == "__main__":
    key = jax.random.PRNGKey(0)
    n_in, n_out, emb, hid = 4, 3, 16, 16
    H = W = 16

    kp, kx = jax.random.split(key, 2)
    params = init_params(kp, n_in, n_out, emb, hid)
    packed = pack_params(params)                                 # packed ONCE, reused per step

    x = jax.random.normal(kx, (1, n_in, H, W), jnp.float32)      # NCHW, like PyTorch
    state = init_state(hid, H, W)                                # ones, kernel layout
    holes = jnp.array([[2, 3], [7, 5], [12, 10]], dtype=jnp.int32)

    fwd = jax.jit(lstm_cell_forward)
    (next_c_kl, next_h_kl), res = fwd(packed, x, state, holes)
    jax.block_until_ready((next_c_kl, next_h_kl, res))

    next_c, next_h = state_to_nchw((next_c_kl, next_h_kl), H, W)
    assert next_c.shape == (1, hid, H, W)
    assert next_h.shape == (1, hid, H, W)
    assert res.shape == (holes.shape[0], 3)
    assert bool(jnp.all(jnp.isfinite(res)))
    assert bool(jnp.all(jnp.isfinite(next_h)))
    print("KERNEL_OK")
</pallas_src>

<mosaic_0001>
module attributes {stable_mosaic.version = 11 : i64} {
  func.func @_fused_lstm_kernel(%arg0: memref<3xi32, #tpu.memory_space<smem>>, %arg1: memref<1x384xf32, #tpu.memory_space<vmem>>, %arg2: memref<1x640xf32, #tpu.memory_space<vmem>>, %arg3: memref<8x512xf32, #tpu.memory_space<vmem>>, %arg4: memref<16x512xf32, #tpu.memory_space<vmem>>, %arg5: memref<16x384xf32, #tpu.memory_space<vmem>>, %arg6: memref<16x72xbf16, #tpu.memory_space<vmem>>, %arg7: memref<16x144xbf16, #tpu.memory_space<vmem>>, %arg8: memref<64x288xbf16, #tpu.memory_space<vmem>>, %arg9: memref<16x144xbf16, #tpu.memory_space<vmem>>, %arg10: memref<3x144xbf16, #tpu.memory_space<vmem>>, %arg11: memref<3x1xf32, #tpu.memory_space<vmem>>, %arg12: memref<3x1xf32, #tpu.memory_space<vmem>>, %arg13: memref<16x384xf32, #tpu.memory_space<vmem>>, %arg14: memref<16x512xf32, #tpu.memory_space<vmem>>, %arg15: memref<3x3xf32, #tpu.memory_space<vmem>>, %arg16: memref<16x512xf32, #tpu.memory_space<vmem>>, %arg17: memref<32x512xf32, #tpu.memory_space<vmem>>, %arg18: memref<16x768xf32, #tpu.memory_space<vmem>>) attributes {dimension_semantics = [], scalar_prefetch = 0 : i64, scratch_operands = 3 : i64, tpu.core_type = #tpu.core_type<tc>} {
    %c0 = arith.constant 0 : index
    %c0_0 = arith.constant 0 : index
    %0 = vector.load %arg1[%c0, %c0_0] : memref<1x384xf32, #tpu.memory_space<vmem>>, vector<1x384xf32>
    %c0_1 = arith.constant 0 : index
    %c0_2 = arith.constant 0 : index
    %1 = vector.load %arg2[%c0_1, %c0_2] : memref<1x640xf32, #tpu.memory_space<vmem>>, vector<1x640xf32>
    %c0_3 = arith.constant 0 : index
    %c0_4 = arith.constant 0 : index
    %2 = vector.load %arg3[%c0_3, %c0_4] : memref<8x512xf32, #tpu.memory_space<vmem>>, vector<8x512xf32>
    %3 = vector.extract_strided_slice %2 {offsets = [0, 0], sizes = [8, 384], strides = [1, 1]} : vector<8x512xf32> to vector<8x384xf32>
    %4 = vector.extract_strided_slice %2 {offsets = [0, 1], sizes = [8, 384], strides = [1, 1]} : vector<8x512xf32> to vector<8x384xf32>
    %5 = vector.extract_strided_slice %2 {offsets = [0, 2], sizes = [8, 384], strides = [1, 1]} : vector<8x512xf32> to vector<8x384xf32>
    %6 = vector.extract_strided_slice %2 {offsets = [0, 24], sizes = [8, 384], strides = [1, 1]} : vector<8x512xf32> to vector<8x384xf32>
    %7 = vector.extract_strided_slice %2 {offsets = [0, 25], sizes = [8, 384], strides = [1, 1]} : vector<8x512xf32> to vector<8x384xf32>
    %8 = vector.extract_strided_slice %2 {offsets = [0, 26], sizes = [8, 384], strides = [1, 1]} : vector<8x512xf32> to vector<8x384xf32>
    %9 = vector.extract_strided_slice %2 {offsets = [0, 48], sizes = [8, 384], strides = [1, 1]} : vector<8x512xf32> to vector<8x384xf32>
    %10 = vector.extract_strided_slice %2 {offsets = [0, 49], sizes = [8, 384], strides = [1, 1]} : vector<8x512xf32> to vector<8x384xf32>
    %11 = vector.extract_strided_slice %2 {offsets = [0, 50], sizes = [8, 384], strides = [1, 1]} : vector<8x512xf32> to vector<8x384xf32>
    %12 = tpu.concatenate %3, %4, %5, %6, %7, %8, %9, %10, %11 in 0 : vector<8x384xf32>, vector<8x384xf32>, vector<8x384xf32>, vector<8x384xf32>, vector<8x384xf32>, vector<8x384xf32>, vector<8x384xf32>, vector<8x384xf32>, vector<8x384xf32> -> vector<72x384xf32>
    %13 = arith.truncf %12 : vector<72x384xf32> to vector<72x384xbf16>
    %c0_5 = arith.constant 0 : index
    %c0_6 = arith.constant 0 : index
    %14 = vector.load %arg6[%c0_5, %c0_6] : memref<16x72xbf16, #tpu.memory_space<vmem>>, vector<16x72xbf16>
    %cst = arith.constant dense<0.000000e+00> : vector<16x384xf32>
    %15 = tpu.matmul %14, %13, %cst {dimension_numbers = #tpu.dot_dimension_numbers<[1], [0], [0], [1], [0, 0, 1, 1], [], []>} : vector<16x72xbf16>, vector<72x384xbf16>, vector<16x384xf32> -> vector<16x384xf32>
    %16 = vector.broadcast %0 : vector<1x384xf32> to vector<16x384xf32>
    %17 = arith.mulf %15, %16 : vector<16x384xf32>
    %cst_7 = arith.constant dense<0.000000e+00> : vector<16xf32>
    %18 = vector.multi_reduction <add>, %17, %cst_7 [1] : vector<16x384xf32> to vector<16xf32>
    %19 = vector.shape_cast %18 : vector<16xf32> to vector<16x1xf32>
    %cst_8 = arith.constant 3.906250e-03 : f32
    %20 = vector.broadcast %cst_8 : f32 to vector<16x1xf32>
    %21 = arith.mulf %19, %20 : vector<16x1xf32>
    %22 = vector.broadcast %21 : vector<16x1xf32> to vector<16x384xf32>
    %23 = arith.subf %15, %22 : vector<16x384xf32>
    %24 = vector.broadcast %0 : vector<1x384xf32> to vector<16x384xf32>
    %25 = arith.mulf %23, %24 : vector<16x384xf32>
    %26 = arith.mulf %25, %25 : vector<16x384xf32>
    %cst_9 = arith.constant dense<0.000000e+00> : vector<16xf32>
    %27 = vector.multi_reduction <add>, %26, %cst_9 [1] : vector<16x384xf32> to vector<16xf32>
    %28 = vector.shape_cast %27 : vector<16xf32> to vector<16x1xf32>
    %cst_10 = arith.constant 3.906250e-03 : f32
    %29 = vector.broadcast %cst_10 : f32 to vector<16x1xf32>
    %30 = arith.mulf %28, %29 : vector<16x1xf32>
    %31 = vector.broadcast %21 : vector<16x1xf32> to vector<16x384xf32>
    %32 = arith.subf %15, %31 : vector<16x384xf32>
    %cst_11 = arith.constant 9.99999974E-6 : f32
    %33 = vector.broadcast %cst_11 : f32 to vector<16x1xf32>
    %34 = arith.addf %30, %33 : vector<16x1xf32>
    %35 = math.rsqrt %34 : vector<16x1xf32>
    %36 = vector.broadcast %35 : vector<16x1xf32> to vector<16x384xf32>
    %37 = arith.mulf %32, %36 : vector<16x384xf32>
    %cst_12 = arith.constant 0.000000e+00 : f32
    %38 = vector.broadcast %cst_12 : f32 to vector<16x384xf32>
    %39 = arith.maximumf %37, %38 : vector<16x384xf32>
    %40 = vector.broadcast %0 : vector<1x384xf32> to vector<16x384xf32>
    %41 = arith.mulf %39, %40 : vector<16x384xf32>
    %cst_13 = arith.constant 0.000000e+00 : f32
    %42 = vector.broadcast %cst_13 : f32 to vector<16x512xf32>
    %c0_14 = arith.constant 0 : index
    %c0_15 = arith.constant 0 : index
    %43 = vector.load %arg16[%c0_14, %c0_15] : memref<16x512xf32, #tpu.memory_space<vmem>>, vector<16x512xf32>
    tpu.vector_store %arg16[%c0_14, %c0_15], %42 {strides = array<i32>} : memref<16x512xf32, #tpu.memory_space<vmem>>, vector<16x512xf32>,
    %c0_16 = arith.constant 0 : index
    %c25 = arith.constant 25 : index
    %44 = vector.load %arg16[%c0_16, %c25] : memref<16x512xf32, #tpu.memory_space<vmem>>, vector<16x384xf32>
    tpu.vector_store %arg16[%c0_16, %c25], %41 {strides = array<i32>} : memref<16x512xf32, #tpu.memory_space<vmem>>, vector<16x384xf32>,
    %c0_17 = arith.constant 0 : index
    %c0_18 = arith.constant 0 : index
    %45 = vector.load %arg16[%c0_17, %c0_18] : memref<16x512xf32, #tpu.memory_space<vmem>>, vector<16x512xf32>
    %46 = vector.extract_strided_slice %45 {offsets = [0, 0], sizes = [16, 384], strides = [1, 1]} : vector<16x512xf32> to vector<16x384xf32>
    %47 = vector.extract_strided_slice %45 {offsets = [0, 1], sizes = [16, 384], strides = [1, 1]} : vector<16x512xf32> to vector<16x384xf32>
    %48 = vector.extract_strided_slice %45 {offsets = [0, 2], sizes = [16, 384], strides = [1, 1]} : vector<16x512xf32> to vector<16x384xf32>
    %49 = vector.extract_strided_slice %45 {offsets = [0, 24], sizes = [16, 384], strides = [1, 1]} : vector<16x512xf32> to vector<16x384xf32>
    %50 = vector.extract_strided_slice %45 {offsets = [0, 25], sizes = [16, 384], strides = [1, 1]} : vector<16x512xf32> to vector<16x384xf32>
    %51 = vector.extract_strided_slice %45 {offsets = [0, 26], sizes = [16, 384], strides = [1, 1]} : vector<16x512xf32> to vector<16x384xf32>
    %52 = vector.extract_strided_slice %45 {offsets = [0, 48], sizes = [16, 384], strides = [1, 1]} : vector<16x512xf32> to vector<16x384xf32>
    %53 = vector.extract_strided_slice %45 {offsets = [0, 49], sizes = [16, 384], strides = [1, 1]} : vector<16x512xf32> to vector<16x384xf32>
    %54 = vector.extract_strided_slice %45 {offsets = [0, 50], sizes = [16, 384], strides = [1, 1]} : vector<16x512xf32> to vector<16x384xf32>
    %55 = tpu.concatenate %46, %47, %48, %49, %50, %51, %52, %53, %54 in 0 : vector<16x384xf32>, vector<16x384xf32>, vector<16x384xf32>, vector<16x384xf32>, vector<16x384xf32>, vector<16x384xf32>, vector<16x384xf32>, vector<16x384xf32>, vector<16x384xf32> -> vector<144x384xf32>
    %56 = arith.truncf %55 : vector<144x384xf32> to vector<144x384xbf16>
    %c0_19 = arith.constant 0 : index
    %c0_20 = arith.constant 0 : index
    %57 = vector.load %arg7[%c0_19, %c0_20] : memref<16x144xbf16, #tpu.memory_space<vmem>>, vector<16x144xbf16>
    %cst_21 = arith.constant dense<0.000000e+00> : vector<16x384xf32>
    %58 = tpu.matmul %57, %56, %cst_21 {dimension_numbers = #tpu.dot_dimension_numbers<[1], [0], [0], [1], [0, 0, 1, 1], [], []>} : vector<16x144xbf16>, vector<144x384xbf16>, vector<16x384xf32> -> vector<16x384xf32>
    %59 = vector.broadcast %0 : vector<1x384xf32> to vector<16x384xf32>
    %60 = arith.mulf %58, %59 : vector<16x384xf32>
    %cst_22 = arith.constant dense<0.000000e+00> : vector<16xf32>
    %61 = vector.multi_reduction <add>, %60, %cst_22 [1] : vector<16x384xf32> to vector<16xf32>
    %62 = vector.shape_cast %61 : vector<16xf32> to vector<16x1xf32>
    %cst_23 = arith.constant 3.906250e-03 : f32
    %63 = vector.broadcast %cst_23 : f32 to vector<16x1xf32>
    %64 = arith.mulf %62, %63 : vector<16x1xf32>
    %65 = vector.broadcast %64 : vector<16x1xf32> to vector<16x384xf32>
    %66 = arith.subf %58, %65 : vector<16x384xf32>
    %67 = vector.broadcast %0 : vector<1x384xf32> to vector<16x384xf32>
    %68 = arith.mulf %66, %67 : vector<16x384xf32>
    %69 = arith.mulf %68, %68 : vector<16x384xf32>
    %cst_24 = arith.constant dense<0.000000e+00> : vector<16xf32>
    %70 = vector.multi_reduction <add>, %69, %cst_24 [1] : vector<16x384xf32> to vector<16xf32>
    %71 = vector.shape_cast %70 : vector<16xf32> to vector<16x1xf32>
    %cst_25 = arith.constant 3.906250e-03 : f32
    %72 = vector.broadcast %cst_25 : f32 to vector<16x1xf32>
    %73 = arith.mulf %71, %72 : vector<16x1xf32>
    %74 = vector.broadcast %64 : vector<16x1xf32> to vector<16x384xf32>
    %75 = arith.subf %58, %74 : vector<16x384xf32>
    %cst_26 = arith.constant 9.99999974E-6 : f32
    %76 = vector.broadcast %cst_26 : f32 to vector<16x1xf32>
    %77 = arith.addf %73, %76 : vector<16x1xf32>
    %78 = math.rsqrt %77 : vector<16x1xf32>
    %79 = vector.broadcast %78 : vector<16x1xf32> to vector<16x384xf32>
    %80 = arith.mulf %75, %79 : vector<16x384xf32>
    %81 = vector.broadcast %0 : vector<1x384xf32> to vector<16x384xf32>
    %82 = arith.mulf %80, %81 : vector<16x384xf32>
    %c0_27 = arith.constant 0 : index
    %c0_28 = arith.constant 0 : index
    %83 = vector.load %arg4[%c0_27, %c0_28] : memref<16x512xf32, #tpu.memory_space<vmem>>, vector<16x512xf32>
    %c0_29 = arith.constant 0 : index
    %c0_30 = arith.constant 0 : index
    %84 = vector.load %arg17[%c0_29, %c0_30] : memref<32x512xf32, #tpu.memory_space<vmem>>, vector<16x512xf32>
    tpu.vector_store %arg17[%c0_29, %c0_30], %83 {strides = array<i32>} : memref<32x512xf32, #tpu.memory_space<vmem>>, vector<16x512xf32>,
    %cst_31 = arith.constant 0.000000e+00 : f32
    %85 = vector.broadcast %cst_31 : f32 to vector<16x512xf32>
    %c16 = arith.constant 16 : index
    %c0_32 = arith.constant 0 : index
    %86 = vector.load %arg17[%c16, %c0_32] : memref<32x512xf32, #tpu.memory_space<vmem>>, vector<16x512xf32>
    tpu.vector_store %arg17[%c16, %c0_32], %85 {strides = array<i32>} : memref<32x512xf32, #tpu.memory_space<vmem>>, vector<16x512xf32>,
    %c16_33 = arith.constant 16 : index
    %c25_34 = arith.constant 25 : index
    %87 = vector.load %arg17[%c16_33, %c25_34] : memref<32x512xf32, #tpu.memory_space<vmem>>, vector<16x384xf32>
    tpu.vector_store %arg17[%c16_33, %c25_34], %82 {strides = array<i32>} : memref<32x512xf32, #tpu.memory_space<vmem>>, vector<16x384xf32>,
    %c0_35 = arith.constant 0 : index
    %c0_36 = arith.constant 0 : index
    %88 = vector.load %arg17[%c0_35, %c0_36] : memref<32x512xf32, #tpu.memory_space<vmem>>, vector<32x512xf32>
    %89 = vector.extract_strided_slice %88 {offsets = [0, 0], sizes = [32, 384], strides = [1, 1]} : vector<32x512xf32> to vector<32x384xf32>
    %90 = vector.extract_strided_slice %88 {offsets = [0, 1], sizes = [32, 384], strides = [1, 1]} : vector<32x512xf32> to vector<32x384xf32>
    %91 = vector.extract_strided_slice %88 {offsets = [0, 2], sizes = [32, 384], strides = [1, 1]} : vector<32x512xf32> to vector<32x384xf32>
    %92 = vector.extract_strided_slice %88 {offsets = [0, 24], sizes = [32, 384], strides = [1, 1]} : vector<32x512xf32> to vector<32x384xf32>
    %93 = vector.extract_strided_slice %88 {offsets = [0, 25], sizes = [32, 384], strides = [1, 1]} : vector<32x512xf32> to vector<32x384xf32>
    %94 = vector.extract_strided_slice %88 {offsets = [0, 26], sizes = [32, 384], strides = [1, 1]} : vector<32x512xf32> to vector<32x384xf32>
    %95 = vector.extract_strided_slice %88 {offsets = [0, 48], sizes = [32, 384], strides = [1, 1]} : vector<32x512xf32> to vector<32x384xf32>
    %96 = vector.extract_strided_slice %88 {offsets = [0, 49], sizes = [32, 384], strides = [1, 1]} : vector<32x512xf32> to vector<32x384xf32>
    %97 = vector.extract_strided_slice %88 {offsets = [0, 50], sizes = [32, 384], strides = [1, 1]} : vector<32x512xf32> to vector<32x384xf32>
    %98 = tpu.concatenate %89, %90, %91, %92, %93, %94, %95, %96, %97 in 0 : vector<32x384xf32>, vector<32x384xf32>, vector<32x384xf32>, vector<32x384xf32>, vector<32x384xf32>, vector<32x384xf32>, vector<32x384xf32>, vector<32x384xf32>, vector<32x384xf32> -> vector<288x384xf32>
    %99 = arith.truncf %98 : vector<288x384xf32> to vector<288x384xbf16>
    %c0_37 = arith.constant 0 : index
    %c0_38 = arith.constant 0 : index
    %100 = vector.load %arg8[%c0_37, %c0_38] : memref<64x288xbf16, #tpu.memory_space<vmem>>, vector<64x288xbf16>
    %cst_39 = arith.constant dense<0.000000e+00> : vector<64x384xf32>
    %101 = tpu.matmul %100, %99, %cst_39 {dimension_numbers = #tpu.dot_dimension_numbers<[1], [0], [0], [1], [0, 0, 1, 1], [], []>} : vector<64x288xbf16>, vector<288x384xbf16>, vector<64x384xf32> -> vector<64x384xf32>
    %102 = vector.broadcast %0 : vector<1x384xf32> to vector<64x384xf32>
    %103 = arith.mulf %101, %102 : vector<64x384xf32>
    %cst_40 = arith.constant dense<0.000000e+00> : vector<64xf32>
    %104 = vector.multi_reduction <add>, %103, %cst_40 [1] : vector<64x384xf32> to vector<64xf32>
    %105 = vector.shape_cast %104 : vector<64xf32> to vector<64x1xf32>
    %cst_41 = arith.constant 3.906250e-03 : f32
    %106 = vector.broadcast %cst_41 : f32 to vector<64x1xf32>
    %107 = arith.mulf %105, %106 : vector<64x1xf32>
    %108 = vector.broadcast %107 : vector<64x1xf32> to vector<64x384xf32>
    %109 = arith.subf %101, %108 : vector<64x384xf32>
    %110 = vector.broadcast %0 : vector<1x384xf32> to vector<64x384xf32>
    %111 = arith.mulf %109, %110 : vector<64x384xf32>
    %112 = arith.mulf %111, %111 : vector<64x384xf32>
    %cst_42 = arith.constant dense<0.000000e+00> : vector<64xf32>
    %113 = vector.multi_reduction <add>, %112, %cst_42 [1] : vector<64x384xf32> to vector<64xf32>
    %114 = vector.shape_cast %113 : vector<64xf32> to vector<64x1xf32>
    %cst_43 = arith.constant 3.906250e-03 : f32
    %115 = vector.broadcast %cst_43 : f32 to vector<64x1xf32>
    %116 = arith.mulf %114, %115 : vector<64x1xf32>
    %117 = vector.broadcast %107 : vector<64x1xf32> to vector<64x384xf32>
    %118 = arith.subf %101, %117 : vector<64x384xf32>
    %cst_44 = arith.constant 9.99999974E-6 : f32
    %119 = vector.broadcast %cst_44 : f32 to vector<64x1xf32>
    %120 = arith.addf %116, %119 : vector<64x1xf32>
    %121 = math.rsqrt %120 : vector<64x1xf32>
    %122 = vector.broadcast %121 : vector<64x1xf32> to vector<64x384xf32>
    %123 = arith.mulf %118, %122 : vector<64x384xf32>
    %124 = vector.extract_strided_slice %123 {offsets = [0, 0], sizes = [48, 384], strides = [1, 1]} : vector<64x384xf32> to vector<48x384xf32>
    %125 = arith.negf %124 : vector<48x384xf32>
    %126 = math.exp %125 : vector<48x384xf32>
    %cst_45 = arith.constant 1.000000e+00 : f32
    %127 = vector.broadcast %cst_45 : f32 to vector<48x384xf32>
    %128 = arith.addf %127, %126 : vector<48x384xf32>
    %129 = arith.divf %127, %128 : vector<48x384xf32>
    %130 = vector.extract_strided_slice %129 {offsets = [0, 0], sizes = [16, 384], strides = [1, 1]} : vector<48x384xf32> to vector<16x384xf32>
    %131 = vector.extract_strided_slice %129 {offsets = [16, 0], sizes = [16, 384], strides = [1, 1]} : vector<48x384xf32> to vector<16x384xf32>
    %132 = vector.extract_strided_slice %129 {offsets = [32, 0], sizes = [16, 384], strides = [1, 1]} : vector<48x384xf32> to vector<16x384xf32>
    %133 = vector.extract_strided_slice %123 {offsets = [48, 0], sizes = [16, 384], strides = [1, 1]} : vector<64x384xf32> to vector<16x384xf32>
    %134 = math.tanh %133 : vector<16x384xf32>
    %c0_46 = arith.constant 0 : index
    %c0_47 = arith.constant 0 : index
    %135 = vector.load %arg5[%c0_46, %c0_47] : memref<16x384xf32, #tpu.memory_space<vmem>>, vector<16x384xf32>
    %136 = arith.mulf %135, %130 : vector<16x384xf32>
    %137 = arith.mulf %131, %134 : vector<16x384xf32>
    %138 = arith.addf %136, %137 : vector<16x384xf32>
    %139 = math.tanh %138 : vector<16x384xf32>
    %140 = arith.mulf %139, %132 : vector<16x384xf32>
    %141 = vector.broadcast %0 : vector<1x384xf32> to vector<16x384xf32>
    %142 = arith.mulf %138, %141 : vector<16x384xf32>
    %c0_48 = arith.constant 0 : index
    %c0_49 = arith.constant 0 : index
    %143 = vector.load %arg13[%c0_48, %c0_49] : memref<16x384xf32, #tpu.memory_space<vmem>>, vector<16x384xf32>
    tpu.vector_store %arg13[%c0_48, %c0_49], %142 {strides = array<i32>} : memref<16x384xf32, #tpu.memory_space<vmem>>, vector<16x384xf32>,
    %144 = vector.broadcast %0 : vector<1x384xf32> to vector<16x384xf32>
    %145 = arith.mulf %140, %144 : vector<16x384xf32>
    %cst_50 = arith.constant 0.000000e+00 : f32
    %146 = vector.broadcast %cst_50 : f32 to vector<16x512xf32>
    %c0_51 = arith.constant 0 : index
    %c0_52 = arith.constant 0 : index
    %147 = vector.load %arg14[%c0_51, %c0_52] : memref<16x512xf32, #tpu.memory_space<vmem>>, vector<16x512xf32>
    tpu.vector_store %arg14[%c0_51, %c0_52], %146 {strides = array<i32>} : memref<16x512xf32, #tpu.memory_space<vmem>>, vector<16x512xf32>,
    %c0_53 = arith.constant 0 : index
    %c25_54 = arith.constant 25 : index
    %148 = vector.load %arg14[%c0_53, %c25_54] : memref<16x512xf32, #tpu.memory_space<vmem>>, vector<16x384xf32>
    tpu.vector_store %arg14[%c0_53, %c25_54], %145 {strides = array<i32>} : memref<16x512xf32, #tpu.memory_space<vmem>>, vector<16x384xf32>,
    %c0_55 = arith.constant 0 : index
    %c0_56 = arith.constant 0 : index
    %149 = vector.load %arg14[%c0_55, %c0_56] : memref<16x512xf32, #tpu.memory_space<vmem>>, vector<16x512xf32>
    %150 = vector.extract_strided_slice %149 {offsets = [0, 0], sizes = [16, 384], strides = [1, 1]} : vector<16x512xf32> to vector<16x384xf32>
    %151 = vector.extract_strided_slice %149 {offsets = [0, 1], sizes = [16, 384], strides = [1, 1]} : vector<16x512xf32> to vector<16x384xf32>
    %152 = vector.extract_strided_slice %149 {offsets = [0, 2], sizes = [16, 384], strides = [1, 1]} : vector<16x512xf32> to vector<16x384xf32>
    %153 = vector.extract_strided_slice %149 {offsets = [0, 24], sizes = [16, 384], strides = [1, 1]} : vector<16x512xf32> to vector<16x384xf32>
    %154 = vector.extract_strided_slice %149 {offsets = [0, 25], sizes = [16, 384], strides = [1, 1]} : vector<16x512xf32> to vector<16x384xf32>
    %155 = vector.extract_strided_slice %149 {offsets = [0, 26], sizes = [16, 384], strides = [1, 1]} : vector<16x512xf32> to vector<16x384xf32>
    %156 = vector.extract_strided_slice %149 {offsets = [0, 48], sizes = [16, 384], strides = [1, 1]} : vector<16x512xf32> to vector<16x384xf32>
    %157 = vector.extract_strided_slice %149 {offsets = [0, 49], sizes = [16, 384], strides = [1, 1]} : vector<16x512xf32> to vector<16x384xf32>
    %158 = vector.extract_strided_slice %149 {offsets = [0, 50], sizes = [16, 384], strides = [1, 1]} : vector<16x512xf32> to vector<16x384xf32>
    %159 = tpu.concatenate %150, %151, %152, %153, %154, %155, %156, %157, %158 in 0 : vector<16x384xf32>, vector<16x384xf32>, vector<16x384xf32>, vector<16x384xf32>, vector<16x384xf32>, vector<16x384xf32>, vector<16x384xf32>, vector<16x384xf32>, vector<16x384xf32> -> vector<144x384xf32>
    %160 = arith.truncf %159 : vector<144x384xf32> to vector<144x384xbf16>
    %c0_57 = arith.constant 0 : index
    %c0_58 = arith.constant 0 : index
    %161 = vector.load %arg9[%c0_57, %c0_58] : memref<16x144xbf16, #tpu.memory_space<vmem>>, vector<16x144xbf16>
    %cst_59 = arith.constant dense<0.000000e+00> : vector<16x384xf32>
    %162 = tpu.matmul %161, %160, %cst_59 {dimension_numbers = #tpu.dot_dimension_numbers<[1], [0], [0], [1], [0, 0, 1, 1], [], []>} : vector<16x144xbf16>, vector<144x384xbf16>, vector<16x384xf32> -> vector<16x384xf32>
    %163 = vector.broadcast %0 : vector<1x384xf32> to vector<16x384xf32>
    %164 = arith.mulf %162, %163 : vector<16x384xf32>
    %cst_60 = arith.constant dense<0.000000e+00> : vector<16xf32>
    %165 = vector.multi_reduction <add>, %164, %cst_60 [1] : vector<16x384xf32> to vector<16xf32>
    %166 = vector.shape_cast %165 : vector<16xf32> to vector<16x1xf32>
    %cst_61 = arith.constant 3.906250e-03 : f32
    %167 = vector.broadcast %cst_61 : f32 to vector<16x1xf32>
    %168 = arith.mulf %166, %167 : vector<16x1xf32>
    %169 = vector.broadcast %168 : vector<16x1xf32> to vector<16x384xf32>
    %170 = arith.subf %162, %169 : vector<16x384xf32>
    %171 = vector.broadcast %0 : vector<1x384xf32> to vector<16x384xf32>
    %172 = arith.mulf %170, %171 : vector<16x384xf32>
    %173 = arith.mulf %172, %172 : vector<16x384xf32>
    %cst_62 = arith.constant dense<0.000000e+00> : vector<16xf32>
    %174 = vector.multi_reduction <add>, %173, %cst_62 [1] : vector<16x384xf32> to vector<16xf32>
    %175 = vector.shape_cast %174 : vector<16xf32> to vector<16x1xf32>
    %cst_63 = arith.constant 3.906250e-03 : f32
    %176 = vector.broadcast %cst_63 : f32 to vector<16x1xf32>
    %177 = arith.mulf %175, %176 : vector<16x1xf32>
    %178 = vector.broadcast %168 : vector<16x1xf32> to vector<16x384xf32>
    %179 = arith.subf %162, %178 : vector<16x384xf32>
    %cst_64 = arith.constant 9.99999974E-6 : f32
    %180 = vector.broadcast %cst_64 : f32 to vector<16x1xf32>
    %181 = arith.addf %177, %180 : vector<16x1xf32>
    %182 = math.rsqrt %181 : vector<16x1xf32>
    %183 = vector.broadcast %182 : vector<16x1xf32> to vector<16x384xf32>
    %184 = arith.mulf %179, %183 : vector<16x384xf32>
    %cst_65 = arith.constant 0.000000e+00 : f32
    %185 = vector.broadcast %cst_65 : f32 to vector<16x384xf32>
    %186 = arith.maximumf %184, %185 : vector<16x384xf32>
    %187 = vector.broadcast %0 : vector<1x384xf32> to vector<16x384xf32>
    %188 = arith.mulf %186, %187 : vector<16x384xf32>
    %cst_66 = arith.constant 0.000000e+00 : f32
    %189 = vector.broadcast %cst_66 : f32 to vector<16x768xf32>
    %c0_67 = arith.constant 0 : index
    %c0_68 = arith.constant 0 : index
    %190 = vector.load %arg18[%c0_67, %c0_68] : memref<16x768xf32, #tpu.memory_space<vmem>>, vector<16x768xf32>
    tpu.vector_store %arg18[%c0_67, %c0_68], %189 {strides = array<i32>} : memref<16x768xf32, #tpu.memory_space<vmem>>, vector<16x768xf32>,
    %c0_69 = arith.constant 0 : index
    %c100 = arith.constant 100 : index
    %191 = vector.load %arg18[%c0_69, %c100] : memref<16x768xf32, #tpu.memory_space<vmem>>, vector<16x384xf32>
    tpu.vector_store %arg18[%c0_69, %c100], %188 {strides = array<i32>} : memref<16x768xf32, #tpu.memory_space<vmem>>, vector<16x384xf32>,
    %c0_70 = arith.constant 0 : index
    %c0_71 = arith.constant 0 : index
    %192 = vector.load %arg18[%c0_70, %c0_71] : memref<16x768xf32, #tpu.memory_space<vmem>>, vector<16x768xf32>
    %193 = vector.extract_strided_slice %192 {offsets = [0, 0], sizes = [16, 640], strides = [1, 1]} : vector<16x768xf32> to vector<16x640xf32>
    %194 = vector.extract_strided_slice %192 {offsets = [0, 1], sizes = [16, 640], strides = [1, 1]} : vector<16x768xf32> to vector<16x640xf32>
    %195 = vector.extract_strided_slice %192 {offsets = [0, 2], sizes = [16, 640], strides = [1, 1]} : vector<16x768xf32> to vector<16x640xf32>
    %196 = vector.extract_strided_slice %192 {offsets = [0, 24], sizes = [16, 640], strides = [1, 1]} : vector<16x768xf32> to vector<16x640xf32>
    %197 = vector.extract_strided_slice %192 {offsets = [0, 25], sizes = [16, 640], strides = [1, 1]} : vector<16x768xf32> to vector<16x640xf32>
    %198 = vector.extract_strided_slice %192 {offsets = [0, 26], sizes = [16, 640], strides = [1, 1]} : vector<16x768xf32> to vector<16x640xf32>
    %199 = vector.extract_strided_slice %192 {offsets = [0, 48], sizes = [16, 640], strides = [1, 1]} : vector<16x768xf32> to vector<16x640xf32>
    %200 = vector.extract_strided_slice %192 {offsets = [0, 49], sizes = [16, 640], strides = [1, 1]} : vector<16x768xf32> to vector<16x640xf32>
    %201 = vector.extract_strided_slice %192 {offsets = [0, 50], sizes = [16, 640], strides = [1, 1]} : vector<16x768xf32> to vector<16x640xf32>
    %202 = tpu.concatenate %193, %194, %195, %196, %197, %198, %199, %200, %201 in 0 : vector<16x640xf32>, vector<16x640xf32>, vector<16x640xf32>, vector<16x640xf32>, vector<16x640xf32>, vector<16x640xf32>, vector<16x640xf32>, vector<16x640xf32>, vector<16x640xf32> -> vector<144x640xf32>
    %203 = arith.truncf %202 : vector<144x640xf32> to vector<144x640xbf16>
    %c0_72 = arith.constant 0 : index
    %c0_73 = arith.constant 0 : index
    %204 = vector.load %arg10[%c0_72, %c0_73] : memref<3x144xbf16, #tpu.memory_space<vmem>>, vector<3x144xbf16>
    %cst_74 = arith.constant dense<0.000000e+00> : vector<3x640xf32>
    %205 = tpu.matmul %204, %203, %cst_74 {dimension_numbers = #tpu.dot_dimension_numbers<[1], [0], [0], [1], [0, 0, 1, 1], [], []>} : vector<3x144xbf16>, vector<144x640xbf16>, vector<3x640xf32> -> vector<3x640xf32>
    %206 = vector.broadcast %1 : vector<1x640xf32> to vector<3x640xf32>
    %207 = arith.mulf %205, %206 : vector<3x640xf32>
    %cst_75 = arith.constant dense<0.000000e+00> : vector<3xf32>
    %208 = vector.multi_reduction <add>, %207, %cst_75 [1] : vector<3x640xf32> to vector<3xf32>
    %209 = vector.shape_cast %208 : vector<3xf32> to vector<3x1xf32>
    %cst_76 = arith.constant 0.00206611562 : f32
    %210 = vector.broadcast %cst_76 : f32 to vector<3x1xf32>
    %211 = arith.mulf %209, %210 : vector<3x1xf32>
    %212 = vector.broadcast %211 : vector<3x1xf32> to vector<3x640xf32>
    %213 = arith.subf %205, %212 : vector<3x640xf32>
    %214 = vector.broadcast %1 : vector<1x640xf32> to vector<3x640xf32>
    %215 = arith.mulf %213, %214 : vector<3x640xf32>
    %216 = arith.mulf %215, %215 : vector<3x640xf32>
    %cst_77 = arith.constant dense<0.000000e+00> : vector<3xf32>
    %217 = vector.multi_reduction <add>, %216, %cst_77 [1] : vector<3x640xf32> to vector<3xf32>
    %218 = vector.shape_cast %217 : vector<3xf32> to vector<3x1xf32>
    %cst_78 = arith.constant 0.00206611562 : f32
    %219 = vector.broadcast %cst_78 : f32 to vector<3x1xf32>
    %220 = arith.mulf %218, %219 : vector<3x1xf32>
    %221 = vector.broadcast %211 : vector<3x1xf32> to vector<3x640xf32>
    %222 = arith.subf %205, %221 : vector<3x640xf32>
    %cst_79 = arith.constant 9.99999974E-6 : f32
    %223 = vector.broadcast %cst_79 : f32 to vector<3x1xf32>
    %224 = arith.addf %220, %223 : vector<3x1xf32>
    %225 = math.rsqrt %224 : vector<3x1xf32>
    %226 = vector.broadcast %225 : vector<3x1xf32> to vector<3x640xf32>
    %227 = arith.mulf %222, %226 : vector<3x640xf32>
    %228 = tpu.iota {dimensions = array<i32: 1>} : vector<3x640xi32>
    %c0_80 = arith.constant 0 : index
    %229 = memref.load %arg0[%c0_80] : memref<3xi32, #tpu.memory_space<smem>>
    %230 = vector.broadcast %229 : i32 to vector<3x640xi32>
    %231 = arith.cmpi eq, %228, %230 : vector<3x640xi32>
    %cst_81 = arith.constant 0.000000e+00 : f32
    %232 = vector.broadcast %cst_81 : f32 to vector<3x640xf32>
    %233 = arith.select %231, %227, %232 : vector<3x640xi1>, vector<3x640xf32>
    %cst_82 = arith.constant dense<0.000000e+00> : vector<3xf32>
    %234 = vector.multi_reduction <add>, %233, %cst_82 [1] : vector<3x640xf32> to vector<3xf32>
    %235 = vector.shape_cast %234 : vector<3xf32> to vector<3x1xf32>
    %c1 = arith.constant 1 : index
    %236 = memref.load %arg0[%c1] : memref<3xi32, #tpu.memory_space<smem>>
    %237 = vector.broadcast %236 : i32 to vector<3x640xi32>
    %238 = arith.cmpi eq, %228, %237 : vector<3x640xi32>
    %cst_83 = arith.constant 0.000000e+00 : f32
    %239 = vector.broadcast %cst_83 : f32 to vector<3x640xf32>
    %240 = arith.select %238, %227, %239 : vector<3x640xi1>, vector<3x640xf32>
    %cst_84 = arith.constant dense<0.000000e+00> : vector<3xf32>
    %241 = vector.multi_reduction <add>, %240, %cst_84 [1] : vector<3x640xf32> to vector<3xf32>
    %242 = vector.shape_cast %241 : vector<3xf32> to vector<3x1xf32>
    %c2 = arith.constant 2 : index
    %243 = memref.load %arg0[%c2] : memref<3xi32, #tpu.memory_space<smem>>
    %244 = vector.broadcast %243 : i32 to vector<3x640xi32>
    %245 = arith.cmpi eq, %228, %244 : vector<3x640xi32>
    %cst_85 = arith.constant 0.000000e+00 : f32
    %246 = vector.broadcast %cst_85 : f32 to vector<3x640xf32>
    %247 = arith.select %245, %227, %246 : vector<3x640xi1>, vector<3x640xf32>
    %cst_86 = arith.constant dense<0.000000e+00> : vector<3xf32>
    %248 = vector.multi_reduction <add>, %247, %cst_86 [1] : vector<3x640xf32> to vector<3xf32>
    %249 = vector.shape_cast %248 : vector<3xf32> to vector<3x1xf32>
    %250 = tpu.concatenate %235, %242, %249 in 1 : vector<3x1xf32>, vector<3x1xf32>, vector<3x1xf32> -> vector<3x3xf32>
    %c0_87 = arith.constant 0 : index
    %c0_88 = arith.constant 0 : index
    %251 = vector.load %arg11[%c0_87, %c0_88] : memref<3x1xf32, #tpu.memory_space<vmem>>, vector<3x1xf32>
    %252 = vector.broadcast %251 : vector<3x1xf32> to vector<3x3xf32>
    %253 = arith.mulf %250, %252 : vector<3x3xf32>
    %c0_89 = arith.constant 0 : index
    %c0_90 = arith.constant 0 : index
    %254 = vector.load %arg12[%c0_89, %c0_90] : memref<3x1xf32, #tpu.memory_space<vmem>>, vector<3x1xf32>
    %255 = vector.broadcast %254 : vector<3x1xf32> to vector<3x3xf32>
    %256 = arith.addf %253, %255 : vector<3x3xf32>
    %c0_91 = arith.constant 0 : index
    %c0_92 = arith.constant 0 : index
    %257 = vector.load %arg15[%c0_91, %c0_92] : memref<3x3xf32, #tpu.memory_space<vmem>>, vector<3x3xf32>
    tpu.vector_store %arg15[%c0_91, %c0_92], %256 {strides = array<i32>} : memref<3x3xf32, #tpu.memory_space<vmem>>, vector<3x3xf32>,
    return
  }
}

</mosaic_0001>

<bundles_post_ra>
// kernel: lstm_cell_forward.1
= control target key start
LH: loop header
LB: loop body
LE: loop exit
PB: predicated region body
PF: predicated region fallthrough
CT: control target
= control target key end

     0   :  { %21 = vsyncpa [#allocation7], 0  ;;  %s6744_s0 = inlined_call_operand.vmem [shape: s32[3], index: 0, kind: input, shape index: {}]   ;;  %s6745_s1 = inlined_call_operand.vmem [shape: f32[1,384], index: 1, kind: input, shape index: {}]   ;;  %s6746_s2 = inlined_call_operand.vmem [shape: f32[1,640], index: 2, kind: input, shape index: {}]   ;;  %s6747_s3 = inlined_call_operand.vmem [shape: f32[8,512], index: 3, kind: input, shape index: {}]   ;;  %s6748_s4 = inlined_call_operand.vmem [shape: f32[16,512], index: 4, kind: input, shape index: {}]   ;;  %s6749_s5 = inlined_call_operand.vmem [shape: f32[16,384], index: 5, kind: input, shape index: {}]   ;;  %s6750_s6 = inlined_call_operand.vmem [shape: bf16[16,72], index: 6, kind: input, shape index: {}]   ;;  %s6751_s7 = inlined_call_operand.vmem [shape: bf16[16,144], index: 7, kind: input, shape index: {}]   ;;  %s6752_s8 = inlined_call_operand.vmem [shape: bf16[64,288], index: 8, kind: input, shape index: {}]   ;;  %s6753_s9 = inlined_call_operand.vmem [shape: bf16[16,144], index: 9, kind: input, shape index: {}]   ;;  %s6754_s10 = inlined_call_operand.vmem [shape: bf16[3,144], index: 10, kind: input, shape index: {}]   ;;  %s6755_s11 = inlined_call_operand.vmem [shape: f32[3,1], index: 11, kind: input, shape index: {}]   ;;  %s6756_s12 = inlined_call_operand.vmem [shape: f32[3,1], index: 12, kind: input, shape index: {}]   ;;  %s6757_s13 = inlined_call_operand.hbm [shape: f32[16,384], index: 13, kind: output, shape index: {0}]   ;;  %s6758_s14 = inlined_call_operand.hbm [shape: f32[16,512], index: 14, kind: output, shape index: {1}]   ;;  %s6759_s15 = inlined_call_operand.vmem [shape: f32[3,3], index: 15, kind: output, shape index: {2}]  }
   0x1   :  { %22 = vsyncpa [#allocation6], 0 }
   0x2   :  { %23 = vsyncpa [#allocation10], 0  ;;  %s30_s20 = sshll.u32 %s6744_s0, 4  ;;  %s31_s20 = int_to_ptr.vmem [resolvable:$true] %s30_s20 }
   0x3   :  { %s4787_s21 = scalar_lea.vmem %s31_s20, 16  ;;  %p4792_p1 = scmp.lt.s32.totalorder %s31_s20, %s31_s20 }
   0x4   :  { %p4788_p0 = scmp.ne.s32.totalorder %s31_s20, %s4787_s21  ;;  %p4793_p2 = scmp.lt.s32.totalorder %s4787_s21, %s4787_s21 }
   0x6   :  { %p4794_p3 = por %p4793_p2, %p4792_p1 }
   0x8   :  { %p4795_p4 = pnand %p4794_p3, %p4788_p0 }
   0xa   :  { %4798 = shalt.err (!%p4795_p4)
}
   0xb   :  { %s4849_s22 = smov [#allocation5]  }
   0xc   :  { %33 = dma.vmem_to_smem %s31_s20, 16, %s4849_s22, [#allocation7]  }
   0xd   :  { %4843 = dma.done.wait [#allocation7], 16  }
   0xe   :  { %4844 = vsyncadd [#allocation7], 4294967280 }
   0xf   :  { %61 = sfence }
  0x10   :  { %v4955_v0 = vld [vmem:[%s6747_s3 + $0x8] sm:$0xff]  ;;  %v4960_v1 = vld [vmem:[%s6747_s3 + $0x10] sm:$0xff]  ;;  %v4965_v2 = vld [vmem:[%s6747_s3] sm:$0xff]  ;;  %s4850_s30 = smov 126   ;;  %s4851_s16 = smov 127   ;;  %v4852_v6 = vmov 0.0  }
  0x11   :  { %v3690_v3 = vpack.i.bf16 %v4960_v1, %v4955_v0  ;;  %v68_v4 = vld [vmem:[%s6747_s3 + $0x18] sm:$0xff]  ;;  %3618 = vmatprep.subr.bf16.mxu1 %v4852_v6  ;;  %395 = vst [vmem:[#allocation2] sm:$0xff] %v4852_v6  ;;  %398 = vst [vmem:[#allocation2 + $0x18] sm:$0xff] %v4852_v6  ;;  %s4853_s3 = smov 104   ;;  %s4854_s17 = smov 102   ;;  %v6764_v7 = vmov 0   ;;  %v3750_v8 = vpack.i.bf16 %v4955_v0, %v4965_v2 }
  0x12   :  { %v3685_v5 = vpack.i.bf16 %v68_v4, %v4965_v2  ;;  %399 = vst [vmem:[#allocation2 + $0x20] sm:$0xff] %v4852_v6  ;;  %402 = vst [vmem:[#allocation2 + $0x38] sm:$0xff] %v4852_v6  ;;  %s4855_s18 = smov 103   ;;  %s4856_s19 = smov 79   ;;  %261 = vmatprep.mubr.bf16.mxu0 %v6764_v7  ;;  %4635 = vset.pattern.permute.xlu1 %v6764_v7  ;;  %vm4859_vm0 = vmmov 0   ;;  %vm81_vm1 = vcmask 1039360  }
  0x13   :  { %3691 = vrot.lane.b32.xlu1 %v3690_v3, %s4850_s30  ;;  %3681 = vrot.lane.b32.xlu0 %v3690_v3, %s4851_s16  ;;  %885 = vst [vmem:[#allocation3 + $0x40] sm:$0xff] %v4852_v6  ;;  %888 = vst [vmem:[#allocation3 + $0x58] sm:$0xff] %v4852_v6  ;;  %s4857_s20 = smov 80   ;;  %s4860_s21 = smov 78   ;;  %vm96_vm2 = vcmask 1031168   ;;  %vm111_vm3 = vcmask 850944  }
  0x14   :  { %889 = vst [vmem:[#allocation3 + $0x60] sm:$0xff] %v4852_v6  ;;  %892 = vst [vmem:[#allocation3 + $0x78] sm:$0xff] %v4852_v6  ;;  %4636 = vset.pattern.permute.xlu0 %v6764_v7  ;;  %3628 = vmatprep.mubr.msk.bf16.mxu1 %vm4859_vm0, %v4852_v6  ;;  %vm126_vm4 = vcmask 842752   ;;  %vm141_vm5 = vcmask 834560   ;;  %vm156_vm6 = vcmask 654336   ;;  %vm171_vm7 = vcmask 646144  }
  0x15   :  { %2214 = vst [vmem:[#allocation9] sm:$0xff] %v4852_v6  ;;  %2217 = vst [vmem:[#allocation9 + $0x18] sm:$0xff] %v4852_v6  ;;  %vm186_vm8 = vcmask 637952   ;;  %vm219_vm9 = vcmask 1043456   ;;  %vm215_vm10 = vcmask 588800   ;;  %vm434_vm11 = vcmask 1047752  }
  0x16   :  { %2218 = vst [vmem:[#allocation9 + $0x20] sm:$0xff] %v4852_v6  ;;  %2221 = vst [vmem:[#allocation9 + $0x38] sm:$0xff] %v4852_v6  ;;  %vm421_vm12 = vcmask 203776   ;;  %vm721_vm13 = vcmask 130048   ;;  %vm1541_vm14 = vcmask 261120   ;;  %vm2721_vm15 = vcmask 818176  }
  0x17   :  { %2691 = vst [vmem:[#allocation4] sm:$0xff] %v4852_v6  ;;  %2694 = vst [vmem:[#allocation4 + $0x18] sm:$0xff] %v4852_v6  ;;  %3696 = vrot.lane.b32.xlu1 %v3690_v3, %s4853_s3  ;;  %3686 = vrot.lane.b32.xlu0 %v3685_v5, %s4851_s16  ;;  %vm2734_vm0 = vcmask 1048352  }
  0x18   :  { %2695 = vst [vmem:[#allocation4 + $0x20] sm:$0xff] %v4852_v6  ;;  %2697 = vst [vmem:[#allocation4 + $0x30] sm:$0xff] %v4852_v6 }
  0x19   :  { %2700 = vst [vmem:[#allocation4 + $0x48] sm:$0xff] %v4852_v6 }
  0x1b   :  { %3706 = vrot.lane.b32.xlu1 %v3685_v5, %s4853_s3  ;;  %3701 = vrot.lane.b32.xlu0 %v3685_v5, %s4850_s30 }
  0x1f   :  { %3716 = vrot.lane.b32.xlu1 %v3690_v3, %s4854_s17  ;;  %3711 = vrot.lane.b32.xlu0 %v3690_v3, %s4855_s18 }
  0x23   :  { %3726 = vrot.lane.b32.xlu1 %v3685_v5, %s4854_s17  ;;  %3721 = vrot.lane.b32.xlu0 %v3685_v5, %s4855_s18 }
  0x27   :  { %3736 = vrot.lane.b32.xlu1 %v3690_v3, %s4856_s19  ;;  %3731 = vrot.lane.b32.xlu0 %v3690_v3, %s4857_s20 }
  0x2b   :  { %3746 = vrot.lane.b32.xlu1 %v3685_v5, %s4856_s19  ;;  %3741 = vrot.lane.b32.xlu0 %v3685_v5, %s4857_s20 }
  0x2f   :  { %3751 = vrot.lane.b32.xlu0 %v3750_v8, %s4860_s21  ;;  %182 = vrot.lane.b32.xlu1 %v4960_v1, %s4860_s21 }
  0x33   :  { %184 = vrot.lane.b32.xlu0 %v68_v4, %s4860_s21 }
  0x85   :  { %v3692_v9 = vpop.permute.xlu1 %3691  ;;  %v3682_v10 = vpop.permute.xlu0 %3681 }
  0x86   :  { %v3684_v11 = vunpack.i.h.bf16 %v3682_v10  ;;  %v3683_v12 = vunpack.i.l.bf16 %v3682_v10  ;;  %v3694_v13 = vunpack.i.h.bf16 %v3692_v9  ;;  %v3693_v14 = vunpack.i.l.bf16 %v3692_v9 }
  0x88   :  { %v83_v15 = vsel %vm81_vm1, %v3683_v12, %v3684_v11  ;;  %v98_v25 = vsel %vm96_vm2, %v3693_v14, %v3694_v13 }
  0x89   :  { %v3697_v16 = vpop.permute.xlu1 %3696  ;;  %v3687_v17 = vpop.permute.xlu0 %3686  ;;  %v194_v18 = vpack.c.bf16 %v83_v15, %v4955_v0 }
  0x8a   :  { %v3699_v19 = vunpack.i.h.bf16 %v3697_v16  ;;  %v3698_v20 = vunpack.i.l.bf16 %v3697_v16  ;;  %v3689_v21 = vunpack.i.h.bf16 %v3687_v17  ;;  %v3688_v22 = vunpack.i.l.bf16 %v3687_v17 }
  0x8b   :  { %229 = vmatprep.subr.bf16.mxu0 %v194_v18 }
  0x8c   :  { %v82_v23 = vsel %vm81_vm1, %v3688_v22, %v3683_v12  ;;  %v84_v24 = vsel %vm81_vm1, %v3684_v11, %v3689_v21  ;;  %v113_v26 = vsel %vm111_vm3, %v3698_v20, %v3699_v19 }
  0x8d   :  { %v3707_v27 = vpop.permute.xlu1 %3706  ;;  %v3702_v28 = vpop.permute.xlu0 %3701  ;;  %v193_v29 = vpack.c.bf16 %v82_v23, %v4965_v2  ;;  %v195_v30 = vpack.c.bf16 %v84_v24, %v4960_v1  ;;  %v197_v31 = vpack.c.bf16 %v113_v26, %v98_v25 }
  0x8e   :  { %v3709_v32 = vunpack.i.h.bf16 %v3707_v27  ;;  %v3708_v33 = vunpack.i.l.bf16 %v3707_v27  ;;  %v3704_v34 = vunpack.i.h.bf16 %v3702_v28  ;;  %v3703_v35 = vunpack.i.l.bf16 %v3702_v28 }
  0x8f   :  { %230 = vmatpush1.bf16.msra.mxu0 %v193_v29  ;;  %3619 = vmatpush3.bf16.msra.mxu1 %v195_v30 }
  0x90   :  { %231 = vmatprep.subr.bf16.mxu0 %v197_v31  ;;  %3620 = vmatprep.subr.bf16.mxu1 %v4852_v6  ;;  %v97_v36 = vsel %vm96_vm2, %v3703_v35, %v3693_v14  ;;  %v112_v37 = vsel %vm111_vm3, %v3708_v33, %v3698_v20  ;;  %v99_v38 = vsel %vm96_vm2, %v3694_v13, %v3704_v34  ;;  %v4637_v34 = vld [vmem:[%s6750_s6] sm:$0xff]  }
  0x91   :  { %v3717_v39 = vpop.permute.xlu1 %3716  ;;  %v3712_v40 = vpop.permute.xlu0 %3711  ;;  %v196_v41 = vpack.c.bf16 %v112_v37, %v97_v36  ;;  %v114_v42 = vsel %vm111_vm3, %v3699_v19, %v3709_v32 }
  0x92   :  { %v3719_v43 = vunpack.i.h.bf16 %v3717_v39  ;;  %v3718_v44 = vunpack.i.l.bf16 %v3717_v39  ;;  %v3714_v45 = vunpack.i.h.bf16 %v3712_v40  ;;  %v3713_v46 = vunpack.i.l.bf16 %v3712_v40 }
  0x93   :  { %232 = vmatpush1.bf16.msra.mxu0 %v196_v41  ;;  %v198_v47 = vpack.c.bf16 %v114_v42, %v99_v38  ;;  %v63_v38 = vld [vmem:[%s6745_s1] sm:$0x7]  ;;  %s4861_s1 = smov 25  }
  0x94   :  { %v128_v48 = vsel %vm126_vm4, %v3713_v46, %v3714_v45  ;;  %v143_v49 = vsel %vm141_vm5, %v3718_v44, %v3719_v43 }
  0x95   :  { %3621 = vmatpush3.bf16.msra.mxu1 %v198_v47  ;;  %v3727_v50 = vpop.permute.xlu1 %3726  ;;  %v3722_v51 = vpop.permute.xlu0 %3721  ;;  %v200_v52 = vpack.c.bf16 %v143_v49, %v128_v48 }
  0x96   :  { %v3729_v53 = vunpack.i.h.bf16 %v3727_v50  ;;  %v3728_v54 = vunpack.i.l.bf16 %v3727_v50  ;;  %v3724_v55 = vunpack.i.h.bf16 %v3722_v51  ;;  %v3723_v56 = vunpack.i.l.bf16 %v3722_v51  ;;  %3622 = vmatprep.subr.bf16.mxu1 %v4852_v6 }
  0x97   :  { %233 = vmatprep.subr.bf16.mxu0 %v200_v52 }
  0x98   :  { %v127_v57 = vsel %vm126_vm4, %v3723_v56, %v3713_v46  ;;  %v142_v58 = vsel %vm141_vm5, %v3728_v54, %v3718_v44  ;;  %v129_v59 = vsel %vm126_vm4, %v3714_v45, %v3724_v55  ;;  %v144_v60 = vsel %vm141_vm5, %v3719_v43, %v3729_v53 }
  0x99   :  { %v3737_v61 = vpop.permute.xlu1 %3736  ;;  %v3732_v62 = vpop.permute.xlu0 %3731  ;;  %v199_v63 = vpack.c.bf16 %v142_v58, %v127_v57  ;;  %v201_v0 = vpack.c.bf16 %v144_v60, %v129_v59 }
  0x9a   :  { %v3739_v1 = vunpack.i.h.bf16 %v3737_v61  ;;  %v3738_v2 = vunpack.i.l.bf16 %v3737_v61  ;;  %v3734_v3 = vunpack.i.h.bf16 %v3732_v62  ;;  %v3733_v4 = vunpack.i.l.bf16 %v3732_v62 }
  0x9b   :  { %234 = vmatpush1.bf16.msra.mxu0 %v199_v63  ;;  %3623 = vmatpush3.bf16.msra.mxu1 %v201_v0 }
  0x9c   :  { %v158_v5 = vsel %vm156_vm6, %v3733_v4, %v3734_v3  ;;  %v173_v8 = vsel %vm171_vm7, %v3738_v2, %v3739_v1  ;;  %3624 = vmatprep.subr.bf16.mxu1 %v4852_v6 }
  0x9d   :  { %v3747_v9 = vpop.permute.xlu1 %3746  ;;  %v3742_v10 = vpop.permute.xlu0 %3741  ;;  %v203_v11 = vpack.c.bf16 %v173_v8, %v158_v5 }
  0x9e   :  { %v3749_v12 = vunpack.i.h.bf16 %v3747_v9  ;;  %v3748_v13 = vunpack.i.l.bf16 %v3747_v9  ;;  %v3744_v14 = vunpack.i.h.bf16 %v3742_v10  ;;  %v3743_v15 = vunpack.i.l.bf16 %v3742_v10 }
  0x9f   :  { %235 = vmatprep.subr.bf16.mxu0 %v203_v11 }
  0xa0   :  { %v157_v16 = vsel %vm156_vm6, %v3743_v15, %v3733_v4  ;;  %v172_v17 = vsel %vm171_vm7, %v3748_v13, %v3738_v2  ;;  %v159_v18 = vsel %vm156_vm6, %v3734_v3, %v3744_v14  ;;  %v174_v19 = vsel %vm171_vm7, %v3739_v1, %v3749_v12 }
  0xa1   :  { %v3752_v20 = vpop.permute.xlu0 %3751  ;;  %v183_v21 = vpop.permute.xlu1 %182  ;;  %v202_v22 = vpack.c.bf16 %v172_v17, %v157_v16  ;;  %v204_v23 = vpack.c.bf16 %v174_v19, %v159_v18 }
  0xa2   :  { %v3754_v24 = vunpack.i.h.bf16 %v3752_v20  ;;  %v3753_v25 = vunpack.i.l.bf16 %v3752_v20 }
  0xa3   :  { %236 = vmatpush1.bf16.msra.mxu0 %v202_v22  ;;  %3625 = vmatpush3.bf16.msra.mxu1 %v204_v23 }
  0xa4   :  { %v188_v26 = vsel %vm186_vm8, %v3754_v24, %v183_v21  ;;  %v187_v27 = vsel %vm186_vm8, %v3753_v25, %v3754_v24  ;;  %3626 = vmatprep.subr.bf16.mxu1 %v4852_v6  ;;  %v6760_v6 = vlaneseq }
  0xa5   :  { %v206_v28 = vpack.c.bf16 %v188_v26, %v188_v26  ;;  %v185_v29 = vpop.permute.xlu0 %184  ;;  %v205_v30 = vpack.c.bf16 %v187_v27, %v187_v27 }
  0xa6   :  { %v189_v31 = vsel %vm186_vm8, %v183_v21, %v185_v29  ;;  %v5051_v36 = vshrl.u32 %v6760_v6, 7 }
  0xa7   :  { %v207_v32 = vpack.c.bf16 %v189_v31, %v189_v31  ;;  %3511 = vmatprep.subr.msk.bf16.mxu0 %vm219_vm9, %v206_v28  ;;  %v221_v33 = vsel %vm219_vm9, %v205_v30, 0 }
  0xa8   :  { %238 = vmatpush1.bf16.msra.mxu0 %v221_v33  ;;  %v6763_v37 = vsub.s32 0, %v5051_v36  ;;  %v6762_v39 = vsub.s32 1, %v5051_v36  ;;  %v6761_v40 = vsub.s32 2, %v5051_v36 }
  0xa9   :  { %v227_v35 = vsel %vm219_vm9, %v207_v32, 0 }
  0xaa   :  { %3627 = vmatpush3.bf16.msra.mxu1 %v227_v35  ;;  %v5061_v41 = vrot.slane %v63_v38, %v6763_v37  ;;  %v5065_v42 = vrot.slane %v63_v38, %v6762_v39  ;;  %v5069_v43 = vrot.slane %v63_v38, %v6761_v40 }
  0xab   :  { %3512 = vmatmul.mubr.msk.bf16.vlgmr.msra.gmra.mrb[0].mxu0 %vm215_vm10, %v4637_v34  ;;  %768 = vmatprep.subr.bf16.mxu1 %v6764_v7 }
  0xad   :  { %3629 = vmatmul.mubr.msk.bf16.vlgmr.msra.gmra.mrb[0].mxu1 %vm215_vm10, %v4637_v34 }
 0x17e   :  { %v263_v44 = vpop.f32.mrb[0].mxu0 }
 0x17f   :  { %v329_v45 = vmul.f32 %v5061_v41, %v263_v44  ;;  %v265_v46 = vpop.f32.mrb[1].mxu0 }
 0x180   :  { %v330_v47 = vmul.f32 %v5065_v42, %v265_v46  ;;  %v267_v48 = vpop.f32.mrb[2].mxu0  ;;  %v306_v49 = vpop.f32.mrb[0].mxu1 }
 0x181   :  { %v332_v50 = vmul.f32 %v5061_v41, %v267_v48  ;;  %v331_v51 = vmul.f32 %v5069_v43, %v306_v49  ;;  %v269_v52 = vpop.f32.mrb[3].mxu0  ;;  %v3630_v53 = vpop.f32.mrb[1].mxu1 }
 0x182   :  { %v333_v54 = vmul.f32 %v5065_v42, %v269_v52  ;;  %v309_v55 = vpop.f32.mrb[2].mxu1  ;;  %v335_v56 = vadd.f32 %v330_v47, %v329_v45 }
 0x183   :  { %v334_v57 = vmul.f32 %v5069_v43, %v309_v55  ;;  %v3631_v58 = vpop.f32.mrb[3].mxu1 }
 0x184   :  { %v336_v59 = vadd.f32 %v335_v56, %v331_v51  ;;  %v339_v60 = vadd.f32 %v333_v54, %v332_v50 }
 0x186   :  { %337 = vadd.xlane.f32.xlu1 %v336_v59  ;;  %v340_v61 = vadd.f32 %v339_v60, %v334_v57 }
 0x188   :  { %341 = vadd.xlane.f32.xlu0 %v340_v61 }
 0x213   :  { %v338_v62 = vpop.xlane.xlu1 %337 }
 0x214   :  { %v343_v63 = vmul.f32 0.00390625, %v338_v62 }
 0x215   :  { %v342_v0 = vpop.xlane.xlu0 %341 }
 0x216   :  { %v345_v1 = vsub.f32 %v263_v44, %v343_v63  ;;  %v346_v2 = vsub.f32 %v265_v46, %v343_v63  ;;  %v344_v3 = vmul.f32 0.00390625, %v342_v0  ;;  %v347_v4 = vsub.f32 %v306_v49, %v343_v63 }
 0x218   :  { %v348_v5 = vsub.f32 %v267_v48, %v344_v3  ;;  %v349_v8 = vsub.f32 %v269_v52, %v344_v3  ;;  %v351_v9 = vmul.f32 %v345_v1, %v5061_v41  ;;  %v352_v10 = vmul.f32 %v346_v2, %v5065_v42 }
 0x219   :  { %v353_v11 = vmul.f32 %v347_v4, %v5069_v43  ;;  %v350_v12 = vsub.f32 %v309_v55, %v344_v3 }
 0x21a   :  { %v357_v13 = vmul.f32 %v351_v9, %v351_v9  ;;  %v358_v14 = vmul.f32 %v352_v10, %v352_v10  ;;  %v354_v15 = vmul.f32 %v348_v5, %v5061_v41  ;;  %v355_v16 = vmul.f32 %v349_v8, %v5065_v42 }
 0x21b   :  { %v356_v17 = vmul.f32 %v350_v12, %v5069_v43  ;;  %v359_v18 = vmul.f32 %v353_v11, %v353_v11 }
 0x21c   :  { %v363_v19 = vadd.f32 %v358_v14, %v357_v13  ;;  %v360_v20 = vmul.f32 %v354_v15, %v354_v15  ;;  %v361_v21 = vmul.f32 %v355_v16, %v355_v16 }
 0x21d   :  { %v362_v23 = vmul.f32 %v356_v17, %v356_v17 }
 0x21e   :  { %v364_v22 = vadd.f32 %v363_v19, %v359_v18  ;;  %v367_v24 = vadd.f32 %v361_v21, %v360_v20  ;;  %v4638_v18 = vld [vmem:[%s6751_s7 + $0x4] ss:$8 sps:$4 sm:$0xff]  }
 0x21f   :  { %3516 = vmatprep.mubr.msk.bf16.mxu0 %vm721_vm13, %v4638_v18  ;;  %3517 = vmatprep.mubr.msk.bf16.mxu1 %vm721_vm13, %v4638_v18 }
 0x220   :  { %365 = vadd.xlane.f32.xlu0 %v364_v22  ;;  %v368_v25 = vadd.f32 %v367_v24, %v362_v23 }
 0x222   :  { %369 = vadd.xlane.f32.xlu1 %v368_v25 }
 0x2ad   :  { %v366_v26 = vpop.xlane.xlu0 %365 }
 0x2ae   :  { %v371_v27 = vmul.f32 0.00390625, %v366_v26 }
 0x2af   :  { %v370_v28 = vpop.xlane.xlu1 %369 }
 0x2b0   :  { %v373_v29 = vadd.f32 1e-05, %v371_v27  ;;  %v372_v30 = vmul.f32 0.00390625, %v370_v28 }
 0x2b2   :  { %4660 = vrsqrt.f32 %v373_v29  ;;  %v374_v31 = vadd.f32 1e-05, %v372_v30 }
 0x2b4   :  { %4662 = vrsqrt.f32 %v374_v31 }
 0x2bc   :  { %v4661_v32 = vpop.eup %4660 }
 0x2bd   :  { %v378_v33 = vmul.f32 %v4661_v32, %v346_v2  ;;  %v377_v34 = vmul.f32 %v4661_v32, %v345_v1  ;;  %v379_v35 = vmul.f32 %v4661_v32, %v347_v4 }
 0x2be   :  { %v4663_v38 = vpop.eup %4662 }
 0x2bf   :  { %v384_v44 = vmax.f32 %v378_v33, 0.0  ;;  %v383_v45 = vmax.f32 %v377_v34, 0.0  ;;  %v380_v46 = vmul.f32 %v4663_v38, %v348_v5  ;;  %v385_v47 = vmax.f32 %v379_v35, 0.0 }
 0x2c0   :  { %v381_v48 = vmul.f32 %v4663_v38, %v349_v8  ;;  %v382_v52 = vmul.f32 %v4663_v38, %v350_v12 }
 0x2c1   :  { %v390_v49 = vmul.f32 %v384_v44, %v5065_v42  ;;  %v389_v50 = vmul.f32 %v383_v45, %v5061_v41  ;;  %v386_v51 = vmax.f32 %v380_v46, 0.0  ;;  %v391_v53 = vmul.f32 %v385_v47, %v5069_v43 }
 0x2c2   :  { %v387_v55 = vmax.f32 %v381_v48, 0.0  ;;  %v388_v56 = vmax.f32 %v382_v52, 0.0 }
 0x2c3   :  { %411 = vrot.lane.b32.xlu1 %v390_v49, %s4861_s1  ;;  %409 = vrot.lane.b32.xlu0 %v389_v50, %s4861_s1  ;;  %v392_v54 = vmul.f32 %v386_v51, %v5061_v41 }
 0x2c4   :  { %v393_v57 = vmul.f32 %v387_v55, %v5065_v42  ;;  %v394_v58 = vmul.f32 %v388_v56, %v5069_v43 }
 0x2c7   :  { %413 = vrot.lane.b32.xlu1 %v391_v53, %s4861_s1  ;;  %415 = vrot.lane.b32.xlu0 %v392_v54, %s4861_s1 }
 0x2cb   :  { %417 = vrot.lane.b32.xlu1 %v393_v57, %s4861_s1  ;;  %419 = vrot.lane.b32.xlu0 %v394_v58, %s4861_s1 }
 0x335   :  { %v410_v59 = vpop.permute.xlu0 %409  ;;  %v412_v60 = vpop.permute.xlu1 %411 }
 0x336   :  { %435 = vst.msk [vmem:[#allocation2] sm:$0xff] %vm434_vm11, %v410_v59  ;;  %v422_v61 = vsel %vm421_vm12, %v410_v59, %v412_v60 }
 0x339   :  { %v416_v62 = vpop.permute.xlu0 %415  ;;  %v414_v63 = vpop.permute.xlu1 %413 }
 0x33a   :  { %439 = vst.msk [vmem:[#allocation2 + $0x20] sm:$0xff] %vm434_vm11, %v416_v62  ;;  %v423_v0 = vsel %vm421_vm12, %v412_v60, %v414_v63 }
 0x33b   :  { %438 = vst.msk [vmem:[#allocation2 + $0x18] sm:$0xff] %vm421_vm12, %v414_v63  ;;  %v3755_v1 = vpack.i.bf16 %v423_v0, %v422_v61 }
 0x33d   :  { %v420_v2 = vpop.permute.xlu0 %419  ;;  %v418_v3 = vpop.permute.xlu1 %417  ;;  %3756 = vrot.lane.b32.xlu1 %v3755_v1, %s4851_s16  ;;  %v443_v10 = vld [vmem:[#allocation2] sm:$0xff] }
 0x33e   :  { %442 = vst.msk [vmem:[#allocation2 + $0x38] sm:$0xff] %vm421_vm12, %v420_v2  ;;  %v424_v4 = vsel %vm421_vm12, %v416_v62, %v418_v3  ;;  %v425_v5 = vsel %vm421_vm12, %v418_v3, %v420_v2 }
 0x33f   :  { %v684_v8 = vpack.c.bf16 %v424_v4, %v422_v61  ;;  %v685_v9 = vpack.c.bf16 %v425_v5, %v423_v0  ;;  %v3870_v17 = vpack.i.bf16 %v425_v5, %v424_v4 }
 0x341   :  { %3761 = vrot.lane.b32.xlu1 %v3755_v1, %s4850_s30  ;;  %725 = vmatprep.subr.bf16.mxu0 %v684_v8  ;;  %v447_v11 = vld [vmem:[#allocation2 + $0x20] sm:$0xff] }
 0x342   :  { %769 = vmatpush1.bf16.msra.mxu1 %v685_v9  ;;  %v683_v12 = vpack.c.bf16 %v447_v11, %v443_v10  ;;  %v446_v13 = vld [vmem:[#allocation2 + $0x18] sm:$0xff]  ;;  %v3795_v16 = vpack.i.bf16 %v447_v11, %v443_v10 }
 0x343   :  { %770 = vmatprep.subr.bf16.mxu1 %v6764_v7 }
 0x344   :  { %726 = vmatpush1.bf16.msra.mxu0 %v683_v12 }
 0x345   :  { %v450_v14 = vld [vmem:[#allocation2 + $0x38] sm:$0xff]  ;;  %3766 = vrot.lane.b32.xlu1 %v3755_v1, %s4853_s3 }
 0x346   :  { %v3800_v15 = vpack.i.bf16 %v450_v14, %v446_v13 }
 0x348   :  { %3801 = vrot.lane.b32.xlu0 %v3800_v15, %s4851_s16 }
 0x349   :  { %3771 = vrot.lane.b32.xlu1 %v3755_v1, %s4855_s18 }
 0x34c   :  { %3811 = vrot.lane.b32.xlu0 %v3800_v15, %s4850_s30 }
 0x34d   :  { %3776 = vrot.lane.b32.xlu1 %v3755_v1, %s4854_s17 }
 0x350   :  { %3821 = vrot.lane.b32.xlu0 %v3800_v15, %s4853_s3 }
 0x351   :  { %3781 = vrot.lane.b32.xlu1 %v3755_v1, %s4857_s20 }
 0x354   :  { %3831 = vrot.lane.b32.xlu0 %v3800_v15, %s4855_s18 }
 0x355   :  { %3786 = vrot.lane.b32.xlu1 %v3755_v1, %s4856_s19 }
 0x358   :  { %3841 = vrot.lane.b32.xlu0 %v3800_v15, %s4854_s17 }
 0x359   :  { %3791 = vrot.lane.b32.xlu1 %v3755_v1, %s4860_s21 }
 0x35c   :  { %3851 = vrot.lane.b32.xlu0 %v3800_v15, %s4857_s20 }
 0x35d   :  { %3796 = vrot.lane.b32.xlu1 %v3795_v16, %s4851_s16 }
 0x360   :  { %3861 = vrot.lane.b32.xlu0 %v3800_v15, %s4856_s19 }
 0x361   :  { %3806 = vrot.lane.b32.xlu1 %v3795_v16, %s4850_s30 }
 0x364   :  { %3871 = vrot.lane.b32.xlu0 %v3870_v17, %s4851_s16 }
 0x365   :  { %3816 = vrot.lane.b32.xlu1 %v3795_v16, %s4853_s3 }
 0x368   :  { %3876 = vrot.lane.b32.xlu0 %v3870_v17, %s4850_s30 }
 0x369   :  { %3826 = vrot.lane.b32.xlu1 %v3795_v16, %s4855_s18 }
 0x36c   :  { %3881 = vrot.lane.b32.xlu0 %v3870_v17, %s4853_s3 }
 0x36d   :  { %3836 = vrot.lane.b32.xlu1 %v3795_v16, %s4854_s17 }
 0x370   :  { %3886 = vrot.lane.b32.xlu0 %v3870_v17, %s4855_s18 }
 0x371   :  { %3846 = vrot.lane.b32.xlu1 %v3795_v16, %s4857_s20 }
 0x374   :  { %3891 = vrot.lane.b32.xlu0 %v3870_v17, %s4854_s17 }
 0x375   :  { %3856 = vrot.lane.b32.xlu1 %v3795_v16, %s4856_s19 }
 0x378   :  { %3896 = vrot.lane.b32.xlu0 %v3870_v17, %s4857_s20 }
 0x379   :  { %3866 = vrot.lane.b32.xlu1 %v3795_v16, %s4860_s21 }
 0x37c   :  { %3901 = vrot.lane.b32.xlu0 %v3870_v17, %s4856_s19 }
 0x380   :  { %3906 = vrot.lane.b32.xlu0 %v3870_v17, %s4860_s21 }
 0x384   :  { %3911 = vrot.lane.b32.xlu0 %v3800_v15, %s4860_s21 }
 0x3af   :  { %v3757_v19 = vpop.permute.xlu1 %3756 }
 0x3b0   :  { %v3759_v34 = vunpack.i.h.bf16 %v3757_v19  ;;  %v3758_v35 = vunpack.i.l.bf16 %v3757_v19 }
 0x3b2   :  { %v476_v55 = vsel %vm81_vm1, %v3758_v35, %v3759_v34 }
 0x3b3   :  { %v3762_v20 = vpop.permute.xlu1 %3761 }
 0x3b4   :  { %v3764_v38 = vunpack.i.h.bf16 %v3762_v20  ;;  %v3763_v44 = vunpack.i.l.bf16 %v3762_v20 }
 0x3b6   :  { %v504_v56 = vsel %vm96_vm2, %v3763_v44, %v3764_v38 }
 0x3b7   :  { %v5141_v21 = vpop.permute.xlu1 %3766 }
 0x3b8   :  { %v3769_v45 = vunpack.i.h.bf16 %v5141_v21  ;;  %v3768_v46 = vunpack.i.l.bf16 %v5141_v21 }
 0x3ba   :  { %v3802_v22 = vpop.permute.xlu0 %3801  ;;  %v5170_v57 = vsel %vm111_vm3, %v3768_v46, %v3769_v45 }
 0x3bb   :  { %v5143_v23 = vpop.permute.xlu1 %3771  ;;  %v3803_v48 = vunpack.i.l.bf16 %v3802_v22  ;;  %v3804_v53 = vunpack.i.h.bf16 %v3802_v22 }
 0x3bc   :  { %v3774_v50 = vunpack.i.h.bf16 %v5143_v23  ;;  %v3773_v51 = vunpack.i.l.bf16 %v5143_v23 }
 0x3bd   :  { %v477_v58 = vsel %vm81_vm1, %v3759_v34, %v3803_v48 }
 0x3be   :  { %v3812_v24 = vpop.permute.xlu0 %3811  ;;  %v5179_v2 = vsel %vm126_vm4, %v3773_v51, %v3774_v50 }
 0x3bf   :  { %v5145_v25 = vpop.permute.xlu1 %3776  ;;  %v3813_v63 = vunpack.i.l.bf16 %v3812_v24  ;;  %v3814_v14 = vunpack.i.h.bf16 %v3812_v24 }
 0x3c0   :  { %v3779_v0 = vunpack.i.h.bf16 %v5145_v25  ;;  %v3778_v9 = vunpack.i.l.bf16 %v5145_v25 }
 0x3c1   :  { %v505_v19 = vsel %vm96_vm2, %v3764_v38, %v3813_v63 }
 0x3c2   :  { %v5147_v26 = vpop.permute.xlu0 %3821 }
 0x3c3   :  { %v5149_v27 = vpop.permute.xlu1 %3781  ;;  %v3823_v20 = vunpack.i.l.bf16 %v5147_v26 }
 0x3c4   :  { %v3784_v63 = vunpack.i.h.bf16 %v5149_v27 }
 0x3c6   :  { %v5151_v28 = vpop.permute.xlu0 %3831 }
 0x3c7   :  { %v5153_v29 = vpop.permute.xlu1 %3786 }
 0x3ca   :  { %v5155_v30 = vpop.permute.xlu0 %3841 }
 0x3cb   :  { %v5157_v31 = vpop.permute.xlu1 %3791 }
 0x3ce   :  { %v5159_v32 = vpop.permute.xlu0 %3851 }
 0x3cf   :  { %v3797_v33 = vpop.permute.xlu1 %3796 }
 0x3d0   :  { %v3798_v52 = vunpack.i.l.bf16 %v3797_v33  ;;  %v3799_v61 = vunpack.i.h.bf16 %v3797_v33 }
 0x3d2   :  { %v5163_v47 = vpop.permute.xlu0 %3861  ;;  %v475_v5 = vsel %vm81_vm1, %v3798_v52, %v3758_v35  ;;  %v3824_v52 = vunpack.i.h.bf16 %v5147_v26 }
 0x3d3   :  { %v3807_v49 = vpop.permute.xlu1 %3806 }
 0x3d4   :  { %v3808_v1 = vunpack.i.l.bf16 %v3807_v49  ;;  %v3809_v17 = vunpack.i.h.bf16 %v3807_v49 }
 0x3d6   :  { %v3872_v54 = vpop.permute.xlu0 %3871  ;;  %v503_v21 = vsel %vm96_vm2, %v3808_v1, %v3763_v44  ;;  %v5198_v44 = vsel %vm141_vm5, %v3778_v9, %v3779_v0 }
 0x3d7   :  { %v3874_v59 = vunpack.i.h.bf16 %v3872_v54  ;;  %v3873_v60 = vunpack.i.l.bf16 %v3872_v54  ;;  %v3817_v62 = vpop.permute.xlu1 %3816 }
 0x3d8   :  { %v3818_v22 = vunpack.i.l.bf16 %v3817_v62 }
 0x3d9   :  { %v480_v3 = vsel %vm81_vm1, %v3874_v59, %v3804_v53  ;;  %v478_v4 = vsel %vm81_vm1, %v3799_v61, %v3873_v60  ;;  %v479_v8 = vsel %vm81_vm1, %v3873_v60, %v3874_v59  ;;  %v533_v59 = vsel %vm111_vm3, %v3769_v45, %v3823_v20 }
 0x3da   :  { %v3877_v10 = vpop.permute.xlu0 %3876  ;;  %v687_v11 = vpack.c.bf16 %v479_v8, %v476_v55  ;;  %v688_v12 = vpack.c.bf16 %v480_v3, %v477_v58  ;;  %v686_v13 = vpack.c.bf16 %v478_v4, %v475_v5  ;;  %v3819_v55 = vunpack.i.h.bf16 %v3817_v62 }
 0x3db   :  { %v3879_v15 = vunpack.i.h.bf16 %v3877_v10  ;;  %v3878_v16 = vunpack.i.l.bf16 %v3877_v10  ;;  %v3827_v18 = vpop.permute.xlu1 %3826  ;;  %v3833_v60 = vunpack.i.l.bf16 %v5151_v28  ;;  %v3783_v45 = vunpack.i.l.bf16 %v5149_v27 }
 0x3dc   :  { %727 = vmatprep.subr.bf16.mxu0 %v687_v11  ;;  %771 = vmatpush1.bf16.msra.mxu1 %v688_v12  ;;  %v3828_v61 = vunpack.i.l.bf16 %v3827_v18  ;;  %v3834_v8 = vunpack.i.h.bf16 %v5151_v28  ;;  %v3829_v12 = vunpack.i.h.bf16 %v3827_v18 }
 0x3dd   :  { %v508_v33 = vsel %vm96_vm2, %v3879_v15, %v3814_v14  ;;  %v506_v34 = vsel %vm96_vm2, %v3809_v17, %v3878_v16  ;;  %728 = vmatpush1.bf16.msra.mxu0 %v686_v13  ;;  %772 = vmatprep.subr.bf16.mxu1 %v6764_v7  ;;  %v507_v24 = vsel %vm96_vm2, %v3878_v16, %v3879_v15  ;;  %v3843_v15 = vunpack.i.l.bf16 %v5155_v30 }
 0x3de   :  { %v3882_v35 = vpop.permute.xlu0 %3881  ;;  %v690_v48 = vpack.c.bf16 %v507_v24, %v504_v56  ;;  %v691_v49 = vpack.c.bf16 %v508_v33, %v505_v19  ;;  %v689_v38 = vpack.c.bf16 %v506_v34, %v503_v21  ;;  %v531_v56 = vsel %vm111_vm3, %v3818_v22, %v3768_v46 }
 0x3df   :  { %v3884_v53 = vunpack.i.h.bf16 %v3882_v35  ;;  %v3883_v54 = vunpack.i.l.bf16 %v3882_v35  ;;  %v3837_v58 = vpop.permute.xlu1 %3836  ;;  %v561_v14 = vsel %vm126_vm4, %v3774_v50, %v3833_v60  ;;  %v559_v27 = vsel %vm126_vm4, %v3828_v61, %v3773_v51 }
 0x3e0   :  { %729 = vmatprep.subr.bf16.mxu0 %v690_v48  ;;  %773 = vmatpush1.bf16.msra.mxu1 %v691_v49  ;;  %v616_v23 = vsel %vm156_vm6, %v3783_v45, %v3784_v63  ;;  %v3844_v51 = vunpack.i.h.bf16 %v5155_v30  ;;  %v3839_v33 = vunpack.i.h.bf16 %v3837_v58  ;;  %v589_v34 = vsel %vm141_vm5, %v3779_v0, %v3843_v15 }
 0x3e1   :  { %v536_v1 = vsel %vm111_vm3, %v3884_v53, %v3824_v52  ;;  %v534_v3 = vsel %vm111_vm3, %v3819_v55, %v3883_v54  ;;  %730 = vmatpush1.bf16.msra.mxu0 %v689_v38  ;;  %774 = vmatprep.subr.bf16.mxu1 %v6764_v7  ;;  %v535_v26 = vsel %vm111_vm3, %v3883_v54, %v3884_v53  ;;  %v3853_v24 = vunpack.i.l.bf16 %v5159_v32 }
 0x3e2   :  { %v3887_v62 = vpop.permute.xlu0 %3886  ;;  %v693_v4 = vpack.c.bf16 %v535_v26, %v5170_v57  ;;  %v694_v46 = vpack.c.bf16 %v536_v1, %v533_v59  ;;  %v692_v5 = vpack.c.bf16 %v534_v3, %v531_v56  ;;  %v3838_v57 = vunpack.i.l.bf16 %v3837_v58 }
 0x3e3   :  { %v3889_v10 = vunpack.i.h.bf16 %v3887_v62  ;;  %v3888_v11 = vunpack.i.l.bf16 %v3887_v62  ;;  %v3847_v13 = vpop.permute.xlu1 %3846  ;;  %v3789_v49 = vunpack.i.h.bf16 %v5153_v29  ;;  %v3788_v52 = vunpack.i.l.bf16 %v5153_v29 }
 0x3e4   :  { %731 = vmatprep.subr.bf16.mxu0 %v693_v4  ;;  %775 = vmatpush1.bf16.msra.mxu1 %v694_v46  ;;  %v587_v35 = vsel %vm141_vm5, %v3838_v57, %v3778_v9  ;;  %v3854_v55 = vunpack.i.h.bf16 %v5159_v32  ;;  %v3849_v60 = vunpack.i.h.bf16 %v3847_v13  ;;  %v617_v56 = vsel %vm156_vm6, %v3784_v63, %v3853_v24 }
 0x3e5   :  { %v564_v16 = vsel %vm126_vm4, %v3889_v10, %v3834_v8  ;;  %v562_v28 = vsel %vm126_vm4, %v3829_v12, %v3888_v11  ;;  %732 = vmatpush1.bf16.msra.mxu0 %v692_v5  ;;  %776 = vmatprep.subr.bf16.mxu1 %v6764_v7  ;;  %v563_v17 = vsel %vm126_vm4, %v3888_v11, %v3889_v10  ;;  %v3863_v61 = vunpack.i.l.bf16 %v5163_v47 }
 0x3e6   :  { %v3892_v18 = vpop.permute.xlu0 %3891  ;;  %v696_v50 = vpack.c.bf16 %v563_v17, %v5179_v2  ;;  %v697_v19 = vpack.c.bf16 %v564_v16, %v561_v14  ;;  %v695_v20 = vpack.c.bf16 %v562_v28, %v559_v27  ;;  %v3848_v2 = vunpack.i.l.bf16 %v3847_v13 }
 0x3e7   :  { %v3894_v21 = vunpack.i.h.bf16 %v3892_v18  ;;  %v3893_v22 = vunpack.i.l.bf16 %v3892_v18  ;;  %v3857_v48 = vpop.permute.xlu1 %3856  ;;  %v644_v5 = vsel %vm171_vm7, %v3788_v52, %v3789_v49  ;;  %v645_v12 = vsel %vm171_vm7, %v3789_v49, %v3863_v61 }
 0x3e8   :  { %733 = vmatprep.subr.bf16.mxu0 %v696_v50  ;;  %777 = vmatpush1.bf16.msra.mxu1 %v697_v19  ;;  %v615_v1 = vsel %vm156_vm6, %v3848_v2, %v3783_v45  ;;  %v3858_v3 = vunpack.i.l.bf16 %v3857_v48  ;;  %v3864_v45 = vunpack.i.h.bf16 %v5163_v47  ;;  %v3859_v11 = vunpack.i.h.bf16 %v3857_v48  ;;  %v4640_v48 = vld [vmem:[%s6751_s7] ss:$8 sps:$4 sm:$0xff]  }
 0x3e9   :  { %v592_v30 = vsel %vm141_vm5, %v3894_v21, %v3844_v51  ;;  %v590_v38 = vsel %vm141_vm5, %v3839_v33, %v3893_v22  ;;  %734 = vmatpush1.bf16.msra.mxu0 %v695_v20  ;;  %778 = vmatprep.subr.bf16.mxu1 %v6764_v7  ;;  %v591_v0 = vsel %vm141_vm5, %v3893_v22, %v3894_v21  ;;  %v3794_v13 = vunpack.i.h.bf16 %v5157_v31 }
 0x3ea   :  { %v3897_v25 = vpop.permute.xlu0 %3896  ;;  %v699_v9 = vpack.c.bf16 %v591_v0, %v5198_v44  ;;  %v700_v53 = vpack.c.bf16 %v592_v30, %v589_v34  ;;  %v698_v54 = vpack.c.bf16 %v590_v38, %v587_v35  ;;  %v3793_v14 = vunpack.i.l.bf16 %v5157_v31 }
 0x3eb   :  { %v3899_v58 = vunpack.i.h.bf16 %v3897_v25  ;;  %v3898_v59 = vunpack.i.l.bf16 %v3897_v25  ;;  %v3867_v46 = vpop.permute.xlu1 %3866  ;;  %v643_v15 = vsel %vm171_vm7, %v3858_v3, %v3788_v52 }
 0x3ec   :  { %735 = vmatprep.subr.bf16.mxu0 %v699_v9  ;;  %779 = vmatpush1.bf16.msra.mxu1 %v700_v53  ;;  %v3868_v16 = vunpack.i.l.bf16 %v3867_v46  ;;  %v3869_v20 = vunpack.i.h.bf16 %v3867_v46 }
 0x3ed   :  { %v620_v29 = vsel %vm156_vm6, %v3899_v58, %v3854_v55  ;;  %v618_v44 = vsel %vm156_vm6, %v3849_v60, %v3898_v59  ;;  %736 = vmatpush1.bf16.msra.mxu0 %v698_v54  ;;  %780 = vmatprep.subr.bf16.mxu1 %v6764_v7  ;;  %v619_v32 = vsel %vm156_vm6, %v3898_v59, %v3899_v58 }
 0x3ee   :  { %v3902_v26 = vpop.permute.xlu0 %3901  ;;  %v702_v62 = vpack.c.bf16 %v619_v32, %v616_v23  ;;  %v703_v4 = vpack.c.bf16 %v620_v29, %v617_v56  ;;  %v701_v63 = vpack.c.bf16 %v618_v44, %v615_v1  ;;  %v672_v23 = vsel %vm186_vm8, %v3793_v14, %v3794_v13 }
 0x3ef   :  { %v3904_v8 = vunpack.i.h.bf16 %v3902_v26  ;;  %v3903_v10 = vunpack.i.l.bf16 %v3902_v26  ;;  %v671_v21 = vsel %vm186_vm8, %v3868_v16, %v3793_v14 }
 0x3f0   :  { %737 = vmatprep.subr.bf16.mxu0 %v702_v62  ;;  %781 = vmatpush1.bf16.msra.mxu1 %v703_v4 }
 0x3f1   :  { %v648_v27 = vsel %vm171_vm7, %v3904_v8, %v3864_v45  ;;  %v646_v57 = vsel %vm171_vm7, %v3859_v11, %v3903_v10  ;;  %738 = vmatpush1.bf16.msra.mxu0 %v701_v63  ;;  %782 = vmatprep.subr.bf16.mxu1 %v6764_v7  ;;  %v647_v47 = vsel %vm171_vm7, %v3903_v10, %v3904_v8 }
 0x3f2   :  { %v3907_v28 = vpop.permute.xlu0 %3906  ;;  %v705_v17 = vpack.c.bf16 %v647_v47, %v644_v5  ;;  %v706_v18 = vpack.c.bf16 %v648_v27, %v645_v12  ;;  %v704_v50 = vpack.c.bf16 %v646_v57, %v643_v15 }
 0x3f3   :  { %v3909_v19 = vunpack.i.h.bf16 %v3907_v28  ;;  %v3908_v31 = vunpack.i.l.bf16 %v3907_v28 }
 0x3f4   :  { %739 = vmatprep.subr.bf16.mxu0 %v705_v17  ;;  %783 = vmatpush1.bf16.msra.mxu1 %v706_v18 }
 0x3f5   :  { %v674_v51 = vsel %vm186_vm8, %v3869_v20, %v3908_v31  ;;  %740 = vmatpush1.bf16.msra.mxu0 %v704_v50  ;;  %v675_v22 = vsel %vm186_vm8, %v3908_v31, %v3909_v19  ;;  %784 = vmatprep.subr.bf16.mxu1 %v6764_v7 }
 0x3f6   :  { %v3912_v33 = vpop.permute.xlu0 %3911  ;;  %v708_v34 = vpack.c.bf16 %v675_v22, %v672_v23  ;;  %v707_v24 = vpack.c.bf16 %v674_v51, %v671_v21  ;;  %v870_v21 = vld [vmem:[%s6748_s4 + $0x8] sm:$0xff]  ;;  %v5286_v22 = vld [vmem:[%s6748_s4 + $0x10] sm:$0xff] }
 0x3f7   :  { %v3914_v35 = vunpack.i.h.bf16 %v3912_v33  ;;  %v3913_v2 = vunpack.i.l.bf16 %v3912_v33  ;;  %v869_v33 = vld [vmem:[%s6748_s4] sm:$0xff] }
 0x3f8   :  { %741 = vmatprep.subr.bf16.mxu0 %v708_v34  ;;  %v873_v34 = vld [vmem:[%s6748_s4 + $0x20] sm:$0xff] }
 0x3f9   :  { %v673_v49 = vsel %vm186_vm8, %v3794_v13, %v3913_v2  ;;  %v676_v30 = vsel %vm186_vm8, %v3909_v19, %v3914_v35  ;;  %742 = vmatpush1.bf16.msra.mxu0 %v707_v24  ;;  %v874_v24 = vld [vmem:[%s6748_s4 + $0x28] sm:$0xff]  ;;  %v5300_v35 = vld [vmem:[%s6748_s4 + $0x30] sm:$0xff] }
 0x3fa   :  { %v709_v38 = vpack.c.bf16 %v676_v30, %v673_v49  ;;  %v872_v49 = vld [vmem:[%s6748_s4 + $0x18] sm:$0xff] }
 0x3fb   :  { %v876_v30 = vld [vmem:[%s6748_s4 + $0x38] sm:$0xff] }
 0x3fc   :  { %758 = vmatmul.mubr.bf16.vlgmr.msra.gmra.mrb[4].mxu0 %v4640_v48  ;;  %785 = vmatpush1.bf16.msra.mxu1 %v709_v38 }
 0x3ff   :  { %801 = vmatmul.mubr.bf16.vlgmr.msra.gmra.mrb[4].mxu1 %v4640_v48 }
 0x4cf   :  { %v759_v0 = vpop.f32.mrb[4].mxu0 }
 0x4d0   :  { %v809_v52 = vmul.f32 %v759_v0, %v5061_v41  ;;  %v761_v25 = vpop.f32.mrb[5].mxu0 }
 0x4d1   :  { %v810_v9 = vmul.f32 %v761_v25, %v5065_v42  ;;  %v763_v53 = vpop.f32.mrb[6].mxu0 }
 0x4d2   :  { %v812_v54 = vmul.f32 %v763_v53, %v5061_v41  ;;  %v765_v55 = vpop.f32.mrb[7].mxu0  ;;  %v802_v58 = vpop.f32.mrb[4].mxu1 }
 0x4d3   :  { %v813_v59 = vmul.f32 %v765_v55, %v5065_v42  ;;  %v811_v60 = vmul.f32 %v802_v58, %v5069_v43  ;;  %v804_v56 = vpop.f32.mrb[5].mxu1  ;;  %v815_v61 = vadd.f32 %v810_v9, %v809_v52 }
 0x4d4   :  { %v805_v1 = vpop.f32.mrb[6].mxu1 }
 0x4d5   :  { %v814_v3 = vmul.f32 %v805_v1, %v5069_v43  ;;  %v807_v29 = vpop.f32.mrb[7].mxu1  ;;  %v816_v44 = vadd.f32 %v815_v61, %v811_v60  ;;  %v819_v32 = vadd.f32 %v813_v59, %v812_v54  ;;  %v1411_v60 = vpack.c.bf16 %v873_v34, %v869_v33 }
 0x4d7   :  { %817 = vadd.xlane.f32.xlu1 %v816_v44  ;;  %v820_v26 = vadd.f32 %v819_v32, %v814_v3 }
 0x4d9   :  { %821 = vadd.xlane.f32.xlu0 %v820_v26 }
 0x564   :  { %v818_v62 = vpop.xlane.xlu1 %817 }
 0x565   :  { %v823_v4 = vmul.f32 0.00390625, %v818_v62 }
 0x566   :  { %v822_v63 = vpop.xlane.xlu0 %821 }
 0x567   :  { %v825_v46 = vsub.f32 %v759_v0, %v823_v4  ;;  %v826_v5 = vsub.f32 %v761_v25, %v823_v4  ;;  %v824_v45 = vmul.f32 0.00390625, %v822_v63  ;;  %v827_v8 = vsub.f32 %v802_v58, %v823_v4 }
 0x568   :  { %v5308_v0 = vpack.i.bf16 %v876_v30, %v872_v49  ;;  %v1412_v58 = vpack.c.bf16 %v874_v24, %v870_v21  ;;  %v5323_v63 = vpack.i.bf16 %v5286_v22, %v870_v21 }
 0x569   :  { %v828_v10 = vsub.f32 %v763_v53, %v824_v45  ;;  %v829_v11 = vsub.f32 %v765_v55, %v824_v45  ;;  %v831_v12 = vmul.f32 %v825_v46, %v5061_v41  ;;  %v832_v13 = vmul.f32 %v826_v5, %v5065_v42 }
 0x56a   :  { %v833_v14 = vmul.f32 %v827_v8, %v5069_v43  ;;  %v830_v15 = vsub.f32 %v805_v1, %v824_v45  ;;  %1554 = vmatprep.subr.bf16.mxu0 %v1412_v58 }
 0x56b   :  { %v837_v27 = vmul.f32 %v831_v12, %v831_v12  ;;  %v838_v57 = vmul.f32 %v832_v13, %v832_v13  ;;  %v834_v16 = vmul.f32 %v828_v10, %v5061_v41  ;;  %v835_v47 = vmul.f32 %v829_v11, %v5065_v42  ;;  %1555 = vmatpush1.bf16.msra.mxu0 %v1411_v60 }
 0x56c   :  { %v836_v28 = vmul.f32 %v830_v15, %v5069_v43  ;;  %v839_v17 = vmul.f32 %v833_v14, %v833_v14 }
 0x56d   :  { %v843_v18 = vadd.f32 %v838_v57, %v837_v27  ;;  %v840_v50 = vmul.f32 %v834_v16, %v834_v16  ;;  %v841_v19 = vmul.f32 %v835_v47, %v835_v47 }
 0x56e   :  { %v842_v20 = vmul.f32 %v836_v28, %v836_v28 }
 0x56f   :  { %v844_v31 = vadd.f32 %v843_v18, %v839_v17  ;;  %v847_v23 = vadd.f32 %v841_v19, %v840_v50 }
 0x571   :  { %845 = vadd.xlane.f32.xlu0 %v844_v31  ;;  %v848_v51 = vadd.f32 %v847_v23, %v842_v20 }
 0x573   :  { %849 = vadd.xlane.f32.xlu1 %v848_v51 }
 0x5fe   :  { %v846_v2 = vpop.xlane.xlu0 %845 }
 0x5ff   :  { %v851_v48 = vmul.f32 0.00390625, %v846_v2 }
 0x600   :  { %v850_v38 = vpop.xlane.xlu1 %849 }
 0x601   :  { %v853_v52 = vadd.f32 1e-05, %v851_v48  ;;  %v852_v25 = vmul.f32 0.00390625, %v850_v38 }
 0x603   :  { %4664 = vrsqrt.f32 %v853_v52  ;;  %v854_v9 = vadd.f32 1e-05, %v852_v25 }
 0x605   :  { %4666 = vrsqrt.f32 %v854_v9 }
 0x60d   :  { %v4665_v53 = vpop.eup %4664 }
 0x60e   :  { %v858_v54 = vmul.f32 %v4665_v53, %v826_v5  ;;  %v857_v55 = vmul.f32 %v4665_v53, %v825_v46  ;;  %v859_v1 = vmul.f32 %v4665_v53, %v827_v8  ;;  %v5326_v46 = vpack.i.bf16 %v5300_v35, %v874_v24 }
 0x60f   :  { %v4667_v59 = vpop.eup %4666  ;;  %v5330_v5 = vpack.i.bf16 %v873_v34, %v869_v33 }
 0x610   :  { %v864_v56 = vmul.f32 %v858_v54, %v5065_v42  ;;  %v863_v61 = vmul.f32 %v857_v55, %v5061_v41  ;;  %v860_v3 = vmul.f32 %v4667_v59, %v828_v10  ;;  %v865_v29 = vmul.f32 %v859_v1, %v5069_v43 }
 0x611   :  { %v861_v32 = vmul.f32 %v4667_v59, %v829_v11  ;;  %v862_v26 = vmul.f32 %v4667_v59, %v830_v15 }
 0x612   :  { %901 = vrot.lane.b32.xlu1 %v864_v56, %s4861_s1  ;;  %899 = vrot.lane.b32.xlu0 %v863_v61, %s4861_s1  ;;  %v866_v44 = vmul.f32 %v860_v3, %v5061_v41 }
 0x613   :  { %v867_v62 = vmul.f32 %v861_v32, %v5065_v42  ;;  %v868_v4 = vmul.f32 %v862_v26, %v5069_v43 }
 0x616   :  { %903 = vrot.lane.b32.xlu1 %v865_v29, %s4861_s1  ;;  %905 = vrot.lane.b32.xlu0 %v866_v44, %s4861_s1 }
 0x61a   :  { %907 = vrot.lane.b32.xlu1 %v867_v62, %s4861_s1  ;;  %909 = vrot.lane.b32.xlu0 %v868_v4, %s4861_s1 }
 0x61e   :  { %3916 = vrot.lane.b32.xlu1 %v5323_v63, %s4851_s16  ;;  %3921 = vrot.lane.b32.xlu0 %v5326_v46, %s4851_s16 }
 0x622   :  { %3926 = vrot.lane.b32.xlu1 %v5330_v5, %s4851_s16  ;;  %3936 = vrot.lane.b32.xlu0 %v5326_v46, %s4850_s30 }
 0x626   :  { %3931 = vrot.lane.b32.xlu1 %v5323_v63, %s4850_s30  ;;  %3951 = vrot.lane.b32.xlu0 %v5326_v46, %s4853_s3 }
 0x62a   :  { %3941 = vrot.lane.b32.xlu1 %v5330_v5, %s4850_s30  ;;  %3966 = vrot.lane.b32.xlu0 %v5326_v46, %s4855_s18 }
 0x62e   :  { %3946 = vrot.lane.b32.xlu1 %v5323_v63, %s4853_s3  ;;  %3981 = vrot.lane.b32.xlu0 %v5326_v46, %s4854_s17 }
 0x632   :  { %3956 = vrot.lane.b32.xlu1 %v5330_v5, %s4853_s3  ;;  %3991 = vrot.lane.b32.xlu0 %v5330_v5, %s4854_s17 }
 0x636   :  { %3961 = vrot.lane.b32.xlu1 %v5323_v63, %s4855_s18 }
 0x63a   :  { %3971 = vrot.lane.b32.xlu1 %v5330_v5, %s4855_s18 }
 0x63e   :  { %3976 = vrot.lane.b32.xlu1 %v5323_v63, %s4854_s17 }
 0x642   :  { %3986 = vrot.lane.b32.xlu1 %v5308_v0, %s4855_s18 }
 0x684   :  { %v902_v45 = vpop.permute.xlu1 %901  ;;  %v900_v8 = vpop.permute.xlu0 %899 }
 0x685   :  { %v911_v10 = vsel %vm421_vm12, %v900_v8, %v902_v45  ;;  %923 = vst.msk [vmem:[#allocation3 + $0x40] sm:$0xff] %vm434_vm11, %v900_v8 }
 0x688   :  { %v904_v11 = vpop.permute.xlu1 %903  ;;  %v906_v12 = vpop.permute.xlu0 %905 }
 0x689   :  { %v5365_v13 = vsel %vm421_vm12, %v902_v45, %v904_v11  ;;  %926 = vst.msk [vmem:[#allocation3 + $0x58] sm:$0xff] %vm421_vm12, %v904_v11 }
 0x68a   :  { %927 = vst.msk [vmem:[#allocation3 + $0x60] sm:$0xff] %vm434_vm11, %v906_v12  ;;  %v5370_v14 = vpack.i.bf16 %v5365_v13, %v911_v10 }
 0x68c   :  { %v908_v15 = vpop.permute.xlu1 %907  ;;  %v910_v27 = vpop.permute.xlu0 %909  ;;  %4016 = vrot.lane.b32.xlu1 %v5370_v14, %s4854_s17  ;;  %3996 = vrot.lane.b32.xlu0 %v5370_v14, %s4851_s16  ;;  %v939_v17 = vld [vmem:[#allocation3 + $0x40] sm:$0xff] }
 0x68d   :  { %v913_v57 = vsel %vm421_vm12, %v906_v12, %v908_v15  ;;  %v5378_v16 = vsel %vm421_vm12, %v908_v15, %v910_v27  ;;  %930 = vst.msk [vmem:[#allocation3 + $0x78] sm:$0xff] %vm421_vm12, %v910_v27 }
 0x68e   :  { %v1415_v47 = vpack.c.bf16 %v913_v57, %v911_v10  ;;  %v1416_v28 = vpack.c.bf16 %v5378_v16, %v5365_v13  ;;  %v5416_v58 = vpack.i.bf16 %v5378_v16, %v913_v57 }
 0x690   :  { %4001 = vrot.lane.b32.xlu0 %v5370_v14, %s4850_s30  ;;  %1556 = vmatprep.subr.bf16.mxu0 %v1415_v47  ;;  %v5385_v50 = vpop.permute.xlu1 %3916  ;;  %v5387_v31 = vpop.permute.xlu0 %3921  ;;  %v942_v33 = vld [vmem:[#allocation3 + $0x58] sm:$0xff] }
 0x691   :  { %v943_v18 = vld [vmem:[#allocation3 + $0x60] sm:$0xff]  ;;  %v3919_v20 = vunpack.i.h.bf16 %v5385_v50  ;;  %v3918_v23 = vunpack.i.l.bf16 %v5385_v50  ;;  %v3924_v51 = vunpack.i.h.bf16 %v5387_v31  ;;  %v3923_v21 = vunpack.i.l.bf16 %v5387_v31 }
 0x692   :  { %v1414_v19 = vpack.c.bf16 %v943_v18, %v939_v17  ;;  %v5395_v2 = vpack.i.bf16 %v943_v18, %v939_v17  ;;  %v1413_v17 = vpack.c.bf16 %v5300_v35, %v5286_v22  ;;  %v4643_v22 = vld [vmem:[%s6752_s8 + $0x4] ss:$12 sps:$4 sm:$0xff]  }
 0x693   :  { %v996_v38 = vsel %vm81_vm1, %v3918_v23, %v3919_v20  ;;  %v999_v52 = vsel %vm81_vm1, %v3923_v21, %v3924_v51  ;;  %1586 = vmatprep.mubr.bf16.mxu0 %v4643_v22  ;;  %1732 = vmatprep.mubr.bf16.mxu1 %v4643_v22 }
 0x694   :  { %1557 = vmatpush1.bf16.msra.mxu0 %v1414_v19  ;;  %v946_v34 = vld [vmem:[#allocation3 + $0x78] sm:$0xff]  ;;  %4006 = vrot.lane.b32.xlu0 %v5370_v14, %s4853_s3  ;;  %v3927_v24 = vpop.permute.xlu1 %3926  ;;  %v1418_v54 = vpack.c.bf16 %v999_v52, %v996_v38  ;;  %v5413_v55 = vpop.permute.xlu0 %3936 }
 0x695   :  { %v5397_v48 = vpack.i.bf16 %v946_v34, %v942_v33  ;;  %v3929_v49 = vunpack.i.h.bf16 %v3927_v24  ;;  %v3928_v30 = vunpack.i.l.bf16 %v3927_v24  ;;  %v3938_v33 = vunpack.i.l.bf16 %v5413_v55 }
 0x696   :  { %1558 = vmatprep.subr.bf16.mxu0 %v1418_v54 }
 0x697   :  { %4041 = vrot.lane.b32.xlu1 %v5397_v48, %s4855_s18  ;;  %v995_v25 = vsel %vm81_vm1, %v3928_v30, %v3918_v23  ;;  %v998_v53 = vsel %vm81_vm1, %v3929_v49, %v3923_v21  ;;  %v3939_v21 = vunpack.i.h.bf16 %v5413_v55 }
 0x698   :  { %4011 = vrot.lane.b32.xlu0 %v5370_v14, %s4855_s18  ;;  %v5410_v9 = vpop.permute.xlu1 %3931  ;;  %v1417_v59 = vpack.c.bf16 %v998_v53, %v995_v25  ;;  %v5424_v56 = vpop.permute.xlu0 %3951 }
 0x699   :  { %v3934_v34 = vunpack.i.h.bf16 %v5410_v9  ;;  %v3933_v24 = vunpack.i.l.bf16 %v5410_v9  ;;  %v3953_v39 = vunpack.i.l.bf16 %v5424_v56 }
 0x69a   :  { %1559 = vmatpush1.bf16.msra.mxu0 %v1417_v59 }
 0x69b   :  { %4051 = vrot.lane.b32.xlu1 %v5416_v58, %s4851_s16 }
 0x69c   :  { %4021 = vrot.lane.b32.xlu0 %v5395_v2, %s4851_s16  ;;  %v5422_v60 = vpop.permute.xlu1 %3941  ;;  %v5438_v3 = vpop.permute.xlu0 %3966 }
 0x69d   :  { %v3969_v29 = vunpack.i.h.bf16 %v5438_v3  ;;  %v3968_v44 = vunpack.i.l.bf16 %v5438_v3  ;;  %v3944_v30 = vunpack.i.h.bf16 %v5422_v60  ;;  %v3943_v38 = vunpack.i.l.bf16 %v5422_v60 }
 0x69e   :  { %v1055_v60 = vsel %vm96_vm2, %v3938_v33, %v3939_v21 }
 0x69f   :  { %4056 = vrot.lane.b32.xlu1 %v5323_v63, %s4857_s20  ;;  %v5453_v4 = vsel %vm126_vm4, %v3968_v44, %v3969_v29 }
 0x6a0   :  { %4026 = vrot.lane.b32.xlu0 %v5395_v2, %s4850_s30  ;;  %v5430_v61 = vpop.permute.xlu1 %3946  ;;  %v5541_v35 = vpop.permute.xlu0 %3981 }
 0x6a1   :  { %v6767_v6 = vunpack.i.h.bf16 %v5430_v61  ;;  %v3948_v40 = vunpack.i.l.bf16 %v5430_v61 }
 0x6a3   :  { %4066 = vrot.lane.b32.xlu1 %v5416_v58, %s4850_s30 }
 0x6a4   :  { %4031 = vrot.lane.b32.xlu0 %v5395_v2, %s4853_s3  ;;  %v5436_v1 = vpop.permute.xlu1 %3956 }
 0x6a7   :  { %4071 = vrot.lane.b32.xlu1 %v5308_v0, %s4854_s17 }
 0x6a8   :  { %4036 = vrot.lane.b32.xlu0 %v5395_v2, %s4855_s18  ;;  %v5446_v32 = vpop.permute.xlu1 %3961 }
 0x6a9   :  { %v3964_v26 = vunpack.i.h.bf16 %v5446_v32  ;;  %v3963_v62 = vunpack.i.l.bf16 %v5446_v32 }
 0x6ab   :  { %4081 = vrot.lane.b32.xlu1 %v5416_v58, %s4853_s3  ;;  %v5460_v45 = vsel %vm126_vm4, %v3963_v62, %v3964_v26 }
 0x6ac   :  { %4046 = vrot.lane.b32.xlu0 %v5395_v2, %s4854_s17  ;;  %v5464_v8 = vpop.permute.xlu1 %3971  ;;  %v1436_v10 = vpack.c.bf16 %v5453_v4, %v5460_v45 }
 0x6af   :  { %4086 = vrot.lane.b32.xlu1 %v5308_v0, %s4851_s16 }
 0x6b0   :  { %4061 = vrot.lane.b32.xlu0 %v5326_v46, %s4857_s20  ;;  %v5472_v11 = vpop.permute.xlu1 %3976 }
 0x6b3   :  { %4101 = vrot.lane.b32.xlu1 %v5416_v58, %s4855_s18 }
 0x6b4   :  { %4076 = vrot.lane.b32.xlu0 %v5330_v5, %s4857_s20  ;;  %v3987_v12 = vpop.permute.xlu1 %3986 }
 0x6b5   :  { %v3989_v15 = vunpack.i.h.bf16 %v3987_v12  ;;  %v3988_v27 = vunpack.i.l.bf16 %v3987_v12 }
 0x6b7   :  { %4106 = vrot.lane.b32.xlu1 %v5395_v2, %s4857_s20  ;;  %v1165_v57 = vsel %vm126_vm4, %v3964_v26, %v3988_v27  ;;  %v1168_v47 = vsel %vm126_vm4, %v3969_v29, %v3989_v15  ;;  %v1052_v26 = vsel %vm96_vm2, %v3933_v24, %v3934_v34 }
 0x6b8   :  { %4091 = vrot.lane.b32.xlu0 %v5370_v14, %s4857_s20  ;;  %v1437_v18 = vpack.c.bf16 %v1168_v47, %v1165_v57  ;;  %v1051_v47 = vsel %vm96_vm2, %v3943_v38, %v3933_v24  ;;  %v3958_v38 = vunpack.i.l.bf16 %v5436_v1 }
 0x6ba   :  { %3572 = vmatprep.subr.bf16.mxu1 %v1437_v18  ;;  %v6766_v18 = vunpack.i.h.bf16 %v5424_v56  ;;  %v1107_v37 = vsel %vm111_vm3, %v3958_v38, %v3948_v40 }
 0x6bb   :  { %4116 = vrot.lane.b32.xlu1 %v5323_v63, %s4856_s19  ;;  %3573 = vmatpush3.bf16.msra.mxu1 %v1413_v17  ;;  %v1054_v17 = vsel %vm96_vm2, %v3944_v30, %v3938_v33  ;;  %v3959_v33 = vunpack.i.h.bf16 %v5436_v1 }
 0x6bc   :  { %4096 = vrot.lane.b32.xlu0 %v5397_v48, %s4854_s17  ;;  %v1423_v30 = vpack.c.bf16 %v1054_v17, %v1051_v47 }
 0x6bd   :  { %v1110_v7 = vsel %vm111_vm3, %v3959_v33, %v3953_v39 }
 0x6bf   :  { %4131 = vrot.lane.b32.xlu1 %v5308_v0, %s4857_s20 }
 0x6c0   :  { %4111 = vrot.lane.b32.xlu0 %v5397_v48, %s4851_s16 }
 0x6c3   :  { %4141 = vrot.lane.b32.xlu1 %v5416_v58, %s4857_s20 }
 0x6c4   :  { %4121 = vrot.lane.b32.xlu0 %v5416_v58, %s4854_s17 }
 0x6c7   :  { %4146 = vrot.lane.b32.xlu1 %v5308_v0, %s4850_s30 }
 0x6c8   :  { %4126 = vrot.lane.b32.xlu0 %v5326_v46, %s4856_s19 }
 0x6cb   :  { %4161 = vrot.lane.b32.xlu1 %v5416_v58, %s4856_s19 }
 0x6cc   :  { %4136 = vrot.lane.b32.xlu0 %v5330_v5, %s4856_s19 }
 0x6cf   :  { %4166 = vrot.lane.b32.xlu1 %v5395_v2, %s4856_s19 }
 0x6d0   :  { %4151 = vrot.lane.b32.xlu0 %v5370_v14, %s4856_s19 }
 0x6d3   :  { %4176 = vrot.lane.b32.xlu1 %v5308_v0, %s4856_s19 }
 0x6d4   :  { %4156 = vrot.lane.b32.xlu0 %v5397_v48, %s4857_s20 }
 0x6d7   :  { %4186 = vrot.lane.b32.xlu1 %v5397_v48, %s4856_s19 }
 0x6d8   :  { %4171 = vrot.lane.b32.xlu0 %v5397_v48, %s4850_s30 }
 0x6db   :  { %4196 = vrot.lane.b32.xlu1 %v5323_v63, %s4860_s21  ;;  %v5543_v63 = vpop.permute.xlu0 %3991 }
 0x6dc   :  { %4181 = vrot.lane.b32.xlu0 %v5308_v0, %s4853_s3  ;;  %v3993_v32 = vunpack.i.l.bf16 %v5543_v63 }
 0x6df   :  { %4206 = vrot.lane.b32.xlu1 %v5330_v5, %s4860_s21 }
 0x6e0   :  { %4191 = vrot.lane.b32.xlu0 %v5397_v48, %s4853_s3 }
 0x6e3   :  { %4216 = vrot.lane.b32.xlu1 %v5416_v58, %s4860_s21 }
 0x6e4   :  { %4201 = vrot.lane.b32.xlu0 %v5326_v46, %s4860_s21 }
 0x6e7   :  { %4226 = vrot.lane.b32.xlu1 %v5308_v0, %s4860_s21 }
 0x6e8   :  { %4211 = vrot.lane.b32.xlu0 %v5370_v14, %s4860_s21 }
 0x6ec   :  { %4221 = vrot.lane.b32.xlu0 %v5395_v2, %s4860_s21 }
 0x6f0   :  { %4231 = vrot.lane.b32.xlu0 %v5397_v48, %s4860_s21 }
 0x6fe   :  { %v5545_v5 = vpop.permute.xlu0 %3996  ;;  %v5549_v46 = vpop.permute.xlu1 %4016 }
 0x6ff   :  { %v3999_v2 = vunpack.i.h.bf16 %v5545_v5  ;;  %v3998_v48 = vunpack.i.l.bf16 %v5545_v5 }
 0x701   :  { %v1002_v59 = vsel %vm81_vm1, %v3998_v48, %v3999_v2 }
 0x702   :  { %v5547_v19 = vpop.permute.xlu0 %4001 }
 0x706   :  { %v5551_v0 = vpop.permute.xlu0 %4006 }
 0x709   :  { %v5553_v23 = vpop.permute.xlu1 %4041 }
 0x70a   :  { %v5555_v14 = vpop.permute.xlu0 %4011 }
 0x70d   :  { %v5563_v49 = vpop.permute.xlu1 %4051 }
 0x70e   :  { %v4054_v52 = vunpack.i.h.bf16 %v5563_v49  ;;  %v4053_v25 = vunpack.i.l.bf16 %v5563_v49  ;;  %v4022_v53 = vpop.permute.xlu0 %4021 }
 0x70f   :  { %v4024_v54 = vunpack.i.h.bf16 %v4022_v53  ;;  %v4023_v58 = vunpack.i.l.bf16 %v4022_v53 }
 0x710   :  { %v1005_v29 = vsel %vm81_vm1, %v4053_v25, %v4054_v52 }
 0x711   :  { %v5581_v12 = vpop.permute.xlu1 %4056  ;;  %v1421_v15 = vpack.c.bf16 %v1005_v29, %v1002_v59  ;;  %v1004_v27 = vsel %vm81_vm1, %v4024_v54, %v4053_v25  ;;  %v1001_v57 = vsel %vm81_vm1, %v4023_v58, %v3998_v48  ;;  %v1424_v59 = vpack.c.bf16 %v1055_v60, %v1052_v26 }
 0x712   :  { %v4027_v22 = vpop.permute.xlu0 %4026  ;;  %v1420_v53 = vpack.c.bf16 %v1004_v27, %v1001_v57  ;;  %v6770_v25 = vunpack.i.h.bf16 %v5547_v19  ;;  %v4003_v48 = vunpack.i.l.bf16 %v5547_v19  ;;  %v1108_v60 = vsel %vm111_vm3, %v3948_v40, %v6767_v6 }
 0x713   :  { %1560 = vmatprep.subr.bf16.mxu0 %v1421_v15  ;;  %v4028_v54 = vunpack.i.l.bf16 %v4027_v22  ;;  %v4029_v15 = vunpack.i.h.bf16 %v4027_v22  ;;  %v1111_v27 = vsel %vm111_vm3, %v3953_v39, %v6766_v18  ;;  %v3973_v40 = vunpack.i.l.bf16 %v5464_v8 }
 0x714   :  { %1561 = vmatpush1.bf16.msra.mxu0 %v1420_v53  ;;  %v1058_v1 = vsel %vm96_vm2, %v4003_v48, %v6770_v25  ;;  %v4058_v13 = vunpack.i.l.bf16 %v5581_v12 }
 0x715   :  { %v5594_v24 = vpop.permute.xlu1 %4066  ;;  %1562 = vmatprep.subr.bf16.mxu0 %v1424_v59  ;;  %v1057_v47 = vsel %vm96_vm2, %v4028_v54, %v4003_v48  ;;  %v1430_v54 = vpack.c.bf16 %v1111_v27, %v1108_v60  ;;  %v4008_v48 = vunpack.i.l.bf16 %v5551_v0  ;;  %v3984_v27 = vunpack.i.h.bf16 %v5541_v35 }
 0x716   :  { %v4069_v58 = vunpack.i.h.bf16 %v5594_v24  ;;  %v4068_v29 = vunpack.i.l.bf16 %v5594_v24  ;;  %v4032_v26 = vpop.permute.xlu0 %4031 }
 0x717   :  { %v4033_v18 = vunpack.i.l.bf16 %v4032_v26  ;;  %v4034_v38 = vunpack.i.h.bf16 %v4032_v26  ;;  %v3978_v26 = vunpack.i.l.bf16 %v5472_v11 }
 0x718   :  { %v1060_v57 = vsel %vm96_vm2, %v4029_v15, %v4068_v29  ;;  %1563 = vmatpush1.bf16.msra.mxu0 %v1423_v30  ;;  %v1061_v17 = vsel %vm96_vm2, %v4068_v29, %v4069_v58  ;;  %v6768_v30 = vunpack.i.h.bf16 %v5551_v0  ;;  %v3974_v29 = vunpack.i.h.bf16 %v5464_v8 }
 0x719   :  { %v5613_v22 = vpop.permute.xlu1 %4071  ;;  %v1427_v53 = vpack.c.bf16 %v1061_v17, %v1058_v1  ;;  %v1426_v59 = vpack.c.bf16 %v1060_v57, %v1057_v47  ;;  %v1429_v57 = vpack.c.bf16 %v1110_v7, %v1107_v37  ;;  %v3983_v47 = vunpack.i.l.bf16 %v5541_v35 }
 0x71a   :  { %v5617_v15 = vpop.permute.xlu0 %4036  ;;  %v1113_v17 = vsel %vm111_vm3, %v4033_v18, %v4008_v48  ;;  %v1114_v7 = vsel %vm111_vm3, %v4008_v48, %v6768_v30  ;;  %v3979_v8 = vunpack.i.h.bf16 %v5472_v11  ;;  %v1163_v18 = vsel %vm126_vm4, %v3973_v40, %v3963_v62 }
 0x71b   :  { %1564 = vmatprep.subr.bf16.mxu0 %v1427_v53  ;;  %v4043_v48 = vunpack.i.l.bf16 %v5553_v23  ;;  %v4073_v11 = vunpack.i.l.bf16 %v5613_v22  ;;  %v4074_v62 = vunpack.i.h.bf16 %v5613_v22  ;;  %v1223_v3 = vsel %vm141_vm5, %v3983_v47, %v3984_v27 }
 0x71c   :  { %1565 = vmatpush1.bf16.msra.mxu0 %v1426_v59 }
 0x71d   :  { %v5622_v6 = vpop.permute.xlu1 %4081  ;;  %1566 = vmatprep.subr.bf16.mxu0 %v1430_v54  ;;  %v1166_v54 = vsel %vm126_vm4, %v3974_v29, %v3968_v44  ;;  %v4044_v44 = vunpack.i.h.bf16 %v5553_v23  ;;  %v4038_v29 = vunpack.i.l.bf16 %v5617_v15  ;;  %v1221_v23 = vsel %vm141_vm5, %v3979_v8, %v4073_v11 }
 0x71e   :  { %v6769_v39 = vunpack.i.h.bf16 %v5622_v6  ;;  %v4083_v33 = vunpack.i.l.bf16 %v5622_v6  ;;  %v5627_v60 = vpop.permute.xlu0 %4046  ;;  %v1224_v45 = vsel %vm141_vm5, %v3984_v27, %v4074_v62 }
 0x71f   :  { %v1443_v62 = vpack.c.bf16 %v1224_v45, %v1221_v23  ;;  %v4048_v16 = vunpack.i.l.bf16 %v5627_v60 }
 0x720   :  { %v1116_v1 = vsel %vm111_vm3, %v4034_v38, %v4083_v33  ;;  %1567 = vmatpush1.bf16.msra.mxu0 %v1429_v57  ;;  %v1117_v37 = vsel %vm111_vm3, %v4083_v33, %v6769_v39  ;;  %v4014_v57 = vunpack.i.h.bf16 %v5555_v14  ;;  %v4013_v38 = vunpack.i.l.bf16 %v5555_v14 }
 0x721   :  { %v4087_v53 = vpop.permute.xlu1 %4086  ;;  %v1433_v59 = vpack.c.bf16 %v1117_v37, %v1114_v7  ;;  %v1432_v35 = vpack.c.bf16 %v1116_v1, %v1113_v17  ;;  %v3994_v1 = vunpack.i.h.bf16 %v5543_v63  ;;  %v1435_v14 = vpack.c.bf16 %v1166_v54, %v1163_v18 }
 0x722   :  { %v5649_v33 = vpop.permute.xlu0 %4061  ;;  %v1220_v17 = vsel %vm141_vm5, %v3978_v26, %v3979_v8  ;;  %v4039_v7 = vunpack.i.h.bf16 %v5617_v15  ;;  %v1171_v22 = vsel %vm126_vm4, %v4014_v57, %v4043_v48  ;;  %v4088_v30 = vunpack.i.l.bf16 %v4087_v53 }
 0x723   :  { %1568 = vmatprep.subr.bf16.mxu0 %v1433_v59  ;;  %v1170_v39 = vsel %vm126_vm4, %v4013_v38, %v4014_v57  ;;  %v1169_v15 = vsel %vm126_vm4, %v4038_v29, %v4013_v38  ;;  %v1222_v8 = vsel %vm141_vm5, %v3994_v1, %v3983_v47  ;;  %v4064_v50 = vunpack.i.h.bf16 %v5649_v33 }
 0x724   :  { %1569 = vmatpush1.bf16.msra.mxu0 %v1432_v35  ;;  %v4089_v35 = vunpack.i.h.bf16 %v4087_v53  ;;  %v1219_v53 = vsel %vm141_vm5, %v3993_v32, %v3978_v26  ;;  %v997_v27 = vsel %vm81_vm1, %v3919_v20, %v4088_v30  ;;  %v4063_v20 = vunpack.i.l.bf16 %v5649_v33 }
 0x725   :  { %v4102_v40 = vpop.permute.xlu1 %4101  ;;  %1570 = vmatprep.subr.bf16.mxu0 %v1436_v10  ;;  %v1441_v30 = vpack.c.bf16 %v1222_v8, %v1219_v53  ;;  %v4018_v47 = vunpack.i.l.bf16 %v5549_v46  ;;  %v4059_v26 = vunpack.i.h.bf16 %v5581_v12  ;;  %v4049_v12 = vunpack.i.h.bf16 %v5627_v60 }
 0x726   :  { %v4104_v63 = vunpack.i.h.bf16 %v4102_v40  ;;  %v4103_v37 = vunpack.i.l.bf16 %v4102_v40  ;;  %v4077_v59 = vpop.permute.xlu0 %4076  ;;  %v1442_v40 = vpack.c.bf16 %v1223_v3, %v1220_v17  ;;  %v1000_v38 = vsel %vm81_vm1, %v3924_v51, %v4089_v35 }
 0x727   :  { %v4019_v51 = vunpack.i.h.bf16 %v5549_v46  ;;  %v4079_v32 = vunpack.i.h.bf16 %v4077_v59  ;;  %v1279_v33 = vsel %vm156_vm6, %v4063_v20, %v4064_v50 }
 0x728   :  { %v1172_v25 = vsel %vm126_vm4, %v4039_v7, %v4103_v37  ;;  %v1174_v4 = vsel %vm126_vm4, %v4104_v63, %v4044_v44  ;;  %1571 = vmatpush1.bf16.msra.mxu0 %v1435_v14  ;;  %v1173_v10 = vsel %vm126_vm4, %v4103_v37, %v4104_v63  ;;  %v1276_v63 = vsel %vm156_vm6, %v4058_v13, %v4059_v26 }
 0x729   :  { %v5672_v18 = vpop.permute.xlu1 %4106  ;;  %v1440_v54 = vpack.c.bf16 %v1174_v4, %v1171_v22  ;;  %v1439_v48 = vpack.c.bf16 %v1173_v10, %v1170_v39  ;;  %v1438_v11 = vpack.c.bf16 %v1172_v25, %v1169_v15  ;;  %v1419_v25 = vpack.c.bf16 %v1000_v38, %v997_v27 }
 0x72a   :  { %v5676_v57 = vpop.permute.xlu0 %4091  ;;  %v1226_v14 = vsel %vm141_vm5, %v4018_v47, %v4019_v51  ;;  %v1225_v37 = vsel %vm141_vm5, %v4048_v16, %v4018_v47  ;;  %v4109_v23 = vunpack.i.h.bf16 %v5672_v18  ;;  %v4108_v4 = vunpack.i.l.bf16 %v5672_v18 }
 0x72b   :  { %3574 = vmatprep.subr.bf16.mxu1 %v1440_v54  ;;  %1572 = vmatprep.subr.bf16.mxu0 %v1439_v48  ;;  %v1278_v45 = vsel %vm156_vm6, %v4079_v32, %v4063_v20  ;;  %v4094_v5 = vunpack.i.h.bf16 %v5676_v57 }
 0x72c   :  { %3575 = vmatpush3.bf16.msra.mxu1 %v1416_v28  ;;  %1573 = vmatpush1.bf16.msra.mxu0 %v1438_v11  ;;  %v4078_v28 = vunpack.i.l.bf16 %v4077_v59  ;;  %v1448_v59 = vpack.c.bf16 %v1279_v33, %v1276_v63 }
 0x72d   :  { %v5687_v39 = vpop.permute.xlu1 %4116  ;;  %3576 = vmatprep.subr.bf16.mxu1 %v1443_v62  ;;  %1574 = vmatprep.subr.bf16.mxu0 %v1442_v40 }
 0x72e   :  { %v4097_v31 = vpop.permute.xlu0 %4096  ;;  %v1275_v22 = vsel %vm156_vm6, %v4078_v28, %v4058_v13 }
 0x72f   :  { %v4098_v29 = vunpack.i.l.bf16 %v4097_v31  ;;  %v4099_v10 = vunpack.i.h.bf16 %v4097_v31 }
 0x730   :  { %3577 = vmatpush3.bf16.msra.mxu1 %v1419_v25  ;;  %1575 = vmatpush1.bf16.msra.mxu0 %v1441_v30 }
 0x731   :  { %v4132_v1 = vpop.permute.xlu1 %4131  ;;  %v1227_v53 = vsel %vm141_vm5, %v4019_v51, %v4098_v29 }
 0x732   :  { %v4112_v3 = vpop.permute.xlu0 %4111  ;;  %v4133_v44 = vunpack.i.l.bf16 %v4132_v1  ;;  %v4134_v17 = vunpack.i.h.bf16 %v4132_v1  ;;  %v4118_v1 = vunpack.i.l.bf16 %v5687_v39 }
 0x733   :  { %v4114_v46 = vunpack.i.h.bf16 %v4112_v3  ;;  %v4113_v7 = vunpack.i.l.bf16 %v4112_v3 }
 0x734   :  { %v1277_v60 = vsel %vm156_vm6, %v4059_v26, %v4133_v44  ;;  %v1280_v40 = vsel %vm156_vm6, %v4064_v50, %v4134_v17  ;;  %v4119_v26 = vunpack.i.h.bf16 %v5687_v39  ;;  %v6771_v39 = vunpack.i.h.bf16 %v5547_v19 }
 0x735   :  { %v5702_v35 = vpop.permute.xlu1 %4141  ;;  %v1006_v11 = vsel %vm81_vm1, %v4054_v52, %v4114_v46  ;;  %v1003_v18 = vsel %vm81_vm1, %v3999_v2, %v4113_v7  ;;  %v4093_v2 = vunpack.i.l.bf16 %v5676_v57  ;;  %v1449_v28 = vpack.c.bf16 %v1280_v40, %v1277_v60 }
 0x736   :  { %v4122_v15 = vpop.permute.xlu0 %4121  ;;  %v4144_v8 = vunpack.i.h.bf16 %v5702_v35  ;;  %v4143_v27 = vunpack.i.l.bf16 %v5702_v35  ;;  %v1422_v47 = vpack.c.bf16 %v1006_v11, %v1003_v18  ;;  %v4641_v35 = vld [vmem:[%s6752_s8] ss:$12 sps:$4 sm:$0xff]   ;;  %v6772_v19 = vunpack.i.h.bf16 %v5430_v61  ;;  %v4646_v61 = vld [vmem:[%s6752_s8 + $0x18] ss:$12 sps:$4 sm:$0xff]  }
 0x737   :  { %v4124_v54 = vunpack.i.h.bf16 %v4122_v15  ;;  %v4123_v48 = vunpack.i.l.bf16 %v4122_v15  ;;  %v1281_v17 = vsel %vm156_vm6, %v4108_v4, %v4093_v2 }
 0x738   :  { %v1285_v9 = vsel %vm156_vm6, %v4143_v27, %v4144_v8  ;;  %v1284_v55 = vsel %vm156_vm6, %v4109_v23, %v4143_v27 }
 0x739   :  { %v4147_v38 = vpop.permute.xlu1 %4146  ;;  %v1228_v62 = vsel %vm141_vm5, %v4049_v12, %v4123_v48  ;;  %v1229_v20 = vsel %vm141_vm5, %v4123_v48, %v4124_v54  ;;  %v1230_v25 = vsel %vm141_vm5, %v4124_v54, %v4099_v10  ;;  %v1450_v63 = vpack.c.bf16 %v1284_v55, %v1281_v17 }
 0x73a   :  { %v4149_v31 = vunpack.i.h.bf16 %v4147_v38  ;;  %v4148_v30 = vunpack.i.l.bf16 %v4147_v38  ;;  %v5721_v49 = vpop.permute.xlu0 %4126  ;;  %v1445_v52 = vpack.c.bf16 %v1229_v20, %v1226_v14  ;;  %v1446_v51 = vpack.c.bf16 %v1230_v25, %v1227_v53 }
 0x73b   :  { %v1444_v50 = vpack.c.bf16 %v1228_v62, %v1225_v37  ;;  %v4129_v57 = vunpack.i.h.bf16 %v5721_v49  ;;  %v4128_v3 = vunpack.i.l.bf16 %v5721_v49  ;;  %v1282_v14 = vsel %vm156_vm6, %v4093_v2, %v4094_v5 }
 0x73c   :  { %v1053_v13 = vsel %vm96_vm2, %v3934_v34, %v4148_v30  ;;  %v1056_v16 = vsel %vm96_vm2, %v3939_v21, %v4149_v31  ;;  %1576 = vmatprep.subr.bf16.mxu0 %v1445_v52  ;;  %3578 = vmatprep.subr.bf16.mxu1 %v1446_v51  ;;  %v1447_v34 = vpack.c.bf16 %v1278_v45, %v1275_v22  ;;  %v6773_v17 = vunpack.i.h.bf16 %v5424_v56 }
 0x73d   :  { %v5733_v32 = vpop.permute.xlu1 %4161  ;;  %1577 = vmatpush1.bf16.msra.mxu0 %v1444_v50  ;;  %3579 = vmatpush3.bf16.msra.mxu1 %v1422_v47  ;;  %v1425_v29 = vpack.c.bf16 %v1056_v16, %v1053_v13  ;;  %v1451_v46 = vpack.c.bf16 %v1285_v9, %v1282_v14  ;;  %v1332_v12 = vsel %vm171_vm7, %v4118_v1, %v4119_v26  ;;  %v6774_v56 = vunpack.i.h.bf16 %v5622_v6 }
 0x73e   :  { %v4137_v21 = vpop.permute.xlu0 %4136  ;;  %1578 = vmatprep.subr.bf16.mxu0 %v1448_v59  ;;  %3580 = vmatprep.subr.bf16.mxu1 %v1449_v28  ;;  %v1335_v37 = vsel %vm171_vm7, %v4128_v3, %v4129_v57  ;;  %v4164_v22 = vunpack.i.h.bf16 %v5733_v32  ;;  %v4163_v59 = vunpack.i.l.bf16 %v5733_v32 }
 0x73f   :  { %v4139_v33 = vunpack.i.h.bf16 %v4137_v21  ;;  %v4138_v44 = vunpack.i.l.bf16 %v4137_v21  ;;  %v1454_v53 = vpack.c.bf16 %v1335_v37, %v1332_v12 }
 0x740   :  { %v1341_v62 = vsel %vm171_vm7, %v4163_v59, %v4164_v22 }
 0x741   :  { %v4167_v7 = vpop.permute.xlu1 %4166  ;;  %1579 = vmatpush1.bf16.msra.mxu0 %v1447_v34  ;;  %3581 = vmatpush3.bf16.msra.mxu1 %v1425_v29  ;;  %v1331_v23 = vsel %vm171_vm7, %v4138_v44, %v4118_v1  ;;  %v1334_v45 = vsel %vm171_vm7, %v4139_v33, %v4128_v3 }
 0x742   :  { %v4152_v4 = vpop.permute.xlu0 %4151  ;;  %1580 = vmatprep.subr.bf16.mxu0 %v1451_v46  ;;  %v4169_v10 = vunpack.i.h.bf16 %v4167_v7  ;;  %v4168_v15 = vunpack.i.l.bf16 %v4167_v7  ;;  %v1453_v38 = vpack.c.bf16 %v1334_v45, %v1331_v23 }
 0x743   :  { %v4154_v54 = vunpack.i.h.bf16 %v4152_v4  ;;  %v4153_v48 = vunpack.i.l.bf16 %v4152_v4 }
 0x744   :  { %v1340_v20 = vsel %vm171_vm7, %v4169_v10, %v4163_v59 }
 0x745   :  { %v4177_v60 = vpop.permute.xlu1 %4176  ;;  %1581 = vmatpush1.bf16.msra.mxu0 %v1450_v63  ;;  %v1338_v11 = vsel %vm171_vm7, %v4153_v48, %v4154_v54  ;;  %v1337_v25 = vsel %vm171_vm7, %v4168_v15, %v4153_v48 }
 0x746   :  { %v4179_v18 = vunpack.i.h.bf16 %v4177_v60  ;;  %v4178_v40 = vunpack.i.l.bf16 %v4177_v60  ;;  %v4157_v27 = vpop.permute.xlu0 %4156  ;;  %1582 = vmatprep.subr.bf16.mxu0 %v1454_v53  ;;  %v1457_v49 = vpack.c.bf16 %v1341_v62, %v1338_v11  ;;  %v1456_v13 = vpack.c.bf16 %v1340_v20, %v1337_v25  ;;  %v4647_v53 = vld [vmem:[%s6752_s8 + $0x34] ss:$12 sps:$4 sm:$0xff]  }
 0x747   :  { %v4159_v31 = vunpack.i.h.bf16 %v4157_v27  ;;  %v4158_v30 = vunpack.i.l.bf16 %v4157_v27 }
 0x748   :  { %v1333_v16 = vsel %vm171_vm7, %v4119_v26, %v4178_v40  ;;  %v1336_v28 = vsel %vm171_vm7, %v4129_v57, %v4179_v18  ;;  %v4644_v57 = vld [vmem:[%s6752_s8 + $0x1c] ss:$12 sps:$4 sm:$0xff]  }
 0x749   :  { %v4187_v52 = vpop.permute.xlu1 %4186  ;;  %1583 = vmatpush1.bf16.msra.mxu0 %v1453_v38  ;;  %v1283_v51 = vsel %vm156_vm6, %v4094_v5, %v4158_v30  ;;  %v1286_v2 = vsel %vm156_vm6, %v4144_v8, %v4159_v31  ;;  %v1455_v34 = vpack.c.bf16 %v1336_v28, %v1333_v16  ;;  %v4649_v16 = vld [vmem:[%s6752_s8 + $0x30] ss:$12 sps:$4 sm:$0xff]  }
 0x74a   :  { %v4172_v50 = vpop.permute.xlu0 %4171  ;;  %1584 = vmatprep.subr.bf16.mxu0 %v1457_v49  ;;  %v1452_v47 = vpack.c.bf16 %v1286_v2, %v1283_v51  ;;  %v4189_v1 = vunpack.i.h.bf16 %v4187_v52  ;;  %v4188_v32 = vunpack.i.l.bf16 %v4187_v52 }
 0x74b   :  { %v4174_v3 = vunpack.i.h.bf16 %v4172_v50  ;;  %v4173_v9 = vunpack.i.l.bf16 %v4172_v50 }
 0x74c   :  { %3582 = vmatprep.subr.bf16.mxu1 %v1452_v47  ;;  %v1339_v29 = vsel %vm171_vm7, %v4154_v54, %v4188_v32  ;;  %v1342_v24 = vsel %vm171_vm7, %v4164_v22, %v4189_v1  ;;  %v6775_v54 = vunpack.i.h.bf16 %v5551_v0 }
 0x74d   :  { %v4197_v8 = vpop.permute.xlu1 %4196  ;;  %v1062_v5 = vsel %vm96_vm2, %v4069_v58, %v4174_v3  ;;  %v1059_v26 = vsel %vm96_vm2, %v6771_v39, %v4173_v9  ;;  %1585 = vmatpush1.bf16.msra.mxu0 %v1456_v13  ;;  %v1458_v37 = vpack.c.bf16 %v1342_v24, %v1339_v29  ;;  %v4650_v3 = vld [vmem:[%s6752_s8 + $0x4c] ss:$12 sps:$4 sm:$0xff]   ;;  %v6776_v24 = vmov 0  }
 0x74e   :  { %v4182_v55 = vpop.permute.xlu0 %4181  ;;  %v1428_v21 = vpack.c.bf16 %v1062_v5, %v1059_v26  ;;  %v4199_v7 = vunpack.i.h.bf16 %v4197_v8  ;;  %v4198_v59 = vunpack.i.l.bf16 %v4197_v8 }
 0x74f   :  { %v4184_v33 = vunpack.i.h.bf16 %v4182_v55  ;;  %v4183_v44 = vunpack.i.l.bf16 %v4182_v55 }
 0x750   :  { %1587 = vmatmul.mubr.bf16.vlgmr.msra.gmra.mrb[8].mxu0 %v4641_v35  ;;  %3583 = vmatpush3.bf16.msra.mxu1 %v1428_v21  ;;  %v1388_v38 = vsel %vm186_vm8, %v4198_v59, %v4199_v7 }
 0x751   :  { %v4207_v58 = vpop.permute.xlu1 %4206  ;;  %v1109_v14 = vsel %vm111_vm3, %v6772_v19, %v4183_v44  ;;  %v1112_v46 = vsel %vm111_vm3, %v6773_v17, %v4184_v33  ;;  %3584 = vmatprep.subr.bf16.mxu1 %v1455_v34  ;;  %1596 = vmatprep.mubr.bf16.mxu0 %v4644_v57  ;;  %v4652_v33 = vld [vmem:[%s6752_s8 + $0x48] ss:$12 sps:$4 sm:$0xff]   ;;  %v4655_v17 = vld [vmem:[%s6752_s8 + $0x38] ss:$12 sps:$4 sm:$0xff]  }
 0x752   :  { %v4192_v63 = vpop.permute.xlu0 %4191  ;;  %v1431_v12 = vpack.c.bf16 %v1112_v46, %v1109_v14  ;;  %v4208_v23 = vunpack.i.l.bf16 %v4207_v58  ;;  %v4209_v4 = vunpack.i.h.bf16 %v4207_v58  ;;  %v4653_v19 = vld [vmem:[%s6752_s8 + $0x8] ss:$12 sps:$4 sm:$0xff]   ;;  %v4654_v14 = vld [vmem:[%s6752_s8 + $0x20] ss:$12 sps:$4 sm:$0xff]   ;;  %v4656_v46 = vld [vmem:[%s6752_s8 + $0x50] ss:$12 sps:$4 sm:$0xff]  }
 0x753   :  { %v4194_v22 = vunpack.i.h.bf16 %v4192_v63  ;;  %v4193_v45 = vunpack.i.l.bf16 %v4192_v63 }
 0x754   :  { %3585 = vmatpush3.bf16.msra.mxu1 %v1431_v12  ;;  %v1387_v18 = vsel %vm186_vm8, %v4208_v23, %v4198_v59 }
 0x755   :  { %v4217_v10 = vpop.permute.xlu1 %4216  ;;  %v1118_v15 = vsel %vm111_vm3, %v6774_v56, %v4194_v22  ;;  %v1115_v48 = vsel %vm111_vm3, %v6775_v54, %v4193_v45  ;;  %3586 = vmatprep.subr.bf16.mxu1 %v1458_v37 }
 0x756   :  { %v4202_v60 = vpop.permute.xlu0 %4201  ;;  %v1434_v11 = vpack.c.bf16 %v1118_v15, %v1115_v48  ;;  %v4219_v6 = vunpack.i.h.bf16 %v4217_v10  ;;  %v4218_v62 = vunpack.i.l.bf16 %v4217_v10 }
 0x757   :  { %v4204_v40 = vunpack.i.h.bf16 %v4202_v60  ;;  %v4203_v27 = vunpack.i.l.bf16 %v4202_v60 }
 0x758   :  { %1597 = vmatmul.mubr.bf16.gmra.mrb[12].mxu0 %v4646_v61  ;;  %3587 = vmatpush3.bf16.msra.mxu1 %v1434_v11  ;;  %v1397_v32 = vsel %vm186_vm8, %v4218_v62, %v4219_v6 }
 0x759   :  { %v4227_v0 = vpop.permute.xlu1 %4226  ;;  %v1390_v20 = vsel %vm186_vm8, %v4209_v4, %v4203_v27  ;;  %v1391_v25 = vsel %vm186_vm8, %v4203_v27, %v4204_v40  ;;  %1606 = vmatprep.mubr.bf16.mxu0 %v4647_v53 }
 0x75a   :  { %v4229_v31 = vunpack.i.h.bf16 %v4227_v0  ;;  %v4228_v30 = vunpack.i.l.bf16 %v4227_v0  ;;  %v4212_v49 = vpop.permute.xlu0 %4211  ;;  %v1460_v52 = vpack.c.bf16 %v1391_v25, %v1388_v38  ;;  %v1459_v51 = vpack.c.bf16 %v1390_v20, %v1387_v18 }
 0x75b   :  { %v4214_v2 = vunpack.i.h.bf16 %v4212_v49  ;;  %v4213_v50 = vunpack.i.l.bf16 %v4212_v49  ;;  %1733 = vmatmul.mubr.bf16.vlgmr.msra.gmra.mrb[8].mxu1 %v4641_v35 }
 0x75c   :  { %1627 = vmatprep.subr.bf16.mxu0 %v1460_v52  ;;  %v1389_v47 = vsel %vm186_vm8, %v4199_v7, %v4228_v30  ;;  %v1392_v13 = vsel %vm186_vm8, %v4204_v40, %v4229_v31  ;;  %1740 = vmatprep.mubr.bf16.mxu1 %v4644_v57 }
 0x75d   :  { %v1461_v28 = vpack.c.bf16 %v1392_v13, %v1389_v47  ;;  %1628 = vmatpush1.bf16.msra.mxu0 %v1459_v51  ;;  %v1394_v1 = vsel %vm186_vm8, %v4213_v50, %v4214_v2 }
 0x75e   :  { %v4222_v9 = vpop.permute.xlu0 %4221  ;;  %v1463_v35 = vpack.c.bf16 %v1397_v32, %v1394_v1 }
 0x75f   :  { %3632 = vmatprep.subr.bf16.mxu1 %v1461_v28  ;;  %v4224_v8 = vunpack.i.h.bf16 %v4222_v9  ;;  %v4223_v5 = vunpack.i.l.bf16 %v4222_v9 }
 0x760   :  { %3633 = vmatpush3.bf16.msra.mxu1 %v1461_v28  ;;  %1607 = vmatmul.mubr.bf16.gmra.mrb[16].mxu0 %v4649_v16 }
 0x761   :  { %v1396_v39 = vsel %vm186_vm8, %v4224_v8, %v4218_v62  ;;  %v1393_v26 = vsel %vm186_vm8, %v4223_v5, %v4213_v50  ;;  %1629 = vmatprep.subr.bf16.mxu0 %v1463_v35  ;;  %1616 = vmatprep.mubr.bf16.mxu0 %v4650_v3 }
 0x762   :  { %v4232_v57 = vpop.permute.xlu0 %4231  ;;  %v1462_v55 = vpack.c.bf16 %v1396_v39, %v1393_v26 }
 0x763   :  { %v4234_v21 = vunpack.i.h.bf16 %v4232_v57  ;;  %v4233_v34 = vunpack.i.l.bf16 %v4232_v57  ;;  %1741 = vmatmul.mubr.bf16.gmra.mrb[12].mxu1 %v4646_v61 }
 0x764   :  { %1630 = vmatpush1.bf16.msra.mxu0 %v1462_v55  ;;  %1748 = vmatprep.mubr.bf16.mxu1 %v4647_v53 }
 0x765   :  { %v1395_v44 = vsel %vm186_vm8, %v4214_v2, %v4233_v34  ;;  %v1398_v29 = vsel %vm186_vm8, %v4219_v6, %v4234_v21  ;;  %2584 = vmatprep.subr.bf16.mxu0 %v6776_v24 }
 0x766   :  { %v1464_v58 = vpack.c.bf16 %v1398_v29, %v1395_v44 }
 0x768   :  { %1617 = vmatmul.mubr.bf16.gmra.mrb[20].mxu0 %v4652_v33  ;;  %3634 = vmatprep.subr.bf16.mxu1 %v1464_v58 }
 0x769   :  { %3635 = vmatpush3.bf16.msra.mxu1 %v1464_v58  ;;  %1659 = vmatprep.mubr.bf16.mxu0 %v6776_v24 }
 0x76b   :  { %1749 = vmatmul.mubr.bf16.gmra.mrb[16].mxu1 %v4649_v16 }
 0x76c   :  { %1756 = vmatprep.mubr.bf16.mxu1 %v4650_v3 }
 0x770   :  { %3530 = vmatmul.mubr.msk.bf16.vlgmr.msra.gmra.mrb[8].mxu0 %vm1541_vm14, %v4653_v19 }
 0x771   :  { %1669 = vmatprep.mubr.bf16.mxu0 %v6776_v24 }
 0x773   :  { %1757 = vmatmul.mubr.bf16.gmra.mrb[20].mxu1 %v4652_v33 }
 0x774   :  { %3636 = vmatprep.mubr.msk.bf16.mxu1 %vm1541_vm14, %v4653_v19 }
 0x778   :  { %3531 = vmatmul.mubr.msk.bf16.gmra.mrb[12].mxu0 %vm1541_vm14, %v4654_v14 }
 0x779   :  { %1679 = vmatprep.mubr.bf16.mxu0 %v6776_v24 }
 0x77b   :  { %3637 = vmatmul.mubr.msk.bf16.vlgmr.msra.gmra.mrb[24].mxu1 %vm1541_vm14, %v4654_v14 }
 0x77c   :  { %3640 = vmatprep.mubr.msk.bf16.mxu1 %vm1541_vm14, %v4655_v17 }
 0x780   :  { %3532 = vmatmul.mubr.msk.bf16.gmra.mrb[16].mxu0 %vm1541_vm14, %v4655_v17 }
 0x781   :  { %1689 = vmatprep.mubr.bf16.mxu0 %v6776_v24 }
 0x783   :  { %3641 = vmatmul.mubr.msk.bf16.gmra.mrb[28].mxu1 %vm1541_vm14, %v4656_v46 }
 0x788   :  { %3533 = vmatmul.mubr.msk.bf16.gmra.mrb[20].mxu0 %vm1541_vm14, %v4656_v46 }
 0x82e   :  { %v3588_v7 = vpop.f32.mrb[8].mxu1 }
 0x82f   :  { %v3589_v63 = vpop.f32.mrb[9].mxu1 }
 0x830   :  { %v3590_v12 = vadd.f32 %v3589_v63, %v3588_v7  ;;  %v3591_v37 = vpop.f32.mrb[10].mxu1 }
 0x831   :  { %v3592_v59 = vpop.f32.mrb[11].mxu1 }
 0x832   :  { %v3593_v23 = vadd.f32 %v3592_v59, %v3591_v37 }
 0x836   :  { %v3594_v22 = vpop.f32.mrb[12].mxu1 }
 0x837   :  { %v3595_v45 = vpop.f32.mrb[13].mxu1 }
 0x838   :  { %v3596_v61 = vadd.f32 %v3595_v45, %v3594_v22  ;;  %v3597_v4 = vpop.f32.mrb[14].mxu1 }
 0x839   :  { %v3598_v10 = vpop.f32.mrb[15].mxu1 }
 0x83a   :  { %v3599_v56 = vadd.f32 %v3598_v10, %v3597_v4 }
 0x83e   :  { %v3600_v15 = vpop.f32.mrb[16].mxu1 }
 0x83f   :  { %v3601_v54 = vpop.f32.mrb[17].mxu1 }
 0x840   :  { %v3602_v48 = vadd.f32 %v3601_v54, %v3600_v15  ;;  %v3603_v53 = vpop.f32.mrb[18].mxu1 }
 0x841   :  { %v3604_v60 = vpop.f32.mrb[19].mxu1 }
 0x842   :  { %v3605_v11 = vadd.f32 %v3604_v60, %v3603_v53 }
 0x843   :  { %v5833_v18 = vpop.f32.mrb[8].mxu0 }
 0x844   :  { %v1830_v40 = vmul.f32 %v5833_v18, %v5061_v41  ;;  %v5837_v27 = vpop.f32.mrb[9].mxu0 }
 0x845   :  { %v1831_v38 = vmul.f32 %v5837_v27, %v5065_v42  ;;  %v5841_v6 = vpop.f32.mrb[10].mxu0 }
 0x846   :  { %v1833_v62 = vmul.f32 %v5841_v6, %v5061_v41  ;;  %v5845_v0 = vpop.f32.mrb[11].mxu0  ;;  %v3606_v20 = vpop.f32.mrb[20].mxu1 }
 0x847   :  { %v1854_v25 = vadd.f32 %v1831_v38, %v1830_v40  ;;  %v1834_v31 = vmul.f32 %v5845_v0, %v5065_v42  ;;  %v3607_v30 = vpop.f32.mrb[21].mxu1 }
 0x848   :  { %v3608_v49 = vadd.f32 %v3607_v30, %v3606_v20  ;;  %v3609_v52 = vpop.f32.mrb[22].mxu1 }
 0x849   :  { %v1858_v51 = vadd.f32 %v1834_v31, %v1833_v62  ;;  %v3610_v2 = vpop.f32.mrb[23].mxu1 }
 0x84a   :  { %v3611_v50 = vadd.f32 %v3610_v2, %v3609_v52 }
 0x84b   :  { %v5849_v47 = vpop.f32.mrb[12].mxu0 }
 0x84c   :  { %v1836_v13 = vmul.f32 %v5849_v47, %v5061_v41  ;;  %v5853_v16 = vpop.f32.mrb[13].mxu0 }
 0x84d   :  { %v1837_v28 = vmul.f32 %v5853_v16, %v5065_v42  ;;  %v5857_v1 = vpop.f32.mrb[14].mxu0 }
 0x84e   :  { %v1839_v32 = vmul.f32 %v5857_v1, %v5061_v41  ;;  %v5861_v3 = vpop.f32.mrb[15].mxu0  ;;  %v3638_v9 = vpop.f32.mrb[24].mxu1 }
 0x84f   :  { %v1862_v35 = vadd.f32 %v1837_v28, %v1836_v13  ;;  %v1840_v8 = vmul.f32 %v5861_v3, %v5065_v42  ;;  %v5865_v5 = vadd.f32 %v3638_v9, %v3596_v61  ;;  %v1799_v39 = vpop.f32.mrb[25].mxu1 }
 0x850   :  { %v5867_v26 = vadd.f32 %v3590_v12, %v1799_v39  ;;  %v3639_v57 = vpop.f32.mrb[26].mxu1 }
 0x851   :  { %v1866_v55 = vadd.f32 %v1840_v8, %v1839_v32  ;;  %v5869_v21 = vadd.f32 %v3639_v57, %v3599_v56  ;;  %v1802_v34 = vpop.f32.mrb[27].mxu1  ;;  %v1838_v12 = vmul.f32 %v5865_v5, %v5069_v43 }
 0x852   :  { %v1832_v33 = vmul.f32 %v5867_v26, %v5069_v43  ;;  %v5873_v44 = vadd.f32 %v3593_v23, %v1802_v34 }
 0x853   :  { %v5875_v29 = vpop.f32.mrb[16].mxu0  ;;  %v1841_v58 = vmul.f32 %v5869_v21, %v5069_v43  ;;  %v1863_v20 = vadd.f32 %v1862_v35, %v1838_v12 }
 0x854   :  { %v1835_v19 = vmul.f32 %v5873_v44, %v5069_v43  ;;  %v1842_v14 = vmul.f32 %v5875_v29, %v5061_v41  ;;  %v5883_v17 = vpop.f32.mrb[17].mxu0  ;;  %v1855_v46 = vadd.f32 %v1854_v25, %v1832_v33 }
 0x855   :  { %v1843_v7 = vmul.f32 %v5883_v17, %v5065_v42  ;;  %v5887_v63 = vpop.f32.mrb[18].mxu0  ;;  %v1867_v54 = vadd.f32 %v1866_v55, %v1841_v58 }
 0x856   :  { %v1845_v37 = vmul.f32 %v5887_v63, %v5061_v41  ;;  %v3642_v59 = vpop.f32.mrb[28].mxu1  ;;  %1856 = vadd.xlane.f32.xlu1 %v1855_v46  ;;  %v5893_v23 = vpop.f32.mrb[19].mxu0  ;;  %v1859_v22 = vadd.f32 %v1858_v51, %v1835_v19 }
 0x857   :  { %v1870_v45 = vadd.f32 %v1843_v7, %v1842_v14  ;;  %v5895_v61 = vadd.f32 %v3642_v59, %v3608_v49  ;;  %v1846_v4 = vmul.f32 %v5893_v23, %v5065_v42  ;;  %v1815_v10 = vpop.f32.mrb[29].mxu1 }
 0x858   :  { %v5899_v56 = vadd.f32 %v3602_v48, %v1815_v10  ;;  %v3643_v15 = vpop.f32.mrb[30].mxu1  ;;  %1860 = vadd.xlane.f32.xlu0 %v1859_v22 }
 0x859   :  { %v1874_v53 = vadd.f32 %v1846_v4, %v1845_v37  ;;  %v5901_v60 = vadd.f32 %v3643_v15, %v3611_v50  ;;  %v1818_v40 = vpop.f32.mrb[31].mxu1  ;;  %v1850_v13 = vmul.f32 %v5895_v61, %v5069_v43 }
 0x85a   :  { %v1844_v38 = vmul.f32 %v5899_v56, %v5069_v43  ;;  %v5905_v62 = vadd.f32 %v3605_v11, %v1818_v40  ;;  %1868 = vadd.xlane.f32.xlu1 %v1867_v54 }
 0x85b   :  { %v5907_v25 = vpop.f32.mrb[20].mxu0  ;;  %v1853_v9 = vmul.f32 %v5901_v60, %v5069_v43 }
 0x85c   :  { %v1847_v48 = vmul.f32 %v5905_v62, %v5069_v43  ;;  %v1848_v31 = vmul.f32 %v5907_v25, %v5061_v41  ;;  %1864 = vadd.xlane.f32.xlu0 %v1863_v20  ;;  %v5913_v30 = vpop.f32.mrb[21].mxu0  ;;  %v1871_v2 = vadd.f32 %v1870_v45, %v1844_v38 }
 0x85d   :  { %v1849_v49 = vmul.f32 %v5913_v30, %v5065_v42  ;;  %v5917_v52 = vpop.f32.mrb[22].mxu0 }
 0x85e   :  { %v1851_v11 = vmul.f32 %v5917_v52, %v5061_v41  ;;  %v5921_v51 = vpop.f32.mrb[23].mxu0  ;;  %v1875_v50 = vadd.f32 %v1874_v53, %v1847_v48 }
 0x85f   :  { %v1878_v28 = vadd.f32 %v1849_v49, %v1848_v31  ;;  %v1852_v32 = vmul.f32 %v5921_v51, %v5065_v42 }
 0x860   :  { %1872 = vadd.xlane.f32.xlu0 %v1871_v2  ;;  %1876 = vadd.xlane.f32.xlu1 %v1875_v50 }
 0x861   :  { %v1882_v35 = vadd.f32 %v1852_v32, %v1851_v11  ;;  %v1879_v8 = vadd.f32 %v1878_v28, %v1850_v13 }
 0x863   :  { %v1883_v39 = vadd.f32 %v1882_v35, %v1853_v9 }
 0x864   :  { %1880 = vadd.xlane.f32.xlu0 %v1879_v8 }
 0x865   :  { %1884 = vadd.xlane.f32.xlu1 %v1883_v39 }
 0x8e3   :  { %v1857_v57 = vpop.xlane.xlu1 %1856 }
 0x8e4   :  { %v1886_v55 = vmul.f32 0.00390625, %v1857_v57 }
 0x8e5   :  { %v1861_v34 = vpop.xlane.xlu0 %1860 }
 0x8e6   :  { %v5930_v33 = vsub.f32 %v5833_v18, %v1886_v55  ;;  %v5933_v58 = vsub.f32 %v5837_v27, %v1886_v55  ;;  %v5936_v19 = vsub.f32 %v5867_v26, %v1886_v55  ;;  %v1887_v14 = vmul.f32 0.00390625, %v1861_v34 }
 0x8e7   :  { %v1869_v46 = vpop.xlane.xlu1 %1868 }
 0x8e8   :  { %v1918_v7 = vmul.f32 %v5930_v33, %v5061_v41  ;;  %v1919_v12 = vmul.f32 %v5933_v58, %v5065_v42  ;;  %v5943_v37 = vsub.f32 %v5841_v6, %v1887_v14  ;;  %v5946_v18 = vsub.f32 %v5845_v0, %v1887_v14 }
 0x8e9   :  { %v5949_v27 = vsub.f32 %v5873_v44, %v1887_v14  ;;  %v1889_v59 = vmul.f32 0.00390625, %v1869_v46  ;;  %v1865_v26 = vpop.xlane.xlu0 %1864  ;;  %v1920_v22 = vmul.f32 %v5936_v19, %v5069_v43 }
 0x8ea   :  { %v1921_v45 = vmul.f32 %v5943_v37, %v5061_v41  ;;  %v1922_v4 = vmul.f32 %v5946_v18, %v5065_v42  ;;  %v1888_v10 = vmul.f32 0.00390625, %v1865_v26  ;;  %v1942_v6 = vmul.f32 %v1918_v7, %v1918_v7 }
 0x8eb   :  { %v5958_v15 = vsub.f32 %v5857_v1, %v1889_v59  ;;  %v5961_v0 = vsub.f32 %v5861_v3, %v1889_v59  ;;  %v5964_v44 = vsub.f32 %v5869_v21, %v1889_v59  ;;  %v1943_v54 = vmul.f32 %v1919_v12, %v1919_v12 }
 0x8ec   :  { %v5967_v53 = vsub.f32 %v5849_v47, %v1888_v10  ;;  %v5970_v40 = vsub.f32 %v5853_v16, %v1888_v10  ;;  %v5973_v38 = vsub.f32 %v5865_v5, %v1888_v10  ;;  %v1944_v20 = vmul.f32 %v1920_v22, %v1920_v22 }
 0x8ed   :  { %v1927_v1 = vmul.f32 %v5958_v15, %v5061_v41  ;;  %v1928_v3 = vmul.f32 %v5961_v0, %v5065_v42  ;;  %v1873_v48 = vpop.xlane.xlu0 %1872  ;;  %v1877_v21 = vpop.xlane.xlu1 %1876  ;;  %v1966_v31 = vadd.f32 %v1943_v54, %v1942_v6  ;;  %v1923_v47 = vmul.f32 %v5949_v27, %v5069_v43 }
 0x8ee   :  { %v1924_v16 = vmul.f32 %v5967_v53, %v5061_v41  ;;  %v1925_v5 = vmul.f32 %v5970_v40, %v5065_v42  ;;  %v1890_v49 = vmul.f32 0.00390625, %v1873_v48  ;;  %v1891_v11 = vmul.f32 0.00390625, %v1877_v21 }
 0x8ef   :  { %v1967_v2 = vadd.f32 %v1966_v31, %v1944_v20  ;;  %v1945_v50 = vmul.f32 %v1921_v45, %v1921_v45  ;;  %v1946_v13 = vmul.f32 %v1922_v4, %v1922_v4  ;;  %v1947_v28 = vmul.f32 %v1923_v47, %v1923_v47 }
 0x8f0   :  { %v5986_v32 = vsub.f32 %v5875_v29, %v1890_v49  ;;  %v5989_v9 = vsub.f32 %v5883_v17, %v1890_v49  ;;  %v5992_v35 = vsub.f32 %v5899_v56, %v1890_v49  ;;  %v5995_v8 = vsub.f32 %v5887_v63, %v1891_v11 }
 0x8f1   :  { %v5998_v39 = vsub.f32 %v5893_v23, %v1891_v11  ;;  %v6001_v57 = vsub.f32 %v5905_v62, %v1891_v11  ;;  %1968 = vadd.xlane.f32.xlu0 %v1967_v2  ;;  %v1881_v55 = vpop.xlane.xlu0 %1880  ;;  %v1970_v34 = vadd.f32 %v1946_v13, %v1945_v50  ;;  %v1926_v29 = vmul.f32 %v5973_v38, %v5069_v43 }
 0x8f2   :  { %v1930_v17 = vmul.f32 %v5986_v32, %v5061_v41  ;;  %v1931_v56 = vmul.f32 %v5989_v9, %v5065_v42  ;;  %v1933_v63 = vmul.f32 %v5995_v8, %v5061_v41  ;;  %v1892_v23 = vmul.f32 0.00390625, %v1881_v55  ;;  %v1885_v14 = vpop.xlane.xlu1 %1884 }
 0x8f3   :  { %v1934_v62 = vmul.f32 %v5998_v39, %v5065_v42  ;;  %v1971_v46 = vadd.f32 %v1970_v34, %v1947_v28  ;;  %v1893_v7 = vmul.f32 0.00390625, %v1885_v14  ;;  %v1948_v12 = vmul.f32 %v1924_v16, %v1924_v16 }
 0x8f4   :  { %v6014_v59 = vsub.f32 %v5907_v25, %v1892_v23  ;;  %v6017_v26 = vsub.f32 %v5913_v30, %v1892_v23  ;;  %v6020_v22 = vsub.f32 %v5895_v61, %v1892_v23  ;;  %v1949_v45 = vmul.f32 %v1925_v5, %v1925_v5 }
 0x8f5   :  { %1972 = vadd.xlane.f32.xlu1 %v1971_v46  ;;  %v6023_v4 = vsub.f32 %v5917_v52, %v1893_v7  ;;  %v6026_v10 = vsub.f32 %v5921_v51, %v1893_v7  ;;  %v6029_v6 = vsub.f32 %v5901_v60, %v1893_v7  ;;  %v1950_v54 = vmul.f32 %v1926_v29, %v1926_v29 }
 0x8f6   :  { %v1936_v25 = vmul.f32 %v6014_v59, %v5061_v41  ;;  %v1937_v30 = vmul.f32 %v6017_v26, %v5065_v42  ;;  %v1974_v61 = vadd.f32 %v1949_v45, %v1948_v12  ;;  %v1929_v20 = vmul.f32 %v5964_v44, %v5069_v43 }
 0x8f7   :  { %v1939_v52 = vmul.f32 %v6023_v4, %v5061_v41  ;;  %v1940_v51 = vmul.f32 %v6026_v10, %v5065_v42  ;;  %v1951_v48 = vmul.f32 %v1927_v1, %v1927_v1  ;;  %v1952_v60 = vmul.f32 %v1928_v3, %v1928_v3 }
 0x8f8   :  { %v1975_v21 = vadd.f32 %v1974_v61, %v1950_v54  ;;  %v1953_v31 = vmul.f32 %v1929_v20, %v1929_v20  ;;  %v1932_v47 = vmul.f32 %v5992_v35, %v5069_v43  ;;  %v1954_v16 = vmul.f32 %v1930_v17, %v1930_v17 }
 0x8f9   :  { %v1978_v5 = vadd.f32 %v1952_v60, %v1951_v48  ;;  %v1955_v49 = vmul.f32 %v1931_v56, %v1931_v56  ;;  %v1935_v11 = vmul.f32 %v6001_v57, %v5069_v43  ;;  %v1957_v2 = vmul.f32 %v1933_v63, %v1933_v63 }
 0x8fa   :  { %1976 = vadd.xlane.f32.xlu0 %v1975_v21  ;;  %v1958_v50 = vmul.f32 %v1934_v62, %v1934_v62  ;;  %v1938_v13 = vmul.f32 %v6020_v22, %v5069_v43  ;;  %v1960_v28 = vmul.f32 %v1936_v25, %v1936_v25  ;;  %v1956_v3 = vmul.f32 %v1932_v47, %v1932_v47 }
 0x8fb   :  { %v1979_v1 = vadd.f32 %v1978_v5, %v1953_v31  ;;  %v1982_v55 = vadd.f32 %v1955_v49, %v1954_v16  ;;  %v1961_v34 = vmul.f32 %v1937_v30, %v1937_v30  ;;  %v1959_v29 = vmul.f32 %v1935_v11, %v1935_v11 }
 0x8fc   :  { %v1986_v23 = vadd.f32 %v1958_v50, %v1957_v2  ;;  %v1941_v17 = vmul.f32 %v6029_v6, %v5069_v43  ;;  %v1963_v56 = vmul.f32 %v1939_v52, %v1939_v52  ;;  %v1962_v46 = vmul.f32 %v1938_v13, %v1938_v13 }
 0x8fd   :  { %1980 = vadd.xlane.f32.xlu1 %v1979_v1  ;;  %v1983_v14 = vadd.f32 %v1982_v55, %v1956_v3  ;;  %v1990_v63 = vadd.f32 %v1961_v34, %v1960_v28  ;;  %v1964_v7 = vmul.f32 %v1940_v51, %v1940_v51 }
 0x8fe   :  { %v1987_v62 = vadd.f32 %v1986_v23, %v1959_v29  ;;  %v1965_v45 = vmul.f32 %v1941_v17, %v1941_v17 }
 0x8ff   :  { %1984 = vadd.xlane.f32.xlu0 %v1983_v14  ;;  %v1991_v12 = vadd.f32 %v1990_v63, %v1962_v46  ;;  %v1994_v54 = vadd.f32 %v1964_v7, %v1963_v56 }
 0x901   :  { %1988 = vadd.xlane.f32.xlu1 %v1987_v62  ;;  %v1995_v25 = vadd.f32 %v1994_v54, %v1965_v45 }
 0x903   :  { %1992 = vadd.xlane.f32.xlu0 %v1991_v12 }
 0x905   :  { %1996 = vadd.xlane.f32.xlu1 %v1995_v25 }
 0x97e   :  { %v1969_v30 = vpop.xlane.xlu0 %1968 }
 0x97f   :  { %v1998_v61 = vmul.f32 0.00390625, %v1969_v30 }
 0x981   :  { %v2006_v20 = vadd.f32 1e-05, %v1998_v61 }
 0x982   :  { %v1973_v48 = vpop.xlane.xlu1 %1972 }
 0x983   :  { %4668 = vrsqrt.f32 %v2006_v20  ;;  %v1999_v52 = vmul.f32 0.00390625, %v1973_v48 }
 0x985   :  { %v2007_v60 = vadd.f32 1e-05, %v1999_v52 }
 0x987   :  { %4670 = vrsqrt.f32 %v2007_v60  ;;  %v1977_v21 = vpop.xlane.xlu0 %1976 }
 0x988   :  { %v2000_v31 = vmul.f32 0.00390625, %v1977_v21 }
 0x98a   :  { %v2008_v51 = vadd.f32 1e-05, %v2000_v31  ;;  %v1981_v47 = vpop.xlane.xlu1 %1980 }
 0x98b   :  { %v2001_v16 = vmul.f32 0.00390625, %v1981_v47 }
 0x98c   :  { %4672 = vrsqrt.f32 %v2008_v51  ;;  %v1985_v5 = vpop.xlane.xlu0 %1984 }
 0x98d   :  { %v4669_v49 = vpop.eup %4668  ;;  %v2009_v11 = vadd.f32 1e-05, %v2001_v16  ;;  %v2002_v2 = vmul.f32 0.00390625, %v1985_v5 }
 0x98e   :  { %v2022_v50 = vmul.f32 %v4669_v49, %v5930_v33  ;;  %v2023_v13 = vmul.f32 %v4669_v49, %v5933_v58  ;;  %v2024_v28 = vmul.f32 %v4669_v49, %v5936_v19  ;;  %v1989_v1 = vpop.xlane.xlu1 %1988 }
 0x98f   :  { %4674 = vrsqrt.f32 %v2009_v11  ;;  %v2010_v3 = vadd.f32 1e-05, %v2002_v2  ;;  %v2003_v55 = vmul.f32 0.00390625, %v1989_v1 }
 0x990   :  { %v3538_v34 = vmul.f32 -1.442695, %v2022_v50  ;;  %v3539_v29 = vmul.f32 -1.442695, %v2023_v13  ;;  %v3540_v23 = vmul.f32 -1.442695, %v2024_v28  ;;  %v1993_v17 = vpop.xlane.xlu0 %1992 }
 0x991   :  { %v4671_v56 = vpop.eup %4670  ;;  %4676 = vrsqrt.f32 %v2010_v3  ;;  %v2011_v14 = vadd.f32 1e-05, %v2003_v55  ;;  %v2004_v46 = vmul.f32 0.00390625, %v1993_v17 }
 0x992   :  { %4678 = vpow2.f32 %v3538_v34  ;;  %v2025_v63 = vmul.f32 %v4671_v56, %v5943_v37  ;;  %v2026_v33 = vmul.f32 %v4671_v56, %v5946_v18  ;;  %v2027_v58 = vmul.f32 %v4671_v56, %v5949_v27  ;;  %v1997_v19 = vpop.xlane.xlu1 %1996 }
 0x993   :  { %4680 = vpow2.f32 %v3539_v29  ;;  %v2005_v7 = vmul.f32 0.00390625, %v1997_v19  ;;  %v2012_v54 = vadd.f32 1e-05, %v2004_v46 }
 0x994   :  { %4682 = vpow2.f32 %v3540_v23  ;;  %v3541_v62 = vmul.f32 -1.442695, %v2025_v63  ;;  %v3542_v12 = vmul.f32 -1.442695, %v2026_v33  ;;  %v3543_v45 = vmul.f32 -1.442695, %v2027_v58 }
 0x995   :  { %4684 = vrsqrt.f32 %v2011_v14  ;;  %v2013_v30 = vadd.f32 1e-05, %v2005_v7 }
 0x996   :  { %v4673_v25 = vpop.eup %4672  ;;  %4686 = vpow2.f32 %v3541_v62 }
 0x997   :  { %4688 = vpow2.f32 %v3542_v12  ;;  %v2028_v61 = vmul.f32 %v4673_v25, %v5967_v53  ;;  %v2029_v37 = vmul.f32 %v4673_v25, %v5970_v40  ;;  %v2030_v18 = vmul.f32 %v4673_v25, %v5973_v38 }
 0x998   :  { %4690 = vpow2.f32 %v3543_v45 }
 0x999   :  { %v4675_v27 = vpop.eup %4674  ;;  %v3544_v20 = vmul.f32 -1.442695, %v2028_v61  ;;  %v3545_v48 = vmul.f32 -1.442695, %v2029_v37  ;;  %v3546_v52 = vmul.f32 -1.442695, %v2030_v18  ;;  %4692 = vrsqrt.f32 %v2012_v54 }
 0x99a   :  { %v2031_v60 = vmul.f32 %v4675_v27, %v5958_v15  ;;  %v2032_v21 = vmul.f32 %v4675_v27, %v5961_v0  ;;  %4694 = vrsqrt.f32 %v2013_v30  ;;  %v2033_v5 = vmul.f32 %v4675_v27, %v5964_v44 }
 0x99b   :  { %v4677_v31 = vpop.eup %4676  ;;  %4696 = vpow2.f32 %v3544_v20 }
 0x99c   :  { %v4679_v51 = vpop.eup %4678  ;;  %4698 = vpow2.f32 %v3545_v48  ;;  %v3547_v53 = vmul.f32 -1.442695, %v2031_v60  ;;  %v3548_v49 = vmul.f32 -1.442695, %v2032_v21  ;;  %v3549_v1 = vmul.f32 -1.442695, %v2033_v5 }
 0x99d   :  { %v4681_v47 = vpop.eup %4680  ;;  %v2100_v40 = vadd.f32 1.0, %v4679_v51  ;;  %4700 = vpow2.f32 %v3546_v52  ;;  %v2034_v12 = vmul.f32 %v4677_v31, %v5986_v32  ;;  %v2035_v30 = vmul.f32 %v4677_v31, %v5989_v9  ;;  %v2160_v9 = vld [vmem:[%s6749_s5] sm:$0xff] }
 0x99e   :  { %v4683_v38 = vpop.eup %4682  ;;  %v2101_v16 = vadd.f32 1.0, %v4681_v47  ;;  %4702 = vpow2.f32 %v3547_v53 }
 0x99f   :  { %v6061_v11 = vpop.eup %4684  ;;  %v2102_v15 = vadd.f32 1.0, %v4683_v38  ;;  %4704 = vrcp.f32 %v2100_v40 }
 0x9a0   :  { %v4687_v0 = vpop.eup %4686  ;;  %4706 = vrcp.f32 %v2101_v16  ;;  %v2037_v32 = vmul.f32 %v6061_v11, %v5995_v8  ;;  %v2039_v8 = vmul.f32 %v6061_v11, %v6001_v57  ;;  %v2162_v57 = vld [vmem:[%s6749_s5 + $0x10] sm:$0xff] }
 0x9a1   :  { %v4689_v2 = vpop.eup %4688  ;;  %4708 = vrcp.f32 %v2102_v15  ;;  %v2103_v50 = vadd.f32 1.0, %v4687_v0 }
 0x9a2   :  { %v4691_v13 = vpop.eup %4690  ;;  %v2104_v28 = vadd.f32 1.0, %v4689_v2  ;;  %4710 = vpow2.f32 %v3548_v49  ;;  %v3553_v21 = vmul.f32 -1.442695, %v2037_v32  ;;  %v3555_v5 = vmul.f32 -1.442695, %v2039_v8 }
 0x9a3   :  { %v4693_v3 = vpop.eup %4692  ;;  %v2105_v55 = vadd.f32 1.0, %v4691_v13  ;;  %4712 = vrcp.f32 %v2103_v50 }
 0x9a4   :  { %v4695_v34 = vpop.eup %4694  ;;  %4714 = vrcp.f32 %v2104_v28  ;;  %v2040_v44 = vmul.f32 %v4693_v3, %v6014_v59  ;;  %v2041_v33 = vmul.f32 %v4693_v3, %v6017_v26  ;;  %v2042_v7 = vmul.f32 %v4693_v3, %v6020_v22  ;;  %v2164_v3 = vld [vmem:[%s6749_s5 + $0x20] sm:$0xff] }
 0x9a5   :  { %v4697_v29 = vpop.eup %4696  ;;  %4716 = vrcp.f32 %v2105_v55  ;;  %v2043_v59 = vmul.f32 %v4695_v34, %v6023_v4  ;;  %v2044_v25 = vmul.f32 %v4695_v34, %v6026_v10  ;;  %v2045_v37 = vmul.f32 %v4695_v34, %v6029_v6 }
 0x9a6   :  { %v4699_v23 = vpop.eup %4698  ;;  %v2106_v17 = vadd.f32 1.0, %v4697_v29  ;;  %4718 = vpow2.f32 %v3549_v1  ;;  %v2036_v22 = vmul.f32 %v4677_v31, %v5992_v35  ;;  %v3550_v4 = vmul.f32 -1.442695, %v2034_v12 }
 0x9a7   :  { %v4701_v56 = vpop.eup %4700  ;;  %v2107_v14 = vadd.f32 1.0, %v4699_v23  ;;  %4720 = vtanh.f32 %v2040_v44  ;;  %v3551_v10 = vmul.f32 -1.442695, %v2035_v30  ;;  %v2038_v6 = vmul.f32 %v6061_v11, %v5998_v39  ;;  %v2161_v39 = vld [vmem:[%s6749_s5 + $0x8] sm:$0xff]  ;;  %v2163_v11 = vld [vmem:[%s6749_s5 + $0x18] sm:$0xff] }
 0x9a8   :  { %v4703_v46 = vpop.eup %4702  ;;  %v2108_v63 = vadd.f32 1.0, %v4701_v56  ;;  %4722 = vrcp.f32 %v2106_v17  ;;  %v3552_v52 = vmul.f32 -1.442695, %v2036_v22 }
 0x9a9   :  { %v4705_v58 = vpop.eup %4704  ;;  %4724 = vrcp.f32 %v2107_v14  ;;  %v2109_v19 = vadd.f32 1.0, %v4703_v46  ;;  %v3554_v40 = vmul.f32 -1.442695, %v2038_v6 }
 0x9aa   :  { %v4707_v62 = vpop.eup %4706  ;;  %4726 = vrcp.f32 %v2108_v63  ;;  %v2166_v51 = vmul.f32 %v4705_v58, %v2160_v9 }
 0x9ab   :  { %v4709_v45 = vpop.eup %4708  ;;  %4728 = vrcp.f32 %v2109_v19  ;;  %v2167_v0 = vmul.f32 %v4707_v62, %v2161_v39 }
 0x9ac   :  { %v4711_v54 = vpop.eup %4710  ;;  %4730 = vtanh.f32 %v2041_v33  ;;  %v2168_v28 = vmul.f32 %v4709_v45, %v2162_v57  ;;  %v2165_v33 = vld [vmem:[%s6749_s5 + $0x28] sm:$0xff] }
 0x9ad   :  { %v4713_v26 = vpop.eup %4712  ;;  %v2110_v61 = vadd.f32 1.0, %v4711_v54  ;;  %4732 = vtanh.f32 %v2042_v7 }
 0x9ae   :  { %v4715_v18 = vpop.eup %4714  ;;  %4734 = vtanh.f32 %v2043_v59  ;;  %v2169_v44 = vmul.f32 %v4713_v26, %v2163_v11 }
 0x9af   :  { %v6074_v27 = vpop.eup %4716  ;;  %4736 = vrcp.f32 %v2110_v61  ;;  %v2170_v46 = vmul.f32 %v4715_v18, %v2164_v3 }
 0x9b0   :  { %v4719_v20 = vpop.eup %4718  ;;  %4738 = vtanh.f32 %v2044_v25  ;;  %v2171_v25 = vmul.f32 %v6074_v27, %v2165_v33 }
 0x9b1   :  { %v4721_v35 = vpop.eup %4720  ;;  %v2111_v48 = vadd.f32 1.0, %v4719_v20  ;;  %4740 = vtanh.f32 %v2045_v37 }
 0x9b2   :  { %v4723_v60 = vpop.eup %4722  ;;  %4742 = vpow2.f32 %v3550_v4 }
 0x9b3   :  { %v4725_v31 = vpop.eup %4724  ;;  %4744 = vrcp.f32 %v2111_v48  ;;  %v2172_v53 = vmul.f32 %v4723_v60, %v4721_v35 }
 0x9b4   :  { %v4727_v47 = vpop.eup %4726  ;;  %4746 = vpow2.f32 %v3551_v10 }
 0x9b5   :  { %v4729_v38 = vpop.eup %4728  ;;  %v2178_v16 = vadd.f32 %v2172_v53, %v2166_v51  ;;  %4748 = vpow2.f32 %v3552_v52 }
 0x9b6   :  { %v4731_v49 = vpop.eup %4730  ;;  %4750 = vpow2.f32 %v3553_v21 }
 0x9b7   :  { %v4733_v15 = vpop.eup %4732  ;;  %v2173_v2 = vmul.f32 %v4731_v49, %v4725_v31  ;;  %v2196_v50 = vmul.f32 %v2178_v16, %v5061_v41  ;;  %4752 = vpow2.f32 %v3554_v40 }
 0x9b8   :  { %v4735_v13 = vpop.eup %4734  ;;  %v2174_v1 = vmul.f32 %v4733_v15, %v4727_v47  ;;  %4754 = vpow2.f32 %v3555_v5 }
 0x9b9   :  { %v4737_v55 = vpop.eup %4736  ;;  %v2179_v34 = vadd.f32 %v2173_v2, %v2167_v0  ;;  %v2175_v29 = vmul.f32 %v4735_v13, %v4729_v38  ;;  %2202 = vst [vmem:[#allocation8] sm:$0xff] %v2196_v50  ;;  %4756 = vtanh.f32 %v2178_v16 }
 0x9ba   :  { %v4739_v23 = vpop.eup %4738  ;;  %v2180_v17 = vadd.f32 %v2174_v1, %v2168_v28 }
 0x9bb   :  { %v4741_v56 = vpop.eup %4740  ;;  %v2181_v14 = vadd.f32 %v2175_v29, %v2169_v44  ;;  %v2176_v63 = vmul.f32 %v4739_v23, %v4737_v55  ;;  %v2197_v58 = vmul.f32 %v2179_v34, %v5065_v42  ;;  %4758 = vtanh.f32 %v2179_v34 }
 0x9bc   :  { %v4743_v19 = vpop.eup %4742  ;;  %v2198_v7 = vmul.f32 %v2180_v17, %v5069_v43  ;;  %4760 = vtanh.f32 %v2180_v17 }
 0x9bd   :  { %v4745_v62 = vpop.eup %4744  ;;  %v2112_v59 = vadd.f32 1.0, %v4743_v19  ;;  %v2182_v12 = vadd.f32 %v2176_v63, %v2170_v46  ;;  %v2199_v45 = vmul.f32 %v2181_v14, %v5061_v41  ;;  %2203 = vst [vmem:[#allocation8 + $0x8] sm:$0xff] %v2197_v58 }
 0x9be   :  { %v4747_v54 = vpop.eup %4746  ;;  %v2177_v30 = vmul.f32 %v4745_v62, %v4741_v56  ;;  %2204 = vst [vmem:[#allocation8 + $0x10] sm:$0xff] %v2198_v7 }
 0x9bf   :  { %v4749_v26 = vpop.eup %4748  ;;  %4762 = vrcp.f32 %v2112_v59  ;;  %v2113_v61 = vadd.f32 1.0, %v4747_v54  ;;  %v2200_v37 = vmul.f32 %v2182_v12, %v5065_v42  ;;  %2205 = vst [vmem:[#allocation8 + $0x18] sm:$0xff] %v2199_v45 }
 0x9c0   :  { %v4751_v22 = vpop.eup %4750  ;;  %v2114_v18 = vadd.f32 1.0, %v4749_v26  ;;  %4764 = vtanh.f32 %v2181_v14  ;;  %v2183_v4 = vadd.f32 %v2177_v30, %v2171_v25  ;;  %v4659_v25 = vld [vmem:[%s6753_s9 + $0x4] ss:$8 sps:$4 sm:$0xff]  }
 0x9c1   :  { %4766 = vrcp.f32 %v2113_v61  ;;  %v2115_v32 = vadd.f32 1.0, %v4751_v22  ;;  %2206 = vst [vmem:[#allocation8 + $0x20] sm:$0xff] %v2200_v37  ;;  %v4753_v20 = vpop.eup %4752  ;;  %3558 = vmatprep.mubr.msk.bf16.mxu1 %vm721_vm13, %v4659_v25  ;;  %3559 = vmatprep.mubr.msk.bf16.mxu0 %vm721_vm13, %v4659_v25 }
 0x9c2   :  { %4768 = vrcp.f32 %v2114_v18  ;;  %v2201_v9 = vmul.f32 %v2183_v4, %v5069_v43  ;;  %v4755_v27 = vpop.eup %4754  ;;  %v2116_v10 = vadd.f32 1.0, %v4753_v20 }
 0x9c3   :  { %4770 = vrcp.f32 %v2115_v32  ;;  %v2117_v6 = vadd.f32 1.0, %v4755_v27  ;;  %v4757_v35 = vpop.eup %4756 }
 0x9c4   :  { %4772 = vtanh.f32 %v2183_v4  ;;  %2207 = vst [vmem:[#allocation8 + $0x28] sm:$0xff] %v2201_v9 }
 0x9c5   :  { %4774 = vtanh.f32 %v2182_v12  ;;  %v4759_v48 = vpop.eup %4758 }
 0x9c6   :  { %4776 = vrcp.f32 %v2117_v6  ;;  %v4761_v52 = vpop.eup %4760 }
 0x9c7   :  { %4778 = vrcp.f32 %v2116_v10 }
 0x9c9   :  { %v4763_v8 = vpop.eup %4762 }
 0x9ca   :  { %v4765_v60 = vpop.eup %4764  ;;  %v2190_v21 = vmul.f32 %v4763_v8, %v4757_v35 }
 0x9cb   :  { %v4767_v31 = vpop.eup %4766 }
 0x9cc   :  { %v4769_v51 = vpop.eup %4768  ;;  %v2208_v53 = vmul.f32 %v2190_v21, %v5061_v41  ;;  %v2191_v47 = vmul.f32 %v4767_v31, %v4759_v48 }
 0x9cd   :  { %v4771_v39 = vpop.eup %4770  ;;  %v2192_v16 = vmul.f32 %v4769_v51, %v4761_v52 }
 0x9ce   :  { %v4773_v40 = vpop.eup %4772  ;;  %2228 = vrot.lane.b32.xlu0 %v2208_v53, %s4861_s1  ;;  %v2209_v38 = vmul.f32 %v2191_v47, %v5065_v42  ;;  %v2193_v57 = vmul.f32 %v4771_v39, %v4765_v60 }
 0x9cf   :  { %v4775_v5 = vpop.eup %4774  ;;  %v2210_v2 = vmul.f32 %v2192_v16, %v5069_v43 }
 0x9d0   :  { %v4777_v49 = vpop.eup %4776  ;;  %2230 = vrot.lane.b32.xlu1 %v2209_v38, %s4861_s1  ;;  %v2211_v11 = vmul.f32 %v2193_v57, %v5061_v41 }
 0x9d1   :  { %v4779_v15 = vpop.eup %4778  ;;  %v2195_v0 = vmul.f32 %v4777_v49, %v4773_v40 }
 0x9d2   :  { %2234 = vrot.lane.b32.xlu0 %v2211_v11, %s4861_s1  ;;  %v2194_v50 = vmul.f32 %v4779_v15, %v4775_v5 }
 0x9d3   :  { %v2213_v13 = vmul.f32 %v2195_v0, %v5069_v43 }
 0x9d4   :  { %2232 = vrot.lane.b32.xlu1 %v2210_v2, %s4861_s1  ;;  %v2212_v28 = vmul.f32 %v2194_v50, %v5065_v42 }
 0x9d6   :  { %2238 = vrot.lane.b32.xlu0 %v2213_v13, %s4861_s1 }
 0x9d8   :  { %2236 = vrot.lane.b32.xlu1 %v2212_v28, %s4861_s1 }
 0xa40   :  { %v2229_v1 = vpop.permute.xlu0 %2228 }
 0xa41   :  { %2252 = vst.msk [vmem:[#allocation9] sm:$0xff] %vm434_vm11, %v2229_v1 }
 0xa42   :  { %v2231_v3 = vpop.permute.xlu1 %2230 }
 0xa43   :  { %v2240_v55 = vsel %vm421_vm12, %v2229_v1, %v2231_v3 }
 0xa44   :  { %2253 = vst [vmem:[#allocation9 + $0x8] sm:$0xff] %v2240_v55  ;;  %v2235_v34 = vpop.permute.xlu0 %2234 }
 0xa45   :  { %2256 = vst.msk [vmem:[#allocation9 + $0x20] sm:$0xff] %vm434_vm11, %v2235_v34 }
 0xa46   :  { %v2233_v44 = vpop.permute.xlu1 %2232 }
 0xa47   :  { %v2241_v29 = vsel %vm421_vm12, %v2231_v3, %v2233_v44  ;;  %2255 = vst.msk [vmem:[#allocation9 + $0x18] sm:$0xff] %vm421_vm12, %v2233_v44 }
 0xa48   :  { %2254 = vst [vmem:[#allocation9 + $0x10] sm:$0xff] %v2241_v29  ;;  %v2239_v23 = vpop.permute.xlu0 %2238  ;;  %v4235_v17 = vpack.i.bf16 %v2241_v29, %v2240_v55  ;;  %v2260_v58 = vld [vmem:[#allocation9] sm:$0xff] }
 0xa49   :  { %2259 = vst.msk [vmem:[#allocation9 + $0x38] sm:$0xff] %vm421_vm12, %v2239_v23 }
 0xa4a   :  { %v2237_v56 = vpop.permute.xlu1 %2236  ;;  %4236 = vrot.lane.b32.xlu1 %v4235_v17, %s4851_s16 }
 0xa4b   :  { %v2242_v14 = vsel %vm421_vm12, %v2235_v34, %v2237_v56  ;;  %v2243_v46 = vsel %vm421_vm12, %v2237_v56, %v2239_v23 }
 0xa4c   :  { %2257 = vst [vmem:[#allocation9 + $0x28] sm:$0xff] %v2242_v14  ;;  %2258 = vst [vmem:[#allocation9 + $0x30] sm:$0xff] %v2243_v46  ;;  %v2501_v63 = vpack.c.bf16 %v2242_v14, %v2240_v55  ;;  %v2502_v33 = vpack.c.bf16 %v2243_v46, %v2241_v29  ;;  %v2264_v19 = vld [vmem:[#allocation9 + $0x20] sm:$0xff]  ;;  %v4350_v54 = vpack.i.bf16 %v2243_v46, %v2242_v14 }
 0xa4d   :  { %v2500_v7 = vpack.c.bf16 %v2264_v19, %v2260_v58  ;;  %v4275_v45 = vpack.i.bf16 %v2264_v19, %v2260_v58 }
 0xa4e   :  { %4241 = vrot.lane.b32.xlu1 %v4235_v17, %s4850_s30  ;;  %2541 = vmatprep.subr.bf16.mxu1 %v2501_v63  ;;  %v2263_v62 = vld [vmem:[#allocation9 + $0x18] sm:$0xff] }
 0xa4f   :  { %2585 = vmatpush1.bf16.msra.mxu0 %v2502_v33  ;;  %2542 = vmatpush1.bf16.msra.mxu1 %v2500_v7 }
 0xa50   :  { %v2267_v59 = vld [vmem:[#allocation9 + $0x38] sm:$0xff]  ;;  %2586 = vmatprep.subr.bf16.mxu0 %v6776_v24 }
 0xa51   :  { %v4280_v12 = vpack.i.bf16 %v2267_v59, %v2263_v62 }
 0xa52   :  { %4246 = vrot.lane.b32.xlu1 %v4235_v17, %s4853_s3 }
 0xa53   :  { %4281 = vrot.lane.b32.xlu0 %v4280_v12, %s4851_s16 }
 0xa56   :  { %4251 = vrot.lane.b32.xlu1 %v4235_v17, %s4855_s18 }
 0xa57   :  { %4291 = vrot.lane.b32.xlu0 %v4280_v12, %s4850_s30 }
 0xa5a   :  { %4256 = vrot.lane.b32.xlu1 %v4235_v17, %s4854_s17 }
 0xa5b   :  { %4301 = vrot.lane.b32.xlu0 %v4280_v12, %s4853_s3 }
 0xa5e   :  { %4261 = vrot.lane.b32.xlu1 %v4235_v17, %s4857_s20 }
 0xa5f   :  { %4311 = vrot.lane.b32.xlu0 %v4280_v12, %s4855_s18 }
 0xa62   :  { %4266 = vrot.lane.b32.xlu1 %v4235_v17, %s4856_s19 }
 0xa63   :  { %4321 = vrot.lane.b32.xlu0 %v4280_v12, %s4854_s17 }
 0xa66   :  { %4271 = vrot.lane.b32.xlu1 %v4235_v17, %s4860_s21 }
 0xa67   :  { %4331 = vrot.lane.b32.xlu0 %v4280_v12, %s4857_s20 }
 0xa6a   :  { %4276 = vrot.lane.b32.xlu1 %v4275_v45, %s4851_s16 }
 0xa6b   :  { %4341 = vrot.lane.b32.xlu0 %v4280_v12, %s4856_s19 }
 0xa6e   :  { %4286 = vrot.lane.b32.xlu1 %v4275_v45, %s4850_s30 }
 0xa6f   :  { %4351 = vrot.lane.b32.xlu0 %v4350_v54, %s4851_s16 }
 0xa72   :  { %4296 = vrot.lane.b32.xlu1 %v4275_v45, %s4853_s3 }
 0xa73   :  { %4356 = vrot.lane.b32.xlu0 %v4350_v54, %s4850_s30 }
 0xa76   :  { %4306 = vrot.lane.b32.xlu1 %v4275_v45, %s4855_s18 }
 0xa77   :  { %4361 = vrot.lane.b32.xlu0 %v4350_v54, %s4853_s3 }
 0xa7a   :  { %4316 = vrot.lane.b32.xlu1 %v4275_v45, %s4854_s17 }
 0xa7b   :  { %4366 = vrot.lane.b32.xlu0 %v4350_v54, %s4855_s18 }
 0xa7e   :  { %4326 = vrot.lane.b32.xlu1 %v4275_v45, %s4857_s20 }
 0xa7f   :  { %4371 = vrot.lane.b32.xlu0 %v4350_v54, %s4854_s17 }
 0xa82   :  { %4336 = vrot.lane.b32.xlu1 %v4275_v45, %s4856_s19 }
 0xa83   :  { %4376 = vrot.lane.b32.xlu0 %v4350_v54, %s4857_s20 }
 0xa86   :  { %4346 = vrot.lane.b32.xlu1 %v4275_v45, %s4860_s21 }
 0xa87   :  { %4381 = vrot.lane.b32.xlu0 %v4350_v54, %s4856_s19 }
 0xa8b   :  { %4386 = vrot.lane.b32.xlu0 %v4350_v54, %s4860_s21 }
 0xa8f   :  { %4391 = vrot.lane.b32.xlu0 %v4280_v12, %s4860_s21 }
 0xabc   :  { %v4237_v30 = vpop.permute.xlu1 %4236 }
 0xabd   :  { %v4239_v48 = vunpack.i.h.bf16 %v4237_v30  ;;  %v4238_v52 = vunpack.i.l.bf16 %v4237_v30 }
 0xabf   :  { %v2293_v47 = vsel %vm81_vm1, %v4238_v52, %v4239_v48 }
 0xac0   :  { %v4242_v26 = vpop.permute.xlu1 %4241 }
 0xac1   :  { %v4244_v51 = vunpack.i.h.bf16 %v4242_v26  ;;  %v4243_v40 = vunpack.i.l.bf16 %v4242_v26 }
 0xac3   :  { %v2321_v56 = vsel %vm96_vm2, %v4243_v40, %v4244_v51 }
 0xac4   :  { %v6163_v61 = vpop.permute.xlu1 %4246 }
 0xac5   :  { %v4282_v37 = vpop.permute.xlu0 %4281  ;;  %v4249_v38 = vunpack.i.h.bf16 %v6163_v61  ;;  %v4248_v16 = vunpack.i.l.bf16 %v6163_v61 }
 0xac6   :  { %v4283_v21 = vunpack.i.l.bf16 %v4282_v37  ;;  %v4284_v39 = vunpack.i.h.bf16 %v4282_v37 }
 0xac7   :  { %v2349_v7 = vsel %vm111_vm3, %v4248_v16, %v4249_v38 }
 0xac8   :  { %v6165_v22 = vpop.permute.xlu1 %4251  ;;  %v2294_v5 = vsel %vm81_vm1, %v4239_v48, %v4283_v21 }
 0xac9   :  { %v4292_v18 = vpop.permute.xlu0 %4291  ;;  %v4254_v2 = vunpack.i.h.bf16 %v6165_v22  ;;  %v4253_v50 = vunpack.i.l.bf16 %v6165_v22 }
 0xaca   :  { %v4293_v0 = vunpack.i.l.bf16 %v4292_v18  ;;  %v4294_v14 = vunpack.i.h.bf16 %v4292_v18 }
 0xacb   :  { %v6202_v62 = vsel %vm126_vm4, %v4253_v50, %v4254_v2 }
 0xacc   :  { %v6167_v4 = vpop.permute.xlu1 %4256  ;;  %v2322_v58 = vsel %vm96_vm2, %v4244_v51, %v4293_v0 }
 0xacd   :  { %v6169_v32 = vpop.permute.xlu0 %4301 }
 0xace   :  { %v4303_v19 = vunpack.i.l.bf16 %v6169_v32  ;;  %v4304_v30 = vunpack.i.h.bf16 %v6169_v32 }
 0xad0   :  { %v6171_v20 = vpop.permute.xlu1 %4261 }
 0xad1   :  { %v6173_v9 = vpop.permute.xlu0 %4311 }
 0xad2   :  { %v4313_v51 = vunpack.i.l.bf16 %v6173_v9 }
 0xad4   :  { %v6175_v27 = vpop.permute.xlu1 %4266 }
 0xad5   :  { %v6177_v10 = vpop.permute.xlu0 %4321 }
 0xad8   :  { %v6179_v6 = vpop.permute.xlu1 %4271 }
 0xad9   :  { %v6181_v35 = vpop.permute.xlu0 %4331 }
 0xadc   :  { %v4277_v8 = vpop.permute.xlu1 %4276 }
 0xadd   :  { %v6183_v60 = vpop.permute.xlu0 %4341  ;;  %v4278_v31 = vunpack.i.l.bf16 %v4277_v8  ;;  %v4279_v15 = vunpack.i.h.bf16 %v4277_v8 }
 0xadf   :  { %v2292_v13 = vsel %vm81_vm1, %v4278_v31, %v4238_v52  ;;  %v2350_v31 = vsel %vm111_vm3, %v4249_v38, %v4303_v19  ;;  %v4314_v38 = vunpack.i.h.bf16 %v6173_v9  ;;  %v4333_v19 = vunpack.i.l.bf16 %v6181_v35 }
 0xae0   :  { %v4287_v53 = vpop.permute.xlu1 %4286 }
 0xae1   :  { %v4352_v57 = vpop.permute.xlu0 %4351  ;;  %v4288_v3 = vunpack.i.l.bf16 %v4287_v53  ;;  %v4289_v33 = vunpack.i.h.bf16 %v4287_v53  ;;  %v4259_v53 = vunpack.i.h.bf16 %v6167_v4 }
 0xae2   :  { %v4354_v49 = vunpack.i.h.bf16 %v4352_v57  ;;  %v4353_v11 = vunpack.i.l.bf16 %v4352_v57 }
 0xae3   :  { %v2320_v45 = vsel %vm96_vm2, %v4288_v3, %v4243_v40  ;;  %v2378_v3 = vsel %vm126_vm4, %v4254_v2, %v4313_v51  ;;  %v4268_v51 = vunpack.i.l.bf16 %v6175_v27 }
 0xae4   :  { %v2297_v28 = vsel %vm81_vm1, %v4354_v49, %v4284_v39  ;;  %v2295_v1 = vsel %vm81_vm1, %v4279_v15, %v4353_v11  ;;  %v2296_v55 = vsel %vm81_vm1, %v4353_v11, %v4354_v49  ;;  %v4297_v34 = vpop.permute.xlu1 %4296 }
 0xae5   :  { %v2505_v44 = vpack.c.bf16 %v2297_v28, %v2294_v5  ;;  %v2503_v29 = vpack.c.bf16 %v2295_v1, %v2292_v13  ;;  %v4357_v23 = vpop.permute.xlu0 %4356  ;;  %v2504_v17 = vpack.c.bf16 %v2296_v55, %v2293_v47  ;;  %v4298_v54 = vunpack.i.l.bf16 %v4297_v34 }
 0xae6   :  { %v4359_v46 = vunpack.i.h.bf16 %v4357_v23  ;;  %v4358_v63 = vunpack.i.l.bf16 %v4357_v23  ;;  %v4299_v8 = vunpack.i.h.bf16 %v4297_v34  ;;  %v4258_v47 = vunpack.i.l.bf16 %v6167_v4 }
 0xae7   :  { %2543 = vmatprep.subr.bf16.mxu1 %v2504_v17  ;;  %2587 = vmatpush1.bf16.msra.mxu0 %v2505_v44  ;;  %v2348_v40 = vsel %vm111_vm3, %v4298_v54, %v4248_v16  ;;  %v4323_v16 = vunpack.i.l.bf16 %v6177_v10  ;;  %v4264_v55 = vunpack.i.h.bf16 %v6171_v20  ;;  %v4263_v34 = vunpack.i.l.bf16 %v6171_v20 }
 0xae8   :  { %v2325_v59 = vsel %vm96_vm2, %v4359_v46, %v4294_v14  ;;  %v2323_v12 = vsel %vm96_vm2, %v4289_v33, %v4358_v63  ;;  %2544 = vmatpush1.bf16.msra.mxu1 %v2503_v29  ;;  %2588 = vmatprep.subr.bf16.mxu0 %v6776_v24  ;;  %v4307_v25 = vpop.permute.xlu1 %4306  ;;  %v2324_v18 = vsel %vm96_vm2, %v4358_v63, %v4359_v46  ;;  %v4324_v17 = vunpack.i.h.bf16 %v6177_v10 }
 0xae9   :  { %v2508_v26 = vpack.c.bf16 %v2325_v59, %v2322_v58  ;;  %v2506_v61 = vpack.c.bf16 %v2323_v12, %v2320_v45  ;;  %v4362_v37 = vpop.permute.xlu0 %4361  ;;  %v2507_v21 = vpack.c.bf16 %v2324_v18, %v2321_v56  ;;  %v4308_v57 = vunpack.i.l.bf16 %v4307_v25 }
 0xaea   :  { %v4364_v48 = vunpack.i.h.bf16 %v4362_v37  ;;  %v4363_v52 = vunpack.i.l.bf16 %v4362_v37  ;;  %v4309_v28 = vunpack.i.h.bf16 %v4307_v25  ;;  %v2433_v10 = vsel %vm156_vm6, %v4263_v34, %v4264_v55 }
 0xaeb   :  { %2589 = vmatpush1.bf16.msra.mxu0 %v2508_v26  ;;  %2545 = vmatprep.subr.bf16.mxu1 %v2507_v21  ;;  %v2376_v29 = vsel %vm126_vm4, %v4308_v57, %v4253_v50  ;;  %v2406_v50 = vsel %vm141_vm5, %v4259_v53, %v4323_v16  ;;  %v4334_v25 = vunpack.i.h.bf16 %v6181_v35  ;;  %v2434_v21 = vsel %vm156_vm6, %v4264_v55, %v4333_v19 }
 0xaec   :  { %v2353_v32 = vsel %vm111_vm3, %v4364_v48, %v4304_v30  ;;  %v2351_v39 = vsel %vm111_vm3, %v4299_v8, %v4363_v52  ;;  %2590 = vmatprep.subr.bf16.mxu0 %v6776_v24  ;;  %v4317_v5 = vpop.permute.xlu1 %4316  ;;  %2546 = vmatpush1.bf16.msra.mxu1 %v2506_v61  ;;  %v2352_v4 = vsel %vm111_vm3, %v4363_v52, %v4364_v48 }
 0xaed   :  { %v2511_v49 = vpack.c.bf16 %v2353_v32, %v2350_v31  ;;  %v2509_v11 = vpack.c.bf16 %v2351_v39, %v2348_v40  ;;  %v4367_v15 = vpop.permute.xlu0 %4366  ;;  %v2510_v1 = vpack.c.bf16 %v2352_v4, %v2349_v7  ;;  %v4318_v23 = vunpack.i.l.bf16 %v4317_v5 }
 0xaee   :  { %v4369_v0 = vunpack.i.h.bf16 %v4367_v15  ;;  %v4368_v13 = vunpack.i.l.bf16 %v4367_v15  ;;  %v4319_v58 = vunpack.i.h.bf16 %v4317_v5  ;;  %v2405_v7 = vsel %vm141_vm5, %v4258_v47, %v4259_v53 }
 0xaef   :  { %2591 = vmatpush1.bf16.msra.mxu0 %v2511_v49  ;;  %2547 = vmatprep.subr.bf16.mxu1 %v2510_v1  ;;  %v2404_v45 = vsel %vm141_vm5, %v4318_v23, %v4258_v47  ;;  %v4269_v31 = vunpack.i.h.bf16 %v6175_v27  ;;  %v4343_v53 = vunpack.i.l.bf16 %v6183_v60  ;;  %v4344_v40 = vunpack.i.h.bf16 %v6183_v60 }
 0xaf0   :  { %v2381_v9 = vsel %vm126_vm4, %v4369_v0, %v4314_v38  ;;  %v2379_v44 = vsel %vm126_vm4, %v4309_v28, %v4368_v13  ;;  %2592 = vmatprep.subr.bf16.mxu0 %v6776_v24  ;;  %v4327_v2 = vpop.permute.xlu1 %4326  ;;  %2548 = vmatpush1.bf16.msra.mxu1 %v2509_v11  ;;  %v2380_v46 = vsel %vm126_vm4, %v4368_v13, %v4369_v0  ;;  %v4274_v28 = vunpack.i.h.bf16 %v6179_v6 }
 0xaf1   :  { %v2514_v56 = vpack.c.bf16 %v2381_v9, %v2378_v3  ;;  %v2512_v14 = vpack.c.bf16 %v2379_v44, %v2376_v29  ;;  %v4372_v20 = vpop.permute.xlu0 %4371  ;;  %v2513_v22 = vpack.c.bf16 %v2380_v46, %v6202_v62  ;;  %v4328_v54 = vunpack.i.l.bf16 %v4327_v2 }
 0xaf2   :  { %v4374_v63 = vunpack.i.h.bf16 %v4372_v20  ;;  %v4373_v33 = vunpack.i.l.bf16 %v4372_v20  ;;  %v4329_v52 = vunpack.i.h.bf16 %v4327_v2  ;;  %v2462_v13 = vsel %vm171_vm7, %v4269_v31, %v4343_v53 }
 0xaf3   :  { %2593 = vmatpush1.bf16.msra.mxu0 %v2514_v56  ;;  %2549 = vmatprep.subr.bf16.mxu1 %v2513_v22  ;;  %v2432_v32 = vsel %vm156_vm6, %v4328_v54, %v4263_v34  ;;  %v4273_v1 = vunpack.i.l.bf16 %v6179_v6  ;;  %v2461_v29 = vsel %vm171_vm7, %v4268_v51, %v4269_v31 }
 0xaf4   :  { %v2409_v59 = vsel %vm141_vm5, %v4374_v63, %v4324_v17  ;;  %v2407_v12 = vsel %vm141_vm5, %v4319_v58, %v4373_v33  ;;  %2594 = vmatprep.subr.bf16.mxu0 %v6776_v24  ;;  %v4337_v62 = vpop.permute.xlu1 %4336  ;;  %2550 = vmatpush1.bf16.msra.mxu1 %v2512_v14  ;;  %v2408_v37 = vsel %vm141_vm5, %v4373_v33, %v4374_v63 }
 0xaf5   :  { %v2517_v30 = vpack.c.bf16 %v2409_v59, %v2406_v50  ;;  %v2515_v26 = vpack.c.bf16 %v2407_v12, %v2404_v45  ;;  %v4377_v61 = vpop.permute.xlu0 %4376  ;;  %v2516_v8 = vpack.c.bf16 %v2408_v37, %v2405_v7  ;;  %v4338_v39 = vunpack.i.l.bf16 %v4337_v62  ;;  %v4657_v59 = vld [vmem:[%s6753_s9] ss:$8 sps:$4 sm:$0xff]   ;;  %s4862_s9 = smov 100  }
 0xaf6   :  { %v4379_v18 = vunpack.i.h.bf16 %v4377_v61  ;;  %v4378_v48 = vunpack.i.l.bf16 %v4377_v61  ;;  %v4339_v4 = vunpack.i.h.bf16 %v4337_v62  ;;  %v2489_v14 = vsel %vm186_vm8, %v4273_v1, %v4274_v28 }
 0xaf7   :  { %2595 = vmatpush1.bf16.msra.mxu0 %v2517_v30  ;;  %2551 = vmatprep.subr.bf16.mxu1 %v2516_v8  ;;  %v2460_v16 = vsel %vm171_vm7, %v4338_v39, %v4268_v51 }
 0xaf8   :  { %v2437_v35 = vsel %vm156_vm6, %v4379_v18, %v4334_v25  ;;  %v2435_v47 = vsel %vm156_vm6, %v4329_v52, %v4378_v48  ;;  %2596 = vmatprep.subr.bf16.mxu0 %v6776_v24  ;;  %2552 = vmatpush1.bf16.msra.mxu1 %v2515_v26  ;;  %v2436_v27 = vsel %vm156_vm6, %v4378_v48, %v4379_v18  ;;  %v4347_v49 = vpop.permute.xlu1 %4346 }
 0xaf9   :  { %v2520_v57 = vpack.c.bf16 %v2437_v35, %v2434_v21  ;;  %v2518_v5 = vpack.c.bf16 %v2435_v47, %v2432_v32  ;;  %v4382_v38 = vpop.permute.xlu0 %4381  ;;  %v2519_v0 = vpack.c.bf16 %v2436_v27, %v2433_v10  ;;  %v4348_v55 = vunpack.i.l.bf16 %v4347_v49 }
 0xafa   :  { %v4384_v11 = vunpack.i.h.bf16 %v4382_v38  ;;  %v4383_v15 = vunpack.i.l.bf16 %v4382_v38  ;;  %v4349_v17 = vunpack.i.h.bf16 %v4347_v49 }
 0xafb   :  { %2597 = vmatpush1.bf16.msra.mxu0 %v2520_v57  ;;  %2553 = vmatprep.subr.bf16.mxu1 %v2519_v0  ;;  %v2488_v46 = vsel %vm186_vm8, %v4348_v55, %v4273_v1 }
 0xafc   :  { %v2465_v60 = vsel %vm171_vm7, %v4384_v11, %v4344_v40  ;;  %v2463_v3 = vsel %vm171_vm7, %v4339_v4, %v4383_v15  ;;  %2598 = vmatprep.subr.bf16.mxu0 %v6776_v24  ;;  %2554 = vmatpush1.bf16.msra.mxu1 %v2518_v5  ;;  %v2464_v23 = vsel %vm171_vm7, %v4383_v15, %v4384_v11 }
 0xafd   :  { %v2523_v34 = vpack.c.bf16 %v2465_v60, %v2462_v13  ;;  %v2521_v9 = vpack.c.bf16 %v2463_v3, %v2460_v16  ;;  %v4387_v44 = vpop.permute.xlu0 %4386  ;;  %v2522_v56 = vpack.c.bf16 %v2464_v23, %v2461_v29 }
 0xafe   :  { %v4389_v6 = vunpack.i.h.bf16 %v4387_v44  ;;  %v4388_v2 = vunpack.i.l.bf16 %v4387_v44 }
 0xaff   :  { %2599 = vmatpush1.bf16.msra.mxu0 %v2523_v34  ;;  %2555 = vmatprep.subr.bf16.mxu1 %v2522_v56 }
 0xb00   :  { %v2491_v20 = vsel %vm186_vm8, %v4349_v17, %v4388_v2  ;;  %v2492_v63 = vsel %vm186_vm8, %v4388_v2, %v4389_v6  ;;  %2600 = vmatprep.subr.bf16.mxu0 %v6776_v24  ;;  %2556 = vmatpush1.bf16.msra.mxu1 %v2521_v9 }
 0xb01   :  { %v2524_v33 = vpack.c.bf16 %v2491_v20, %v2488_v46  ;;  %v4392_v58 = vpop.permute.xlu0 %4391  ;;  %v2525_v22 = vpack.c.bf16 %v2492_v63, %v2489_v14 }
 0xb02   :  { %v4394_v50 = vunpack.i.h.bf16 %v4392_v58  ;;  %v4393_v19 = vunpack.i.l.bf16 %v4392_v58 }
 0xb03   :  { %2557 = vmatprep.subr.bf16.mxu1 %v2525_v22 }
 0xb04   :  { %v2490_v7 = vsel %vm186_vm8, %v4274_v28, %v4393_v19  ;;  %v2493_v10 = vsel %vm186_vm8, %v4389_v6, %v4394_v50  ;;  %2558 = vmatpush1.bf16.msra.mxu1 %v2524_v33 }
 0xb05   :  { %v2526_v12 = vpack.c.bf16 %v2493_v10, %v2490_v7 }
 0xb07   :  { %2601 = vmatpush1.bf16.msra.mxu0 %v2526_v12  ;;  %2574 = vmatmul.mubr.bf16.vlgmr.msra.gmra.mrb[32].mxu1 %v4657_v59 }
 0xb0a   :  { %2617 = vmatmul.mubr.bf16.vlgmr.msra.gmra.mrb[24].mxu0 %v4657_v59 }
 0xbda   :  { %v2575_v45 = vpop.f32.mrb[32].mxu1 }
 0xbdb   :  { %v2625_v54 = vmul.f32 %v2575_v45, %v5061_v41  ;;  %v2577_v62 = vpop.f32.mrb[33].mxu1 }
 0xbdc   :  { %v2626_v25 = vmul.f32 %v2577_v62, %v5065_v42  ;;  %v2579_v30 = vpop.f32.mrb[34].mxu1 }
 0xbdd   :  { %v2618_v26 = vpop.f32.mrb[24].mxu0  ;;  %v2628_v61 = vmul.f32 %v2579_v30, %v5061_v41  ;;  %v2581_v37 = vpop.f32.mrb[35].mxu1 }
 0xbde   :  { %v2627_v18 = vmul.f32 %v2618_v26, %v5069_v43  ;;  %v2620_v48 = vpop.f32.mrb[25].mxu0  ;;  %v2631_v52 = vadd.f32 %v2626_v25, %v2625_v54  ;;  %v2629_v8 = vmul.f32 %v2581_v37, %v5065_v42 }
 0xbdf   :  { %v2621_v21 = vpop.f32.mrb[26].mxu0 }
 0xbe0   :  { %v2630_v31 = vmul.f32 %v2621_v21, %v5069_v43  ;;  %v2623_v51 = vpop.f32.mrb[27].mxu0  ;;  %v2635_v53 = vadd.f32 %v2629_v8, %v2628_v61  ;;  %v2632_v35 = vadd.f32 %v2631_v52, %v2627_v18 }
 0xbe2   :  { %v2636_v47 = vadd.f32 %v2635_v53, %v2630_v31  ;;  %2633 = vadd.xlane.f32.xlu1 %v2632_v35 }
 0xbe4   :  { %2637 = vadd.xlane.f32.xlu0 %v2636_v47 }
 0xc6f   :  { %v2634_v32 = vpop.xlane.xlu1 %2633 }
 0xc70   :  { %v2639_v39 = vmul.f32 0.00390625, %v2634_v32 }
 0xc71   :  { %v2638_v40 = vpop.xlane.xlu0 %2637 }
 0xc72   :  { %v2641_v57 = vsub.f32 %v2575_v45, %v2639_v39  ;;  %v2642_v5 = vsub.f32 %v2577_v62, %v2639_v39  ;;  %v2643_v38 = vsub.f32 %v2618_v26, %v2639_v39  ;;  %v2640_v27 = vmul.f32 0.00390625, %v2638_v40 }
 0xc74   :  { %v2647_v49 = vmul.f32 %v2641_v57, %v5061_v41  ;;  %v2648_v11 = vmul.f32 %v2642_v5, %v5065_v42  ;;  %v2644_v15 = vsub.f32 %v2579_v30, %v2640_v27  ;;  %v2645_v4 = vsub.f32 %v2581_v37, %v2640_v27 }
 0xc75   :  { %v2646_v0 = vsub.f32 %v2621_v21, %v2640_v27  ;;  %v2649_v13 = vmul.f32 %v2643_v38, %v5069_v43 }
 0xc76   :  { %v2653_v28 = vmul.f32 %v2647_v49, %v2647_v49  ;;  %v2654_v1 = vmul.f32 %v2648_v11, %v2648_v11  ;;  %v2650_v60 = vmul.f32 %v2644_v15, %v5061_v41  ;;  %v2651_v3 = vmul.f32 %v2645_v4, %v5065_v42 }
 0xc77   :  { %v2652_v16 = vmul.f32 %v2646_v0, %v5069_v43  ;;  %v2655_v9 = vmul.f32 %v2649_v13, %v2649_v13 }
 0xc78   :  { %v2656_v55 = vmul.f32 %v2650_v60, %v2650_v60  ;;  %v2657_v34 = vmul.f32 %v2651_v3, %v2651_v3  ;;  %v2659_v44 = vadd.f32 %v2654_v1, %v2653_v28  ;;  %v6333_v60 = vld.sshfl [vmem:[%s6754_s10] sm:$0x33 pattern:$0x76325410] }
 0xc79   :  { %v2658_v23 = vmul.f32 %v2652_v16, %v2652_v16  ;;  %v6338_v3 = vcombine.high %v6333_v60, %v6333_v60 }
 0xc7a   :  { %v2660_v29 = vadd.f32 %v2659_v44, %v2655_v9  ;;  %v2663_v6 = vadd.f32 %v2657_v34, %v2656_v55 }
 0xc7b   :  { %3561 = vmatprep.mubr.msk.bf16.mxu1 %vm721_vm13, %v6338_v3  ;;  %3562 = vmatprep.mubr.msk.bf16.mxu0 %vm721_vm13, %v6338_v3 }
 0xc7c   :  { %2661 = vadd.xlane.f32.xlu0 %v2660_v29  ;;  %v2664_v2 = vadd.f32 %v2663_v6, %v2658_v23 }
 0xc7e   :  { %2665 = vadd.xlane.f32.xlu1 %v2664_v2 }
 0xd09   :  { %v2662_v17 = vpop.xlane.xlu0 %2661 }
 0xd0a   :  { %v2667_v56 = vmul.f32 0.00390625, %v2662_v17 }
 0xd0b   :  { %v2666_v14 = vpop.xlane.xlu1 %2665 }
 0xd0c   :  { %v2669_v20 = vadd.f32 1e-05, %v2667_v56  ;;  %v2668_v46 = vmul.f32 0.00390625, %v2666_v14 }
 0xd0e   :  { %4780 = vrsqrt.f32 %v2669_v20  ;;  %v2670_v63 = vadd.f32 1e-05, %v2668_v46 }
 0xd10   :  { %4782 = vrsqrt.f32 %v2670_v63 }
 0xd18   :  { %v4781_v33 = vpop.eup %4780 }
 0xd19   :  { %v2674_v58 = vmul.f32 %v4781_v33, %v2642_v5  ;;  %v2673_v22 = vmul.f32 %v4781_v33, %v2641_v57  ;;  %v2675_v50 = vmul.f32 %v4781_v33, %v2643_v38 }
 0xd1a   :  { %v4783_v19 = vpop.eup %4782 }
 0xd1b   :  { %v2680_v7 = vmax.f32 %v2674_v58, 0.0  ;;  %v2679_v10 = vmax.f32 %v2673_v22, 0.0  ;;  %v2676_v59 = vmul.f32 %v4783_v19, %v2644_v15  ;;  %v2681_v12 = vmax.f32 %v2675_v50, 0.0 }
 0xd1c   :  { %v2677_v45 = vmul.f32 %v4783_v19, %v2645_v4  ;;  %v2678_v30 = vmul.f32 %v4783_v19, %v2646_v0  ;;  %v6314_v0 = vld [vmem:[#allocation4 + $0x20] sm:$0xff] }
 0xd1d   :  { %v2686_v54 = vmul.f32 %v2680_v7, %v5065_v42  ;;  %v2685_v62 = vmul.f32 %v2679_v10, %v5061_v41  ;;  %v2682_v25 = vmax.f32 %v2676_v59, 0.0  ;;  %v2687_v26 = vmul.f32 %v2681_v12, %v5069_v43 }
 0xd1e   :  { %v2683_v37 = vmax.f32 %v2677_v45, 0.0  ;;  %v2684_v18 = vmax.f32 %v2678_v30, 0.0  ;;  %v4525_v1 = vpack.i.bf16 %v6314_v0, %v6314_v0 }
 0xd1f   :  { %2711 = vrot.lane.b32.xlu1 %v2686_v54, %s4862_s9  ;;  %2709 = vrot.lane.b32.xlu0 %v2685_v62, %s4862_s9  ;;  %v2688_v61 = vmul.f32 %v2682_v25, %v5061_v41 }
 0xd20   :  { %v2689_v48 = vmul.f32 %v2683_v37, %v5065_v42  ;;  %v2690_v52 = vmul.f32 %v2684_v18, %v5069_v43 }
 0xd23   :  { %2713 = vrot.lane.b32.xlu1 %v2687_v26, %s4862_s9  ;;  %2715 = vrot.lane.b32.xlu0 %v2688_v61, %s4862_s9 }
 0xd27   :  { %2717 = vrot.lane.b32.xlu1 %v2689_v48, %s4862_s9  ;;  %2719 = vrot.lane.b32.xlu0 %v2690_v52, %s4862_s9 }
 0xd91   :  { %v2712_v8 = vpop.permute.xlu1 %2711  ;;  %v2710_v21 = vpop.permute.xlu0 %2709 }
 0xd92   :  { %v2722_v31 = vsel %vm2721_vm15, %v2710_v21, %v2712_v8  ;;  %2735 = vst.msk [vmem:[#allocation4] sm:$0xff] %vm2734_vm0, %v2710_v21 }
 0xd95   :  { %v2714_v51 = vpop.permute.xlu1 %2713  ;;  %v2716_v53 = vpop.permute.xlu0 %2715 }
 0xd96   :  { %v2723_v41 = vsel %vm2721_vm15, %v2712_v8, %v2714_v51  ;;  %2738 = vst.msk [vmem:[#allocation4 + $0x18] sm:$0xff] %vm2721_vm15, %v2714_v51 }
 0xd97   :  { %2739 = vst.msk [vmem:[#allocation4 + $0x30] sm:$0xff] %vm2734_vm0, %v2716_v53  ;;  %v4400_v35 = vpack.i.bf16 %v2723_v41, %v2722_v31 }
 0xd99   :  { %v2718_v42 = vpop.permute.xlu1 %2717  ;;  %v2720_v47 = vpop.permute.xlu0 %2719  ;;  %4401 = vrot.lane.b32.xlu0 %v4400_v35, %s4850_s30  ;;  %4396 = vrot.lane.b32.xlu1 %v4400_v35, %s4851_s16  ;;  %v2743_v40 = vld [vmem:[#allocation4] sm:$0xff] }
 0xd9a   :  { %v2724_v43 = vsel %vm2721_vm15, %v2716_v53, %v2718_v42  ;;  %v2725_v32 = vsel %vm2721_vm15, %v2718_v42, %v2720_v47  ;;  %2742 = vst.msk [vmem:[#allocation4 + $0x48] sm:$0xff] %vm2721_vm15, %v2720_v47 }
 0xd9b   :  { %v3120_v39 = vpack.c.bf16 %v2724_v43, %v2722_v31  ;;  %v3121_v11 = vpack.c.bf16 %v2725_v32, %v2723_v41  ;;  %v4470_v4 = vpack.i.bf16 %v2725_v32, %v2724_v43 }
 0xd9d   :  { %4411 = vrot.lane.b32.xlu0 %v4400_v35, %s4855_s18  ;;  %4406 = vrot.lane.b32.xlu1 %v4400_v35, %s4853_s3  ;;  %v2746_v38 = vld [vmem:[#allocation4 + $0x18] sm:$0xff] }
 0xd9e   :  { %v2749_v57 = vld [vmem:[#allocation4 + $0x30] sm:$0xff]  ;;  %3178 = vmatprep.subr.bf16.mxu1 %v3120_v39  ;;  %v4485_v13 = vpack.i.bf16 %v6314_v0, %v2746_v38 }
 0xd9f   :  { %v3119_v5 = vpack.c.bf16 %v2749_v57, %v2743_v40  ;;  %v4440_v15 = vpack.i.bf16 %v2749_v57, %v2743_v40 }
 0xda1   :  { %3179 = vmatpush1.bf16.msra.mxu1 %v3119_v5  ;;  %v2752_v27 = vld [vmem:[#allocation4 + $0x48] sm:$0xff]  ;;  %4421 = vrot.lane.b32.xlu0 %v4400_v35, %s4857_s20 }
 0xda2   :  { %4416 = vrot.lane.b32.xlu1 %v4400_v35, %s4854_s17  ;;  %v3122_v49 = vpack.c.bf16 %v2752_v27, %v2746_v38  ;;  %v4495_v28 = vpack.i.bf16 %v6314_v0, %v2752_v27 }
 0xda4   :  { %3219 = vmatprep.subr.bf16.mxu0 %v3122_v49 }
 0xda5   :  { %3220 = vmatpush1.bf16.msra.mxu0 %v3121_v11  ;;  %4431 = vrot.lane.b32.xlu0 %v4400_v35, %s4860_s21 }
 0xda6   :  { %4426 = vrot.lane.b32.xlu1 %v4400_v35, %s4856_s19 }
 0xda9   :  { %4441 = vrot.lane.b32.xlu0 %v4440_v15, %s4850_s30 }
 0xdaa   :  { %4436 = vrot.lane.b32.xlu1 %v4440_v15, %s4851_s16 }
 0xdad   :  { %4451 = vrot.lane.b32.xlu0 %v4440_v15, %s4855_s18 }
 0xdae   :  { %4446 = vrot.lane.b32.xlu1 %v4440_v15, %s4853_s3 }
 0xdb1   :  { %4461 = vrot.lane.b32.xlu0 %v4440_v15, %s4857_s20 }
 0xdb2   :  { %4456 = vrot.lane.b32.xlu1 %v4440_v15, %s4854_s17 }
 0xdb5   :  { %4471 = vrot.lane.b32.xlu0 %v4470_v4, %s4851_s16 }
 0xdb6   :  { %4466 = vrot.lane.b32.xlu1 %v4440_v15, %s4856_s19 }
 0xdb9   :  { %4476 = vrot.lane.b32.xlu0 %v4440_v15, %s4860_s21 }
 0xdba   :  { %4481 = vrot.lane.b32.xlu1 %v4470_v4, %s4850_s30 }
 0xdbd   :  { %4491 = vrot.lane.b32.xlu0 %v4470_v4, %s4853_s3 }
 0xdbe   :  { %4486 = vrot.lane.b32.xlu1 %v4485_v13, %s4851_s16 }
 0xdc1   :  { %4496 = vrot.lane.b32.xlu0 %v4495_v28, %s4851_s16 }
 0xdc2   :  { %4501 = vrot.lane.b32.xlu1 %v4470_v4, %s4855_s18 }
 0xdc5   :  { %4511 = vrot.lane.b32.xlu0 %v4470_v4, %s4854_s17 }
 0xdc6   :  { %4506 = vrot.lane.b32.xlu1 %v4485_v13, %s4850_s30 }
 0xdc9   :  { %4516 = vrot.lane.b32.xlu0 %v4495_v28, %s4850_s30 }
 0xdca   :  { %4521 = vrot.lane.b32.xlu1 %v4470_v4, %s4857_s20 }
 0xdcd   :  { %4531 = vrot.lane.b32.xlu0 %v4470_v4, %s4856_s19 }
 0xdce   :  { %4526 = vrot.lane.b32.xlu1 %v4525_v1, %s4851_s16  ;;  %s3384_s16 = sld [smem:[#allocation5]] }
 0xdd1   :  { %4536 = vrot.lane.b32.xlu0 %v4485_v13, %s4853_s3 }
 0xdd2   :  { %4541 = vrot.lane.b32.xlu1 %v4470_v4, %s4860_s21 }
 0xdd5   :  { %4551 = vrot.lane.b32.xlu0 %v4525_v1, %s4850_s30 }
 0xdd6   :  { %4546 = vrot.lane.b32.xlu1 %v4495_v28, %s4853_s3 }
 0xdd9   :  { %4561 = vrot.lane.b32.xlu0 %v4495_v28, %s4855_s18 }
 0xdda   :  { %4556 = vrot.lane.b32.xlu1 %v4485_v13, %s4855_s18 }
 0xddd   :  { %4571 = vrot.lane.b32.xlu0 %v4485_v13, %s4854_s17 }
 0xdde   :  { %4566 = vrot.lane.b32.xlu1 %v4525_v1, %s4853_s3  ;;  %s3565_s3 = sld [smem:[#allocation5 + $0x2]] }
 0xde1   :  { %4581 = vrot.lane.b32.xlu0 %v4525_v1, %s4855_s18 }
 0xde2   :  { %4576 = vrot.lane.b32.xlu1 %v4495_v28, %s4854_s17 }
 0xde5   :  { %4591 = vrot.lane.b32.xlu0 %v4495_v28, %s4857_s20 }
 0xde6   :  { %4586 = vrot.lane.b32.xlu1 %v4485_v13, %s4857_s20 }
 0xde9   :  { %4601 = vrot.lane.b32.xlu0 %v4485_v13, %s4856_s19 }
 0xdea   :  { %4596 = vrot.lane.b32.xlu1 %v4525_v1, %s4854_s17 }
 0xded   :  { %4611 = vrot.lane.b32.xlu0 %v4525_v1, %s4857_s20 }
 0xdee   :  { %4606 = vrot.lane.b32.xlu1 %v4495_v28, %s4856_s19 }
 0xdf1   :  { %4621 = vrot.lane.b32.xlu0 %v4495_v28, %s4860_s21 }
 0xdf2   :  { %4616 = vrot.lane.b32.xlu1 %v4485_v13, %s4860_s21 }
 0xdf5   :  { %4631 = vrot.lane.b32.xlu0 %v4525_v1, %s4860_s21  ;;  %s4863_s21 = smov [#allocation8]  }
 0xdf6   :  { %4626 = vrot.lane.b32.xlu1 %v4525_v1, %s4856_s19  ;;  %s3478_s25 = sshll.u32 %s4863_s21, 4  ;;  %s3479_s25 = int_to_ptr.vmem [resolvable:$true] %s3478_s25 }
 0xdf7   :  { %s4799_s6 = scalar_lea.vmem %s3479_s25, 768  ;;  %p4804_p6 = scmp.lt.s32.totalorder %s3479_s25, %s3479_s25 }
 0xdf8   :  { %p4800_p5 = scmp.ne.s32.totalorder %s3479_s25, %s4799_s6  ;;  %p4805_p7 = scmp.lt.s32.totalorder %s4799_s6, %s4799_s6 }
 0xdfa   :  { %p4806_p8 = por %p4805_p7, %p4804_p6 }
 0xdfc   :  { %p4807_p9 = pnand %p4806_p8, %p4800_p5 }
 0xe0b   :  { %v6363_v16 = vpop.permute.xlu1 %4396  ;;  %v6365_v55 = vpop.permute.xlu0 %4401 }
 0xe0c   :  { %v4399_v46 = vunpack.i.h.bf16 %v6363_v16  ;;  %v4398_v63 = vunpack.i.l.bf16 %v6363_v16  ;;  %v4404_v22 = vunpack.i.h.bf16 %v6365_v55  ;;  %v4403_v50 = vunpack.i.l.bf16 %v6365_v55 }
 0xe0e   :  { %v2792_v45 = vsel %vm81_vm1, %v4398_v63, %v4399_v46  ;;  %v2836_v42 = vsel %vm96_vm2, %v4403_v50, %v4404_v22 }
 0xe0f   :  { %v6367_v34 = vpop.permute.xlu1 %4406  ;;  %v6369_v9 = vpop.permute.xlu0 %4411 }
 0xe10   :  { %v4409_v54 = vunpack.i.h.bf16 %v6367_v34  ;;  %v4408_v62 = vunpack.i.l.bf16 %v6367_v34  ;;  %v4414_v25 = vunpack.i.h.bf16 %v6369_v9  ;;  %v4413_v30 = vunpack.i.l.bf16 %v6369_v9 }
 0xe12   :  { %v2880_v47 = vsel %vm111_vm3, %v4408_v62, %v4409_v54  ;;  %v2924_v43 = vsel %vm126_vm4, %v4413_v30, %v4414_v25 }
 0xe13   :  { %v6373_v29 = vpop.permute.xlu0 %4421 }
 0xe14   :  { %v6371_v44 = vpop.permute.xlu1 %4416  ;;  %v4424_v28 = vunpack.i.h.bf16 %v6373_v29 }
 0xe15   :  { %v4419_v4 = vunpack.i.h.bf16 %v6371_v44  ;;  %v4418_v13 = vunpack.i.l.bf16 %v6371_v44 }
 0xe17   :  { %v6375_v23 = vpop.permute.xlu0 %4431 }
 0xe18   :  { %v6377_v6 = vpop.permute.xlu1 %4426 }
 0xe1b   :  { %v4442_v2 = vpop.permute.xlu0 %4441 }
 0xe1c   :  { %v4437_v17 = vpop.permute.xlu1 %4436  ;;  %v4443_v61 = vunpack.i.l.bf16 %v4442_v2  ;;  %v4444_v31 = vunpack.i.h.bf16 %v4442_v2 }
 0xe1d   :  { %v4438_v58 = vunpack.i.l.bf16 %v4437_v17  ;;  %v4439_v7 = vunpack.i.h.bf16 %v4437_v17 }
 0xe1e   :  { %v2835_v35 = vsel %vm96_vm2, %v4443_v61, %v4403_v50 }
 0xe1f   :  { %v6379_v56 = vpop.permute.xlu0 %4451  ;;  %v2791_v26 = vsel %vm81_vm1, %v4438_v58, %v4398_v63  ;;  %v4423_v58 = vunpack.i.l.bf16 %v6373_v29 }
 0xe20   :  { %v4447_v14 = vpop.permute.xlu1 %4446  ;;  %v4453_v39 = vunpack.i.l.bf16 %v6379_v56  ;;  %v4454_v50 = vunpack.i.h.bf16 %v6379_v56 }
 0xe21   :  { %v4448_v51 = vunpack.i.l.bf16 %v4447_v14  ;;  %v4449_v32 = vunpack.i.h.bf16 %v4447_v14 }
 0xe23   :  { %v6381_v20 = vpop.permute.xlu0 %4461  ;;  %v2879_v1 = vsel %vm111_vm3, %v4448_v51, %v4408_v62 }
 0xe24   :  { %v6385_v33 = vpop.permute.xlu1 %4456  ;;  %v4463_v62 = vunpack.i.l.bf16 %v6381_v20 }
 0xe27   :  { %v6389_v19 = vpop.permute.xlu0 %4471 }
 0xe28   :  { %v6391_v10 = vpop.permute.xlu1 %4466  ;;  %v4474_v59 = vunpack.i.h.bf16 %v6389_v19  ;;  %v4473_v12 = vunpack.i.l.bf16 %v6389_v19 }
 0xe2a   :  { %v2796_v37 = vsel %vm81_vm1, %v4439_v7, %v4473_v12  ;;  %v2797_v18 = vsel %vm81_vm1, %v4473_v12, %v4474_v59 }
 0xe2b   :  { %v3124_v48 = vpack.c.bf16 %v2796_v37, %v2791_v26  ;;  %v6405_v52 = vpop.permute.xlu0 %4476  ;;  %v3125_v8 = vpack.c.bf16 %v2797_v18, %v2792_v45  ;;  %v2923_v45 = vsel %vm126_vm4, %v4453_v39, %v4413_v30  ;;  %v4459_v18 = vunpack.i.h.bf16 %v6385_v33 }
 0xe2c   :  { %v6407_v21 = vpop.permute.xlu1 %4481 }
 0xe2d   :  { %v4484_v53 = vunpack.i.h.bf16 %v6407_v21  ;;  %v4483_v41 = vunpack.i.l.bf16 %v6407_v21  ;;  %3180 = vmatprep.subr.bf16.mxu1 %v3125_v8 }
 0xe2e   :  { %3181 = vmatpush1.bf16.msra.mxu1 %v3124_v48  ;;  %v4458_v48 = vunpack.i.l.bf16 %v6385_v33 }
 0xe2f   :  { %v2840_v40 = vsel %vm96_vm2, %v4444_v31, %v4483_v41  ;;  %v6423_v57 = vpop.permute.xlu0 %4491  ;;  %v2841_v5 = vsel %vm96_vm2, %v4483_v41, %v4484_v53 }
 0xe30   :  { %v3129_v38 = vpack.c.bf16 %v2840_v40, %v2835_v35  ;;  %v6428_v27 = vpop.permute.xlu1 %4486  ;;  %v4494_v49 = vunpack.i.h.bf16 %v6423_v57  ;;  %v4493_v11 = vunpack.i.l.bf16 %v6423_v57  ;;  %v3130_v15 = vpack.c.bf16 %v2841_v5, %v2836_v42 }
 0xe31   :  { %v4489_v2 = vunpack.i.h.bf16 %v6428_v27  ;;  %v4488_v17 = vunpack.i.l.bf16 %v6428_v27  ;;  %v2967_v5 = vsel %vm141_vm5, %v4458_v48, %v4418_v13 }
 0xe32   :  { %v2884_v14 = vsel %vm111_vm3, %v4449_v32, %v4493_v11  ;;  %3182 = vmatprep.subr.bf16.mxu1 %v3130_v15  ;;  %v2885_v63 = vsel %vm111_vm3, %v4493_v11, %v4494_v49  ;;  %v3012_v11 = vsel %vm156_vm6, %v4423_v58, %v4424_v28 }
 0xe33   :  { %v3134_v19 = vpack.c.bf16 %v2884_v14, %v2879_v1  ;;  %3183 = vmatpush1.bf16.msra.mxu1 %v3129_v38  ;;  %v6444_v7 = vpop.permute.xlu0 %4496  ;;  %v3135_v12 = vpack.c.bf16 %v2885_v63, %v2880_v47  ;;  %v2793_v30 = vsel %vm81_vm1, %v4399_v46, %v4488_v17  ;;  %v2794_v51 = vsel %vm81_vm1, %v4488_v17, %v4489_v2 }
 0xe34   :  { %v6448_v26 = vpop.permute.xlu1 %4501  ;;  %v4499_v61 = vunpack.i.h.bf16 %v6444_v7  ;;  %v4498_v37 = vunpack.i.l.bf16 %v6444_v7  ;;  %v2968_v38 = vsel %vm141_vm5, %v4418_v13, %v4419_v4  ;;  %v4429_v14 = vunpack.i.h.bf16 %v6377_v6 }
 0xe35   :  { %v4504_v56 = vunpack.i.h.bf16 %v6448_v26  ;;  %v4503_v8 = vunpack.i.l.bf16 %v6448_v26  ;;  %3184 = vmatprep.subr.bf16.mxu1 %v3135_v12  ;;  %v4428_v13 = vunpack.i.l.bf16 %v6377_v6  ;;  %v4464_v12 = vunpack.i.h.bf16 %v6381_v20 }
 0xe36   :  { %v2798_v31 = vsel %vm81_vm1, %v4474_v59, %v4498_v37  ;;  %v2799_v41 = vsel %vm81_vm1, %v4498_v37, %v4499_v61 }
 0xe37   :  { %v2928_v33 = vsel %vm126_vm4, %v4454_v50, %v4503_v8  ;;  %v3126_v35 = vpack.c.bf16 %v2798_v31, %v2793_v30  ;;  %3185 = vmatpush1.bf16.msra.mxu1 %v3134_v19  ;;  %v6467_v42 = vpop.permute.xlu0 %4511  ;;  %v2929_v16 = vsel %vm126_vm4, %v4503_v8, %v4504_v56  ;;  %v3127_v46 = vpack.c.bf16 %v2799_v41, %v2794_v51 }
 0xe38   :  { %v3139_v59 = vpack.c.bf16 %v2928_v33, %v2923_v45  ;;  %v6472_v47 = vpop.permute.xlu1 %4506  ;;  %v4514_v32 = vunpack.i.h.bf16 %v6467_v42  ;;  %v4513_v39 = vunpack.i.l.bf16 %v6467_v42  ;;  %v3140_v40 = vpack.c.bf16 %v2929_v16, %v2924_v43 }
 0xe39   :  { %3221 = vmatprep.subr.bf16.mxu0 %v3127_v46  ;;  %v4509_v15 = vunpack.i.h.bf16 %v6472_v47  ;;  %v4508_v1 = vunpack.i.l.bf16 %v6472_v47  ;;  %v3011_v45 = vsel %vm156_vm6, %v4463_v62, %v4423_v58  ;;  %v4469_v8 = vunpack.i.h.bf16 %v6391_v10 }
 0xe3a   :  { %v2972_v17 = vsel %vm141_vm5, %v4459_v18, %v4513_v39  ;;  %3186 = vmatprep.subr.bf16.mxu1 %v3140_v40  ;;  %3222 = vmatpush1.bf16.msra.mxu0 %v3126_v35  ;;  %v2973_v43 = vsel %vm141_vm5, %v4513_v39, %v4514_v32  ;;  %v4468_v30 = vunpack.i.l.bf16 %v6391_v10  ;;  %v4434_v39 = vunpack.i.h.bf16 %v6375_v23 }
 0xe3b   :  { %v3144_v63 = vpack.c.bf16 %v2972_v17, %v2967_v5  ;;  %3187 = vmatpush1.bf16.msra.mxu1 %v3139_v59  ;;  %v6491_v50 = vpop.permute.xlu0 %4516  ;;  %v3145_v19 = vpack.c.bf16 %v2973_v43, %v2968_v38  ;;  %v2837_v20 = vsel %vm96_vm2, %v4404_v22, %v4508_v1  ;;  %v2838_v62 = vsel %vm96_vm2, %v4508_v1, %v4509_v15 }
 0xe3c   :  { %v6495_v37 = vpop.permute.xlu1 %4521  ;;  %v4519_v18 = vunpack.i.h.bf16 %v6491_v50  ;;  %v4518_v48 = vunpack.i.l.bf16 %v6491_v50  ;;  %v4433_v40 = vunpack.i.l.bf16 %v6375_v23  ;;  %v3056_v5 = vsel %vm171_vm7, %v4428_v13, %v4429_v14 }
 0xe3d   :  { %v4524_v31 = vunpack.i.h.bf16 %v6495_v37  ;;  %v4523_v51 = vunpack.i.l.bf16 %v6495_v37  ;;  %3188 = vmatprep.subr.bf16.mxu1 %v3145_v19  ;;  %v3055_v38 = vsel %vm171_vm7, %v4468_v30, %v4428_v13  ;;  %v4478_v1 = vunpack.i.l.bf16 %v6405_v52 }
 0xe3e   :  { %v2842_v58 = vsel %vm96_vm2, %v4484_v53, %v4518_v48  ;;  %v2843_v10 = vsel %vm96_vm2, %v4518_v48, %v4519_v18  ;;  %v3100_v30 = vsel %vm186_vm8, %v4433_v40, %v4434_v39 }
 0xe3f   :  { %v3016_v41 = vsel %vm156_vm6, %v4464_v12, %v4523_v51  ;;  %v3131_v33 = vpack.c.bf16 %v2842_v58, %v2837_v20  ;;  %3189 = vmatpush1.bf16.msra.mxu1 %v3144_v63  ;;  %v6516_v35 = vpop.permute.xlu0 %4531  ;;  %v3017_v55 = vsel %vm156_vm6, %v4523_v51, %v4524_v31  ;;  %v3132_v22 = vpack.c.bf16 %v2843_v10, %v2838_v62 }
 0xe40   :  { %v3149_v21 = vpack.c.bf16 %v3016_v41, %v3011_v45  ;;  %v4527_v53 = vpop.permute.xlu1 %4526  ;;  %v4534_v16 = vunpack.i.h.bf16 %v6516_v35  ;;  %v4533_v46 = vunpack.i.l.bf16 %v6516_v35  ;;  %v3150_v59 = vpack.c.bf16 %v3017_v55, %v3012_v11 }
 0xe41   :  { %3223 = vmatprep.subr.bf16.mxu0 %v3132_v22  ;;  %v4479_v45 = vunpack.i.h.bf16 %v6405_v52  ;;  %v4529_v55 = vunpack.i.h.bf16 %v4527_v53  ;;  %v4528_v22 = vunpack.i.l.bf16 %v4527_v53 }
 0xe42   :  { %v3060_v17 = vsel %vm171_vm7, %v4469_v8, %v4533_v46  ;;  %3190 = vmatprep.subr.bf16.mxu1 %v3150_v59  ;;  %3224 = vmatpush1.bf16.msra.mxu0 %v3131_v33  ;;  %v3061_v11 = vsel %vm171_vm7, %v4533_v46, %v4534_v16  ;;  %v3099_v8 = vsel %vm186_vm8, %v4478_v1, %v4433_v40 }
 0xe43   :  { %v3154_v43 = vpack.c.bf16 %v3060_v17, %v3055_v38  ;;  %3191 = vmatpush1.bf16.msra.mxu1 %v3149_v21  ;;  %v6534_v63 = vpop.permute.xlu0 %4536  ;;  %v3155_v19 = vpack.c.bf16 %v3061_v11, %v3056_v5  ;;  %v3123_v59 = vpack.c.bf16 %v6314_v0, %v6314_v0  ;;  %v2795_v57 = vsel %vm81_vm1, %v4489_v2, %v4528_v22 }
 0xe44   :  { %v6536_v12 = vpop.permute.xlu1 %4541  ;;  %v4539_v20 = vunpack.i.h.bf16 %v6534_v63  ;;  %v4538_v58 = vunpack.i.l.bf16 %v6534_v63 }
 0xe45   :  { %v4544_v13 = vunpack.i.h.bf16 %v6536_v12  ;;  %v4543_v48 = vunpack.i.l.bf16 %v6536_v12  ;;  %3192 = vmatprep.subr.bf16.mxu1 %v3155_v19 }
 0xe46   :  { %v2881_v40 = vsel %vm111_vm3, %v4409_v54, %v4538_v58  ;;  %v2882_v53 = vsel %vm111_vm3, %v4538_v58, %v4539_v20 }
 0xe47   :  { %v3104_v51 = vsel %vm186_vm8, %v4479_v45, %v4543_v48  ;;  %3193 = vmatpush1.bf16.msra.mxu1 %v3154_v43  ;;  %v4552_v62 = vpop.permute.xlu0 %4551  ;;  %v3105_v52 = vsel %vm186_vm8, %v4543_v48, %v4544_v13 }
 0xe48   :  { %v3159_v10 = vpack.c.bf16 %v3104_v51, %v3099_v8  ;;  %v4547_v41 = vpop.permute.xlu1 %4546  ;;  %v3160_v33 = vpack.c.bf16 %v3105_v52, %v3100_v30  ;;  %v4554_v45 = vunpack.i.h.bf16 %v4552_v62  ;;  %v4553_v48 = vunpack.i.l.bf16 %v4552_v62 }
 0xe49   :  { %v4549_v21 = vunpack.i.h.bf16 %v4547_v41  ;;  %v4548_v46 = vunpack.i.l.bf16 %v4547_v41 }
 0xe4a   :  { %3194 = vmatprep.subr.bf16.mxu1 %v3160_v33  ;;  %v2839_v9 = vsel %vm96_vm2, %v4509_v15, %v4553_v48 }
 0xe4b   :  { %v2886_v5 = vsel %vm111_vm3, %v4494_v49, %v4548_v46  ;;  %3195 = vmatpush1.bf16.msra.mxu1 %v3159_v10  ;;  %v6559_v38 = vpop.permute.xlu0 %4561  ;;  %v2887_v1 = vsel %vm111_vm3, %v4548_v46, %v4549_v21  ;;  %v2800_v49 = vsel %vm81_vm1, %v4499_v61, %v4529_v55  ;;  %vm3331_vm1 = vcmask 1042432  }
 0xe4c   :  { %v3136_v17 = vpack.c.bf16 %v2886_v5, %v2881_v40  ;;  %v4557_v11 = vpop.permute.xlu1 %4556  ;;  %v4564_v0 = vunpack.i.h.bf16 %v6559_v38  ;;  %v4563_v34 = vunpack.i.l.bf16 %v6559_v38  ;;  %v3137_v54 = vpack.c.bf16 %v2887_v1, %v2882_v53  ;;  %3260 = vmatprep.subr.bf16.mxu1 %v6776_v24 }
 0xe4d   :  { %v4559_v43 = vunpack.i.h.bf16 %v4557_v11  ;;  %v4558_v19 = vunpack.i.l.bf16 %v4557_v11 }
 0xe4e   :  { %v2930_v8 = vsel %vm126_vm4, %v4504_v56, %v4563_v34  ;;  %3225 = vmatprep.subr.bf16.mxu0 %v3137_v54  ;;  %3211 = vmatmul.mubr.bf16.vlgmr.msra.gmra.mrb[36].mxu1 %v6333_v60  ;;  %v2931_v30 = vsel %vm126_vm4, %v4563_v34, %v4564_v0  ;;  %v3128_v56 = vpack.c.bf16 %v2800_v49, %v2795_v57 }
 0xe4f   :  { %v2925_v27 = vsel %vm126_vm4, %v4414_v25, %v4558_v19  ;;  %3226 = vmatpush1.bf16.msra.mxu0 %v3136_v17  ;;  %3261 = vmatpush1.bf16.msra.mxu1 %v3123_v59  ;;  %v6582_v2 = vpop.permute.xlu0 %4571  ;;  %v2926_v7 = vsel %vm126_vm4, %v4558_v19, %v4559_v43  ;;  %v2844_v25 = vsel %vm96_vm2, %v4519_v18, %v4554_v45 }
 0xe50   :  { %v3141_v61 = vpack.c.bf16 %v2930_v8, %v2925_v27  ;;  %v4567_v51 = vpop.permute.xlu1 %4566  ;;  %v3142_v26 = vpack.c.bf16 %v2931_v30, %v2926_v7  ;;  %3262 = vmatprep.subr.bf16.mxu1 %v6776_v24  ;;  %3563 = vmatprep.mubr.msk.bf16.mxu1 %vm721_vm13, %v6338_v3  ;;  %v4574_v52 = vunpack.i.h.bf16 %v6582_v2  ;;  %v4573_v10 = vunpack.i.l.bf16 %v6582_v2 }
 0xe51   :  { %v4569_v58 = vunpack.i.h.bf16 %v4567_v51  ;;  %v4568_v62 = vunpack.i.l.bf16 %v4567_v51  ;;  %v3133_v47 = vpack.c.bf16 %v2844_v25, %v2839_v9 }
 0xe52   :  { %3227 = vmatprep.subr.bf16.mxu0 %v3142_v26  ;;  %v2969_v46 = vsel %vm141_vm5, %v4419_v4, %v4573_v10  ;;  %v2970_v5 = vsel %vm141_vm5, %v4573_v10, %v4574_v52 }
 0xe53   :  { %3228 = vmatpush1.bf16.msra.mxu0 %v3141_v61  ;;  %3263 = vmatpush1.bf16.msra.mxu1 %v3128_v56  ;;  %v4582_v41 = vpop.permute.xlu0 %4581  ;;  %v2883_v50 = vsel %vm111_vm3, %v4539_v20, %v4568_v62  ;;  %v2888_v18 = vsel %vm111_vm3, %v4549_v21, %v4569_v58 }
 0xe54   :  { %v4577_v3 = vpop.permute.xlu1 %4576  ;;  %3264 = vmatprep.subr.bf16.mxu1 %v6776_v24  ;;  %v4584_v55 = vunpack.i.h.bf16 %v4582_v41  ;;  %v4583_v22 = vunpack.i.l.bf16 %v4582_v41  ;;  %v3138_v44 = vpack.c.bf16 %v2888_v18, %v2883_v50 }
 0xe55   :  { %v4579_v33 = vunpack.i.h.bf16 %v4577_v3  ;;  %v4578_v15 = vunpack.i.l.bf16 %v4577_v3 }
 0xe56   :  { %v2927_v42 = vsel %vm126_vm4, %v4559_v43, %v4583_v22 }
 0xe57   :  { %v2974_v59 = vsel %vm141_vm5, %v4514_v32, %v4578_v15  ;;  %3265 = vmatpush1.bf16.msra.mxu1 %v3133_v47  ;;  %v4592_v40 = vpop.permute.xlu0 %4591  ;;  %v2975_v63 = vsel %vm141_vm5, %v4578_v15, %v4579_v33  ;;  %v2932_v32 = vsel %vm126_vm4, %v4564_v0, %v4584_v55 }
 0xe58   :  { %v3146_v38 = vpack.c.bf16 %v2974_v59, %v2969_v46  ;;  %v4587_v20 = vpop.permute.xlu1 %4586  ;;  %v4594_v53 = vunpack.i.h.bf16 %v4592_v40  ;;  %v4593_v21 = vunpack.i.l.bf16 %v4592_v40  ;;  %v3147_v1 = vpack.c.bf16 %v2975_v63, %v2970_v5  ;;  %3266 = vmatprep.subr.bf16.mxu1 %v6776_v24 }
 0xe59   :  { %v4589_v17 = vunpack.i.h.bf16 %v4587_v20  ;;  %v4588_v4 = vunpack.i.l.bf16 %v4587_v20  ;;  %v3143_v37 = vpack.c.bf16 %v2932_v32, %v2927_v42 }
 0xe5a   :  { %v3018_v11 = vsel %vm156_vm6, %v4524_v31, %v4593_v21  ;;  %3229 = vmatprep.subr.bf16.mxu0 %v3147_v1  ;;  %v3019_v34 = vsel %vm156_vm6, %v4593_v21, %v4594_v53  ;;  %v64_v1 = vld [vmem:[%s6746_s2] sm:$0x1f]  ;;  %s3564_s2 = sld [smem:[#allocation5 + $0x1]] }
 0xe5b   :  { %v3013_v54 = vsel %vm156_vm6, %v4424_v28, %v4588_v4  ;;  %3230 = vmatpush1.bf16.msra.mxu0 %v3146_v38  ;;  %3267 = vmatpush1.bf16.msra.mxu1 %v3138_v44  ;;  %v4602_v57 = vpop.permute.xlu0 %4601  ;;  %v3014_v49 = vsel %vm156_vm6, %v4588_v4, %v4589_v17  ;;  %v6777_v44 = vsub.s32 0, %v5051_v36  ;;  %v6778_v4 = vsub.s32 1, %v5051_v36 }
 0xe5c   :  { %v3151_v19 = vpack.c.bf16 %v3018_v11, %v3013_v54  ;;  %v4597_v43 = vpop.permute.xlu1 %4596  ;;  %v3152_v45 = vpack.c.bf16 %v3019_v34, %v3014_v49  ;;  %3268 = vmatprep.subr.bf16.mxu1 %v6776_v24  ;;  %v4603_v48 = vunpack.i.l.bf16 %v4602_v57  ;;  %v4604_v28 = vunpack.i.h.bf16 %v4602_v57 }
 0xe5d   :  { %v4599_v0 = vunpack.i.h.bf16 %v4597_v43  ;;  %v4598_v31 = vunpack.i.l.bf16 %v4597_v43  ;;  %v3308_v42 = vrot.slane %v64_v1, %v6778_v4  ;;  %v3315_v43 = vsub.s32 3, %v5051_v36 }
 0xe5e   :  { %3231 = vmatprep.subr.bf16.mxu0 %v3152_v45  ;;  %v3057_v56 = vsel %vm171_vm7, %v4429_v14, %v4603_v48  ;;  %v3058_v10 = vsel %vm171_vm7, %v4603_v48, %v4604_v28  ;;  %v6779_v45 = vsub.s32 2, %v5051_v36  ;;  %v3319_v48 = vsub.s32 4, %v5051_v36 }
 0xe5f   :  { %v2971_v8 = vsel %vm141_vm5, %v4574_v52, %v4598_v31  ;;  %v2976_v29 = vsel %vm141_vm5, %v4579_v33, %v4599_v0  ;;  %3232 = vmatpush1.bf16.msra.mxu0 %v3151_v19  ;;  %3269 = vmatpush1.bf16.msra.mxu1 %v3143_v37  ;;  %v4612_v30 = vpop.permute.xlu0 %4611  ;;  %v3316_v0 = vrot.slane %v64_v1, %v3315_v43 }
 0xe60   :  { %v3148_v27 = vpack.c.bf16 %v2976_v29, %v2971_v8  ;;  %v4607_v2 = vpop.permute.xlu1 %4606  ;;  %v4614_v7 = vunpack.i.h.bf16 %v4612_v30  ;;  %v4613_v61 = vunpack.i.l.bf16 %v4612_v30  ;;  %3270 = vmatprep.subr.bf16.mxu1 %v6776_v24  ;;  %v3312_v37 = vrot.slane %v64_v1, %v6779_v45 }
 0xe61   :  { %v4609_v51 = vunpack.i.h.bf16 %v4607_v2  ;;  %v4608_v26 = vunpack.i.l.bf16 %v4607_v2 }
 0xe62   :  { %v3015_v9 = vsel %vm156_vm6, %v4589_v17, %v4613_v61  ;;  %v3020_v25 = vsel %vm156_vm6, %v4594_v53, %v4614_v7  ;;  %v3304_v17 = vrot.slane %v64_v1, %v6777_v44 }
 0xe63   :  { %v3062_v58 = vsel %vm171_vm7, %v4534_v16, %v4608_v26  ;;  %v3153_v62 = vpack.c.bf16 %v3020_v25, %v3015_v9  ;;  %3271 = vmatpush1.bf16.msra.mxu1 %v3148_v27  ;;  %v4622_v52 = vpop.permute.xlu0 %4621  ;;  %v3063_v41 = vsel %vm171_vm7, %v4608_v26, %v4609_v51 }
 0xe64   :  { %v3156_v3 = vpack.c.bf16 %v3062_v58, %v3057_v56  ;;  %v4617_v47 = vpop.permute.xlu1 %4616  ;;  %v4624_v6 = vunpack.i.h.bf16 %v4622_v52  ;;  %v4623_v33 = vunpack.i.l.bf16 %v4622_v52  ;;  %v3157_v14 = vpack.c.bf16 %v3063_v41, %v3058_v10  ;;  %3272 = vmatprep.subr.bf16.mxu1 %v6776_v24 }
 0xe65   :  { %v4619_v15 = vunpack.i.h.bf16 %v4617_v47  ;;  %v4618_v50 = vunpack.i.l.bf16 %v4617_v47 }
 0xe66   :  { %v3106_v35 = vsel %vm186_vm8, %v4544_v13, %v4623_v33  ;;  %3233 = vmatprep.subr.bf16.mxu0 %v3157_v14  ;;  %v3107_v16 = vsel %vm186_vm8, %v4623_v33, %v4624_v6 }
 0xe67   :  { %v3101_v18 = vsel %vm186_vm8, %v4434_v39, %v4618_v50  ;;  %3234 = vmatpush1.bf16.msra.mxu0 %v3156_v3  ;;  %3273 = vmatpush1.bf16.msra.mxu1 %v3153_v62  ;;  %v4632_v55 = vpop.permute.xlu0 %4631  ;;  %v3102_v22 = vsel %vm186_vm8, %v4618_v50, %v4619_v15 }
 0xe68   :  { %v3161_v46 = vpack.c.bf16 %v3106_v35, %v3101_v18  ;;  %v4627_v59 = vpop.permute.xlu1 %4626  ;;  %v3162_v40 = vpack.c.bf16 %v3107_v16, %v3102_v22  ;;  %3274 = vmatprep.subr.bf16.mxu1 %v6776_v24  ;;  %v4634_v13 = vunpack.i.h.bf16 %v4632_v55  ;;  %v4633_v63 = vunpack.i.l.bf16 %v4632_v55 }
 0xe69   :  { %v4629_v12 = vunpack.i.h.bf16 %v4627_v59  ;;  %v4628_v5 = vunpack.i.l.bf16 %v4627_v59 }
 0xe6a   :  { %3235 = vmatprep.subr.bf16.mxu0 %v3162_v40  ;;  %v3103_v20 = vsel %vm186_vm8, %v4619_v15, %v4633_v63  ;;  %v3108_v53 = vsel %vm186_vm8, %v4624_v6, %v4634_v13 }
 0xe6b   :  { %v3059_v38 = vsel %vm171_vm7, %v4604_v28, %v4628_v5  ;;  %v3064_v23 = vsel %vm171_vm7, %v4609_v51, %v4629_v12  ;;  %3236 = vmatpush1.bf16.msra.mxu0 %v3161_v46  ;;  %v3163_v21 = vpack.c.bf16 %v3108_v53, %v3103_v20  ;;  %v3320_v51 = vrot.slane %v64_v1, %v3319_v48 }
 0xe6c   :  { %v3158_v39 = vpack.c.bf16 %v3064_v23, %v3059_v38 }
 0xe6e   :  { %3252 = vmatmul.mubr.bf16.vlgmr.msra.gmra.mrb[28].mxu0 %v6333_v60  ;;  %3275 = vmatpush1.bf16.msra.mxu1 %v3158_v39 }
 0xe6f   :  { %3276 = vmatprep.subr.bf16.mxu1 %v6776_v24 }
 0xe72   :  { %3277 = vmatpush1.bf16.msra.mxu1 %v3163_v21 }
 0xe75   :  { %3293 = vmatmul.mubr.bf16.vlgmr.msra.gmra.mrb[40].mxu1 %v6333_v60 }
 0xf21   :  { %v3212_v32 = vpop.f32.mrb[36].mxu1 }
 0xf22   :  { %v3326_v11 = vmul.f32 %v3304_v17, %v3212_v32  ;;  %v3214_v34 = vpop.f32.mrb[37].mxu1 }
 0xf23   :  { %v3327_v54 = vmul.f32 %v3308_v42, %v3214_v34  ;;  %v3216_v24 = vpop.f32.mrb[38].mxu1 }
 0xf24   :  { %v3332_v57 = vsel %vm3331_vm1, %v3326_v11, 0.0  ;;  %v3217_v49 = vpop.f32.mrb[39].mxu1  ;;  %v3385_v24 = vstv %s3384_s16 }
 0xf25   :  { %v3333_v60 = vsel %vm3331_vm1, %v3327_v54, 0.0 }
 0xf26   :  { %v3334_v19 = vadd.f32 %v3333_v60, %v3332_v57  ;;  %v3431_v57 = vstv %s3565_s3 }
 0xf41   :  { %v3253_v31 = vpop.f32.mrb[28].mxu0 }
 0xf42   :  { %v3328_v8 = vmul.f32 %v3312_v37, %v3253_v31  ;;  %v3255_v29 = vpop.f32.mrb[29].mxu0 }
 0xf43   :  { %v3329_v28 = vmul.f32 %v3316_v0, %v3255_v29  ;;  %v3257_v30 = vpop.f32.mrb[30].mxu0 }
 0xf44   :  { %v3335_v27 = vsel %vm3331_vm1, %v3328_v8, 0.0  ;;  %v3258_v2 = vpop.f32.mrb[31].mxu0 }
 0xf45   :  { %v3336_v7 = vadd.f32 %v3335_v27, %v3334_v19  ;;  %v3337_v61 = vsel %vm3331_vm1, %v3329_v28, 0.0 }
 0xf47   :  { %v3338_v26 = vadd.f32 %v3337_v61, %v3336_v7 }
 0xf48   :  { %v3294_v56 = vpop.f32.mrb[40].mxu1 }
 0xf49   :  { %v3330_v9 = vmul.f32 %v3320_v51, %v3294_v56  ;;  %v3296_v25 = vpop.f32.mrb[41].mxu1 }
 0xf4a   :  { %v3297_v58 = vpop.f32.mrb[42].mxu1 }
 0xf4b   :  { %v3339_v62 = vsel %vm3331_vm1, %v3330_v9, 0.0  ;;  %v3298_v52 = vpop.f32.mrb[43].mxu1 }
 0xf4c   :  { %v3340_v36 = vadd.f32 %v3339_v62, %v3338_v26 }
 0xf4e   :  { %3341 = vadd.xlane.f32.xlu1 %v3340_v36 }
 0xfdb   :  { %v3342_v10 = vpop.xlane.xlu1 %3341 }
 0xfdc   :  { %v3343_v41 = vmul.f32 0.0020661156, %v3342_v10 }
 0xfde   :  { %v3344_v3 = vsub.f32 %v3212_v32, %v3343_v41  ;;  %v3345_v47 = vsub.f32 %v3214_v34, %v3343_v41  ;;  %v3346_v6 = vsub.f32 %v3253_v31, %v3343_v41  ;;  %v3347_v33 = vsub.f32 %v3255_v29, %v3343_v41 }
 0xfdf   :  { %v3348_v14 = vsub.f32 %v3294_v56, %v3343_v41  ;;  %v3408_v34 = vstv %s3564_s2 }
 0xfe0   :  { %v3349_v15 = vmul.f32 %v3344_v3, %v3304_v17  ;;  %v3350_v50 = vmul.f32 %v3345_v47, %v3308_v42  ;;  %v3351_v35 = vmul.f32 %v3346_v6, %v3312_v37  ;;  %v3352_v16 = vmul.f32 %v3347_v33, %v3316_v0 }
 0xfe1   :  { %v3353_v18 = vmul.f32 %v3348_v14, %v3320_v51  ;;  %v6780_v17 = vlaneseq }
 0xfe2   :  { %v3354_v55 = vmul.f32 %v3349_v15, %v3349_v15  ;;  %v3355_v22 = vmul.f32 %v3350_v50, %v3350_v50  ;;  %v3356_v46 = vmul.f32 %v3351_v35, %v3351_v35  ;;  %v3357_v59 = vmul.f32 %v3352_v16, %v3352_v16 }
 0xfe3   :  { %v3358_v13 = vmul.f32 %v3353_v18, %v3353_v18  ;;  %v3379_v4 = vand.u32 127, %v6780_v17 }
 0xfe4   :  { %v3359_v40 = vsel %vm3331_vm1, %v3354_v55, 0.0  ;;  %v3360_v12 = vsel %vm3331_vm1, %v3355_v22, 0.0  ;;  %v3362_v63 = vsel %vm3331_vm1, %v3356_v46, 0.0  ;;  %v3364_v23 = vsel %vm3331_vm1, %v3357_v59, 0.0 }
 0xfe5   :  { %v3361_v5 = vadd.f32 %v3360_v12, %v3359_v40  ;;  %v3366_v20 = vsel %vm3331_vm1, %v3358_v13, 0.0  ;;  %v3380_v42 = vadd.s32 128, %v3379_v4  ;;  %v3381_v32 = vadd.s32 256, %v3379_v4 }
 0xfe6   :  { %v3382_v11 = vadd.s32 384, %v3379_v4  ;;  %v6673_v54 = vadd.s32 512, %v3379_v4  ;;  %vm3409_vm2 = vcmp.eq.s32.totalorder %v3379_v4, %v3408_v34  ;;  %vm3386_vm7 = vcmp.eq.s32.totalorder %v3379_v4, %v3385_v24 }
 0xfe7   :  { %v3363_v38 = vadd.f32 %v3362_v63, %v3361_v5  ;;  %vm3410_vm3 = vcmp.eq.s32.totalorder %v3380_v42, %v3408_v34  ;;  %vm3411_vm4 = vcmp.eq.s32.totalorder %v3381_v32, %v3408_v34  ;;  %vm3387_vm8 = vcmp.eq.s32.totalorder %v3380_v42, %v3385_v24 }
 0xfe8   :  { %vm3412_vm5 = vcmp.eq.s32.totalorder %v3382_v11, %v3408_v34  ;;  %vm3413_vm6 = vcmp.eq.s32.totalorder %v6673_v54, %v3408_v34  ;;  %vm3388_vm9 = vcmp.eq.s32.totalorder %v3381_v32, %v3385_v24  ;;  %vm3389_vm10 = vcmp.eq.s32.totalorder %v3382_v11, %v3385_v24 }
 0xfe9   :  { %v3365_v39 = vadd.f32 %v3364_v23, %v3363_v38  ;;  %vm3390_vm11 = vcmp.eq.s32.totalorder %v6673_v54, %v3385_v24  ;;  %vm3432_vm12 = vcmp.eq.s32.totalorder %v3379_v4, %v3431_v57  ;;  %vm3433_vm13 = vcmp.eq.s32.totalorder %v3380_v42, %v3431_v57  ;;  %v3457_v23 = vld [vmem:[%s6755_s11] sm:$0x7] }
 0xfea   :  { %vm3434_vm14 = vcmp.eq.s32.totalorder %v3381_v32, %v3431_v57  ;;  %vm3435_vm15 = vcmp.eq.s32.totalorder %v3382_v11, %v3431_v57  ;;  %vm3436_vm0 = vcmp.eq.s32.totalorder %v6673_v54, %v3431_v57 }
 0xfeb   :  { %v3367_v53 = vadd.f32 %v3366_v20, %v3365_v39  ;;  %v3464_v39 = vld [vmem:[%s6756_s12] sm:$0x7] }
 0xfed   :  { %3368 = vadd.xlane.f32.xlu0 %v3367_v53 }
0x107a   :  { %v3369_v21 = vpop.xlane.xlu0 %3368 }
0x107b   :  { %v3370_v1 = vmul.f32 0.0020661156, %v3369_v21 }
0x107d   :  { %v3371_v44 = vadd.f32 1e-05, %v3370_v1 }
0x107f   :  { %4784 = vrsqrt.f32 %v3371_v44 }
0x1089   :  { %v4785_v49 = vpop.eup %4784 }
0x108a   :  { %v3373_v60 = vmul.f32 %v4785_v49, %v3344_v3  ;;  %v3374_v19 = vmul.f32 %v4785_v49, %v3345_v47  ;;  %v3375_v43 = vmul.f32 %v4785_v49, %v3346_v6  ;;  %v3376_v45 = vmul.f32 %v4785_v49, %v3347_v33 }
0x108b   :  { %v3377_v37 = vmul.f32 %v4785_v49, %v3348_v14 }
0x108c   :  { %v3414_v0 = vsel %vm3409_vm2, %v3373_v60, 0.0  ;;  %v3415_v31 = vsel %vm3410_vm3, %v3374_v19, 0.0  ;;  %v3416_v48 = vsel %vm3411_vm4, %v3375_v43, 0.0  ;;  %v3417_v8 = vsel %vm3412_vm5, %v3376_v45, 0.0 }
0x108d   :  { %v3419_v29 = vsel %vm3331_vm1, %v3414_v0, 0.0  ;;  %v3420_v28 = vsel %vm3331_vm1, %v3415_v31, 0.0  ;;  %v3418_v30 = vsel %vm3413_vm6, %v3377_v37, 0.0  ;;  %v3391_v2 = vsel %vm3386_vm7, %v3373_v60, 0.0 }
0x108e   :  { %v3421_v27 = vadd.f32 %v3420_v28, %v3419_v29  ;;  %v3422_v7 = vsel %vm3331_vm1, %v3416_v48, 0.0  ;;  %v3392_v61 = vsel %vm3387_vm8, %v3374_v19, 0.0  ;;  %v3393_v51 = vsel %vm3388_vm9, %v3375_v43, 0.0 }
0x108f   :  { %v3424_v56 = vsel %vm3331_vm1, %v3417_v8, 0.0  ;;  %v3396_v9 = vsel %vm3331_vm1, %v3391_v2, 0.0  ;;  %v3397_v25 = vsel %vm3331_vm1, %v3392_v61, 0.0  ;;  %v3426_v58 = vsel %vm3331_vm1, %v3418_v30, 0.0 }
0x1090   :  { %v3423_v26 = vadd.f32 %v3422_v7, %v3421_v27  ;;  %v3394_v62 = vsel %vm3389_vm10, %v3376_v45, 0.0  ;;  %v3398_v52 = vadd.f32 %v3397_v25, %v3396_v9  ;;  %v3437_v36 = vsel %vm3432_vm12, %v3373_v60, 0.0 }
0x1091   :  { %v3399_v41 = vsel %vm3331_vm1, %v3393_v51, 0.0  ;;  %v3438_v3 = vsel %vm3433_vm13, %v3374_v19, 0.0  ;;  %v3439_v47 = vsel %vm3434_vm14, %v3375_v43, 0.0  ;;  %v3395_v6 = vsel %vm3390_vm11, %v3377_v37, 0.0 }
0x1092   :  { %v3425_v10 = vadd.f32 %v3424_v56, %v3423_v26  ;;  %v3400_v33 = vadd.f32 %v3399_v41, %v3398_v52  ;;  %v3442_v14 = vsel %vm3331_vm1, %v3437_v36, 0.0  ;;  %v3443_v15 = vsel %vm3331_vm1, %v3438_v3, 0.0 }
0x1093   :  { %v3401_v35 = vsel %vm3331_vm1, %v3394_v62, 0.0  ;;  %v3440_v16 = vsel %vm3435_vm15, %v3376_v45, 0.0  ;;  %v3444_v18 = vadd.f32 %v3443_v15, %v3442_v14  ;;  %v3445_v22 = vsel %vm3331_vm1, %v3439_v47, 0.0 }
0x1094   :  { %v3427_v50 = vadd.f32 %v3426_v58, %v3425_v10  ;;  %v3402_v55 = vadd.f32 %v3401_v35, %v3400_v33  ;;  %v3403_v46 = vsel %vm3331_vm1, %v3395_v6, 0.0  ;;  %v3441_v12 = vsel %vm3436_vm0, %v3377_v37, 0.0 }
0x1095   :  { %v3446_v59 = vadd.f32 %v3445_v22, %v3444_v18  ;;  %v3447_v5 = vsel %vm3331_vm1, %v3440_v16, 0.0  ;;  %v3449_v63 = vsel %vm3331_vm1, %v3441_v12, 0.0 }
0x1096   :  { %3428 = vadd.xlane.f32.xlu1 %v3427_v50  ;;  %v3404_v40 = vadd.f32 %v3403_v46, %v3402_v55 }
0x1097   :  { %v3448_v13 = vadd.f32 %v3447_v5, %v3446_v59 }
0x1098   :  { %3405 = vadd.xlane.f32.xlu0 %v3404_v40 }
0x1099   :  { %v3450_v38 = vadd.f32 %v3449_v63, %v3448_v13 }
0x109c   :  { %3451 = vadd.xlane.f32.xlu0 %v3450_v38 }
0x10a7   :  { %3460 = vperm.xlu1 %4635, %v3457_v23  }
0x10b2   :  { %3467 = vperm.xlu0 %4636, %v3464_v39  }
0x10b3   :  { %4810 = shalt.err (!%p4807_p9)
}
0x10b4   :  { %s4811_s11 = scalar_lea.hbm %s6757_s13, 768 }
0x10b5   :  { %p4812_p10 = scmp.ne.s32.totalorder %s6757_s13, %s4811_s11  ;;  %p4815_p11 = scmp.lt.u32.totalorder %s4811_s11, %s6757_s13 }
0x10b7   :  { %p4817_p12 = pnand %p4815_p11, %p4812_p10 }
0x10b9   :  { %4820 = shalt.err (!%p4817_p12)
}
0x10ba   :  { %s4864_s29 = smov 384   ;;  %s4865_s22 = smov 24  }
0x10bb   :  { %3484 = dma.vmem_to_hbm [thread:$0]  %s3479_s25, 768, %s6757_s13, [#allocation6], %s4864_s29, %s4864_s29, %s4865_s22  }
0x10bc   :  { %s4866_s23 = smov [#allocation9]  }
0x10bd   :  { %s3490_s8 = sshll.u32 %s4866_s23, 4  ;;  %s3491_s8 = int_to_ptr.vmem [resolvable:$true] %s3490_s8 }
0x10be   :  { %s4821_s9 = scalar_lea.vmem %s3491_s8, 1024  ;;  %p4826_p0 = scmp.lt.s32.totalorder %s3491_s8, %s3491_s8 }
0x10bf   :  { %p4822_p13 = scmp.ne.s32.totalorder %s3491_s8, %s4821_s9  ;;  %p4827_p1 = scmp.lt.s32.totalorder %s4821_s9, %s4821_s9 }
0x10c1   :  { %p4828_p2 = por %p4827_p1, %p4826_p0 }
0x10c3   :  { %p4829_p3 = pnand %p4828_p2, %p4822_p13 }
0x10c5   :  { %4832 = shalt.err (!%p4829_p3)
}
0x10c6   :  { %s4833_s10 = scalar_lea.hbm %s6758_s14, 1024 }
0x10c7   :  { %p4834_p4 = scmp.ne.s32.totalorder %s6758_s14, %s4833_s10  ;;  %p4837_p5 = scmp.lt.u32.totalorder %s4833_s10, %s6758_s14 }
0x10c9   :  { %p4839_p6 = pnand %p4837_p5, %p4834_p4 }
0x10cb   :  { %4842 = shalt.err (!%p4839_p6)
}
0x10cc   :  { %s4867_s3 = smov 512   ;;  %s4868_s17 = smov 32   ;;  %vm3453_vm1 = vcmask 7168   ;;  %vm3455_vm2 = vcmask 15360   ;;  %vm3471_vm3 = vcmask 18432  }
0x10cd   :  { %3496 = dma.vmem_to_hbm [thread:$0]  %s3491_s8, 1024, %s6758_s14, [#allocation10], %s4867_s3, %s4867_s3, %s4868_s17  }
0x1123   :  { %v3429_v53 = vpop.xlane.xlu1 %3428 }
0x1125   :  { %v3406_v20 = vpop.xlane.xlu0 %3405 }
0x1126   :  { %v3454_v1 = vsel %vm3453_vm1, %v3406_v20, %v3429_v53 }
0x1127   :  { %v3461_v44 = vpop.permute.xlu1 %3460 }
0x1129   :  { %v3452_v21 = vpop.xlane.xlu0 %3451 }
0x112a   :  { %v3456_v17 = vsel %vm3455_vm2, %v3454_v1, %v3452_v21 }
0x112b   :  { %v3463_v4 = vmul.f32 %v3461_v44, %v3456_v17 }
0x1131   :  { %v3468_v42 = vpop.permute.xlu0 %3467 }
0x1132   :  { %v3470_v32 = vadd.f32 %v3468_v42, %v3463_v4 }
0x1134   :  { %3472 = vst.msk [vmem:[%s6759_s15] sm:$0x7] %vm3471_vm3, %v3470_v32 }
0x1135   :  { %4845 = dma.done.wait [#allocation6], 768  }
0x1136   :  { %4846 = vsyncadd [#allocation6], 4294966528 }
0x1137   :  { %4847 = dma.done.wait [#allocation10], 1024  }
0x1138   :  { %4848 = vsyncadd [#allocation10], 4294966272 }
0x1139   :  { %3507 = vsyncpa [#allocation6], 1 }
0x113a   :  { %3508 = vsyncpa [#allocation10], 1 }
0x113b   :  { %3509 = vsyncpa [#allocation7], 1 }

</bundles_post_ra>
